<compile_context>
chip_gen: v5e
topology: v5e:2x2
jax: 0.10.0
libtpu: 0.0.40
codegen_flags: <defaults>
</compile_context>

<pallas_src>
import jax
import jax.numpy as jnp
from jax.experimental import pallas as pl
from jax.experimental.pallas import tpu as pltpu

_MATMUL_DTYPE = jnp.bfloat16   # MXU operand dtype (accumulation stays f32).
_Z_DTYPE = jnp.bfloat16        # dtype of the intermediate z in HBM.
# Set both to jnp.float32 for exact-f32 parity with a PyTorch reference.

_LANE = 128
_PW = 8                        # sublane-aligned halo width in the W axis

_VMEM_LIMIT_CACHE = None


def _vmem_limit():
    """Generation-aware scoped-VMEM limit (~3/4 of physical VMEM)."""
    global _VMEM_LIMIT_CACHE
    if _VMEM_LIMIT_CACHE is None:
        limit = 48 * 1024 * 1024
        try:
            cap = getattr(pltpu.get_tpu_info(), "vmem_capacity_bytes", None)
            if cap:
                limit = int(cap) * 3 // 4
        except Exception:
            pass
        _VMEM_LIMIT_CACHE = limit
    return _VMEM_LIMIT_CACHE


# ----------------------------------------------------------------------------
# Kernels
# ----------------------------------------------------------------------------
def _conv_paths_kernel(x_ref, xtop_ref, xbot_ref, w_ref, b_ref,
                       z_ref, sum_ref, ssq_ref, xpad_ref):
    """One (batch, H-tile) cell: 3x3 conv and 1x1 conv (channel concatenated,
    the 1x1 weights live in the centre tap) as 9 accumulating MXU matmuls,
    plus per-channel sum / sum^2 of the bf16-rounded output for BN1/BN2."""
    _, TH, W, Cin = x_ref.shape
    Cout = z_ref.shape[1]
    Cout_p = w_ref.shape[-1]
    h = pl.program_id(1)
    last_h = pl.num_programs(1) - 1

    # Left/right zero bands.  They are rewritten every step (tiny: 2*_PW cols)
    # because scratch is per-TensorCore, so a one-time init gated on
    # program_id == 0 would only run on one core when the grid is split.
    xpad_ref[:, :_PW, :] = jnp.zeros((TH + 2, _PW, Cin), xpad_ref.dtype)
    xpad_ref[:, _PW + W:, :] = jnp.zeros((TH + 2, _PW, Cin), xpad_ref.dtype)

    # Top/bottom halo rows (zeroed at the image border); interior copy lands
    # at a sublane-aligned offset so it is unmasked stores.
    top = xtop_ref[0, 0] * (h > 0).astype(jnp.float32)
    bot = xbot_ref[0, 0] * (h < last_h).astype(jnp.float32)
    xpad_ref[0, _PW:_PW + W, :] = top.astype(xpad_ref.dtype)
    xpad_ref[TH + 1, _PW:_PW + W, :] = bot.astype(xpad_ref.dtype)
    xpad_ref[1:TH + 1, _PW:_PW + W, :] = x_ref[0].astype(xpad_ref.dtype)

    # 9 accumulating matmuls on shifted views (no im2col buffer at all).
    acc = jnp.zeros((TH * W, Cout_p), jnp.float32)
    for ky in range(3):
        for kx in range(3):
            xs = xpad_ref[ky:ky + TH, _PW - 1 + kx:_PW - 1 + kx + W, :]
            xs = xs.reshape(TH * W, Cin)
            acc = acc + jnp.dot(xs, w_ref[ky * 3 + kx],
                                preferred_element_type=jnp.float32)
    acc = acc + b_ref[...]

    # BN1/BN2 batch statistics from the bf16-ROUNDED z (matches stored data).
    zr = acc[:, :Cout].astype(z_ref.dtype).astype(jnp.float32)
    sum_ref[0] = jnp.sum(zr, axis=0, keepdims=True)
    ssq_ref[0] = jnp.sum(zr * zr, axis=0, keepdims=True)

    # Channel-major, lane-dense store: one f32 transpose of the 128-padded
    # accumulator on the otherwise idle XLU, then strip the channel padding.
    z_ref[0] = acc.T[:Cout, :].astype(z_ref.dtype)


def _relu_affine_rowstats_kernel(z_ref, s_ref, t_ref, sum_ref, ssq_ref):
    """Per-row sum / sum^2 of u = relu(z*s + t) without ever writing u."""
    u = jnp.maximum(z_ref[...].astype(jnp.float32) * s_ref[...] + t_ref[...],
                    0.0)
    sum_ref[...] = jnp.sum(u, axis=1, keepdims=True)
    ssq_ref[...] = jnp.sum(u * u, axis=1, keepdims=True)


def _bn_relu_bn_kernel(z_ref, s12_ref, t12_ref, s3_ref, t3_ref, o_ref):
    """out = affine3(relu(affine12(z))) on the channel-major (rows, H*W) view."""
    u = jnp.maximum(z_ref[...].astype(jnp.float32) * s12_ref[...] + t12_ref[...],
                    0.0)
    o_ref[...] = (u * s3_ref[...] + t3_ref[...]).astype(o_ref.dtype)


# ----------------------------------------------------------------------------
# Tile sizing helpers
# ----------------------------------------------------------------------------
def _pick_th(H, W, Cin, Cout, Cout_p, budget, max_rows=None):
    """Largest H-tile whose per-step VMEM footprint fits `budget` while the
    z block stays BlockSpec-legal ((TH*W) % 128 == 0 unless TH == H)."""
    per_row = (W * Cin * 4 * 2              # f32 x block (double buffered)
               + (W + 2 * _PW) * Cin * 2    # bf16 halo slab
               + W * Cout * 2 * 2           # bf16 z block (double buffered)
               + W * Cout_p * 4 * 2)        # f32 accumulator + transpose temp
    cap = max(1, budget // per_row)
    if max_rows is not None:
        cap = min(cap, max_rows)
    legal = [t for t in range(1, H + 1)
             if H % t == 0 and (t == H or (t * W) % _LANE == 0)]
    fitting = [t for t in legal if t <= cap]
    # TODO(synk): if nothing fits, add manual-DMA W tiling instead of falling
    # back to the smallest legal H tile.
    return max(fitting) if fitting else min(legal)


def _pick_row_tile(rows, bytes_per_row, budget):
    """VMEM-budget-aware row tile: largest multiple-of-8 divisor of `rows`
    whose live footprint stays under `budget` (whole array if it fits)."""
    cap = max(8, budget // max(bytes_per_row, 1))
    if rows <= cap:
        return rows
    best = None
    for t in range(8, min(rows, cap) + 1, 8):
        if rows % t == 0:
            best = t
    if best is None:
        # TODO(synk): pad rows to a multiple of 8 instead of this whole-array
        # fallback (which can exceed the soft VMEM budget).
        return rows
    return best


# ----------------------------------------------------------------------------
# pallas_call wrappers
# ----------------------------------------------------------------------------
def _fused_conv_paths(x_nhwc, w_taps, bias_p, cout, th):
    """x: (N,H,W,Cin) -> z: (N,Cout,H*W) bf16 plus per-tile channel sums."""
    N, H, W, Cin = x_nhwc.shape
    cout_p = w_taps.shape[-1]
    nH = H // th
    limit = _vmem_limit()

    return pl.pallas_call(
        _conv_paths_kernel,
        out_shape=(
            jax.ShapeDtypeStruct((N, cout, H * W), _Z_DTYPE),
            jax.ShapeDtypeStruct((N * nH, 1, cout), jnp.float32),
            jax.ShapeDtypeStruct((N * nH, 1, cout), jnp.float32),
        ),
        grid=(N, nH),
        in_specs=[
            pl.BlockSpec((1, th, W, Cin), lambda n, h: (n, h, 0, 0)),
            # 1-row halo above / below, clamped at the image border (zeroed
            # inside the kernel when at the border).
            pl.BlockSpec((1, 1, W, Cin),
                         lambda n, h: (n, jnp.maximum(h * th - 1, 0), 0, 0)),
            pl.BlockSpec((1, 1, W, Cin),
                         lambda n, h: (n, jnp.minimum(h * th + th, H - 1), 0, 0)),
            pl.BlockSpec((9, Cin, cout_p), lambda n, h: (0, 0, 0)),
            pl.BlockSpec((1, cout_p), lambda n, h: (0, 0)),
        ],
        out_specs=(
            pl.BlockSpec((1, cout, th * W), lambda n, h: (n, 0, h)),
            pl.BlockSpec((1, 1, cout), lambda n, h: (n * nH + h, 0, 0)),
            pl.BlockSpec((1, 1, cout), lambda n, h: (n * nH + h, 0, 0)),
        ),
        scratch_shapes=[
            pltpu.VMEM((th + 2, W + 2 * _PW, Cin), _MATMUL_DTYPE),
        ],
        compiler_params=pltpu.CompilerParams(
            dimension_semantics=("parallel", "parallel"),
            vmem_limit_bytes=limit),
    )(x_nhwc, x_nhwc, x_nhwc, w_taps, bias_p)


def _relu_affine_rowstats(z2d, s_rows, t_rows):
    """Per-row (i.e. per (n, c)) sum / sum^2 of relu(z*s + t)."""
    R, L = z2d.shape
    limit = _vmem_limit()
    zb = jnp.dtype(z2d.dtype).itemsize
    tr = _pick_row_tile(R, L * zb * 2 + 64, limit // 2)
    G = max(1, R // tr)
    return pl.pallas_call(
        _relu_affine_rowstats_kernel,
        out_shape=(jax.ShapeDtypeStruct((R, 1), jnp.float32),
                   jax.ShapeDtypeStruct((R, 1), jnp.float32)),
        grid=(G,),
        in_specs=[pl.BlockSpec((tr, L), lambda g: (g, 0)),
                  pl.BlockSpec((tr, 1), lambda g: (g, 0)),
                  pl.BlockSpec((tr, 1), lambda g: (g, 0))],
        out_specs=(pl.BlockSpec((tr, 1), lambda g: (g, 0)),
                   pl.BlockSpec((tr, 1), lambda g: (g, 0))),
        compiler_params=pltpu.CompilerParams(
            dimension_semantics=("parallel",),
            vmem_limit_bytes=limit),
    )(z2d, s_rows, t_rows)


def _bn_relu_bn(z2d, s12, t12, s3, t3, out_dtype):
    R, L = z2d.shape
    limit = _vmem_limit()
    zb = jnp.dtype(z2d.dtype).itemsize
    ob = jnp.dtype(out_dtype).itemsize
    tr = _pick_row_tile(R, L * (zb + ob) * 2 + 128, limit // 2)
    G = max(1, R // tr)
    return pl.pallas_call(
        _bn_relu_bn_kernel,
        out_shape=jax.ShapeDtypeStruct((R, L), out_dtype),
        grid=(G,),
        in_specs=[pl.BlockSpec((tr, L), lambda g: (g, 0))]
                 + [pl.BlockSpec((tr, 1), lambda g: (g, 0))] * 4,
        out_specs=pl.BlockSpec((tr, L), lambda g: (g, 0)),
        compiler_params=pltpu.CompilerParams(
            dimension_semantics=("parallel",),
            vmem_limit_bytes=limit),
    )(z2d, s12, t12, s3, t3)


# ----------------------------------------------------------------------------
# respath_block forward
# ----------------------------------------------------------------------------
def _bn_affine(sum_x, ssq_x, count, gamma, beta, eps):
    """Training-mode BatchNorm (biased variance) folded to scale/shift."""
    mean = sum_x / count
    # TODO(synk): for very large N*H*W switch to a Welford/shifted merge; the
    # single-pass E[x^2]-E[x]^2 form can lose precision when |mean| >> std.
    var = jnp.maximum(ssq_x / count - mean * mean, 0.0)
    scale = gamma * jax.lax.rsqrt(var + eps)
    shift = beta - mean * scale
    return scale, shift


def respath_block_forward(x_nchw, params, eps=1e-5, max_tile_rows=None):
    """Forward of respath_block with training-mode batch statistics:
    BN3(relu(cat(relu(BN1(conv3x3(x))), BN2(conv1x1(x))))).
    Accepts and returns PyTorch NCHW layout."""
    N, _, H, W = x_nchw.shape
    cout = int(params["gamma3"].shape[0])
    cout_p = int(params["w_taps"].shape[-1])
    cin = int(params["w_taps"].shape[1])

    # NCHW -> NHWC so input channels sit on the lane axis for the matmuls.
    # TODO(synk): keep the surrounding model in NHWC to drop this transpose.
    x_nhwc = jnp.transpose(x_nchw, (0, 2, 3, 1))

    th = _pick_th(H, W, cin, cout, cout_p, _vmem_limit() // 2, max_tile_rows)

    # Pass 1: both conv paths fused; z written channel-major + BN1/BN2 stats.
    z, zsum_t, zssq_t = _fused_conv_paths(x_nhwc, params["w_taps"],
                                          params["bias"], cout, th)
    count = float(N * H * W)
    scale12, shift12 = _bn_affine(jnp.sum(zsum_t, axis=(0, 1)),
                                  jnp.sum(zssq_t, axis=(0, 1)), count,
                                  params["gamma12"], params["beta12"], eps)

    # Channel-major 2D view (free reshape): row r = n*Cout + c, lanes = H*W.
    R, HW = N * cout, H * W
    z2d = z.reshape(R, HW)
    s12 = jnp.tile(scale12, N).reshape(R, 1)
    t12 = jnp.tile(shift12, N).reshape(R, 1)

    # Pass 2: BN3 batch statistics of u = relu(affine12(z)); u never hits HBM.
    usum_r, ussq_r = _relu_affine_rowstats(z2d, s12, t12)
    scale3, shift3 = _bn_affine(jnp.sum(usum_r.reshape(N, cout), axis=0),
                                jnp.sum(ussq_r.reshape(N, cout), axis=0), count,
                                params["gamma3"], params["beta3"], eps)
    s3 = jnp.tile(scale3, N).reshape(R, 1)
    t3 = jnp.tile(shift3, N).reshape(R, 1)

    # Pass 3: out = affine3(relu(affine12(z))); rows are already (n, c) major,
    # so this reshapes straight to NCHW with no trailing transpose.
    out2d = _bn_relu_bn(z2d, s12, t12, s3, t3, x_nchw.dtype)
    return out2d.reshape(N, cout, H, W)


# ----------------------------------------------------------------------------
# Parameter construction (PyTorch layouts -> fused kernel layout)
# ----------------------------------------------------------------------------
def init_respath_params(key, in_ch, out_ch):
    """Raw parameters in PyTorch layouts (Conv2d OIHW weights, BN gamma/beta)."""
    assert out_ch % 2 == 0
    half = out_ch // 2
    k1, k2, k3, k4 = jax.random.split(key, 4)
    return {
        "w1": jax.random.normal(k1, (half, in_ch, 3, 3), jnp.float32) * 0.1,
        "b1": jax.random.normal(k3, (half,), jnp.float32) * 0.05,
        "w2": jax.random.normal(k2, (half, in_ch, 1, 1), jnp.float32) * 0.1,
        "b2": jax.random.normal(k4, (half,), jnp.float32) * 0.05,
        "gamma1": jnp.ones((half,), jnp.float32),      # nn.BatchNorm2d defaults
        "beta1": jnp.zeros((half,), jnp.float32),
        "gamma2": jnp.ones((half,), jnp.float32),
        "beta2": jnp.zeros((half,), jnp.float32),
        "gamma3": jnp.ones((out_ch,), jnp.float32),
        "beta3": jnp.zeros((out_ch,), jnp.float32),
    }


def prepare_fused_params(raw):
    """Fold the 1x1 weights into the centre tap of a combined 3x3 weight and
    zero-pad Cout to a multiple of 128 for full MXU output-lane utilization."""
    w1, w2 = raw["w1"], raw["w2"]                       # OIHW
    half, cin = int(w1.shape[0]), int(w1.shape[1])
    cout = 2 * half
    cout_p = ((cout + _LANE - 1) // _LANE) * _LANE
    wc = jnp.zeros((3, 3, cin, cout_p), jnp.float32)
    wc = wc.at[:, :, :, :half].set(jnp.transpose(w1, (2, 3, 1, 0)))
    wc = wc.at[1, 1, :, half:cout].set(jnp.transpose(w2[:, :, 0, 0], (1, 0)))
    bias = jnp.zeros((1, cout_p), jnp.float32)
    bias = bias.at[0, :cout].set(jnp.concatenate([raw["b1"], raw["b2"]]))
    return {
        "w_taps": wc.reshape(9, cin, cout_p).astype(_MATMUL_DTYPE),
        "bias": bias,
        "gamma12": jnp.concatenate([raw["gamma1"], raw["gamma2"]]),
        "beta12": jnp.concatenate([raw["beta1"], raw["beta2"]]),
        "gamma3": raw["gamma3"],
        "beta3": raw["beta3"],
    }


# ----------------------------------------------------------------------------
# Pure-JAX reference (mirrors the PyTorch module in training mode)
# ----------------------------------------------------------------------------
def _reference_forward(x_nchw, raw, eps=1e-5):
    def conv(x, w, b, pad):
        y = jax.lax.conv_general_dilated(
            x, w, window_strides=(1, 1), padding=[(pad, pad), (pad, pad)],
            dimension_numbers=("NCHW", "OIHW", "NCHW"))
        return y + b[None, :, None, None]

    def bn(x, g, b):
        mean = jnp.mean(x, axis=(0, 2, 3), keepdims=True)
        var = jnp.mean(jnp.square(x - mean), axis=(0, 2, 3), keepdims=True)
        return ((x - mean) * jax.lax.rsqrt(var + eps)
                * g[None, :, None, None] + b[None, :, None, None])

    p1 = jax.nn.relu(bn(conv(x_nchw, raw["w1"], raw["b1"], 1),
                        raw["gamma1"], raw["beta1"]))
    p2 = bn(conv(x_nchw, raw["w2"], raw["b2"], 0), raw["gamma2"], raw["beta2"])
    cat = jnp.concatenate([p1, p2], axis=1)
    return bn(jax.nn.relu(cat), raw["gamma3"], raw["beta3"])


if __name__ == "__main__":
    key = jax.random.PRNGKey(0)
    kx, kp = jax.random.split(key)

    N, in_ch, out_ch, H, W = 2, 4, 8, 16, 16
    x = jax.random.normal(kx, (N, in_ch, H, W), jnp.float32)
    raw = init_respath_params(kp, in_ch, out_ch)
    params = prepare_fused_params(raw)

    fwd = jax.jit(respath_block_forward, static_argnames=("max_tile_rows",))
    y = jax.block_until_ready(fwd(x, params))

    assert y.shape == (N, out_ch, H, W), y.shape
    assert bool(jnp.all(jnp.isfinite(y)))

    # Compare against a pure-JAX f32 reference (bf16 matmul/z => loose tol).
    y_ref = _reference_forward(x, raw)
    err = float(jnp.max(jnp.abs(y - y_ref)))
    assert err < 6e-2, f"max |pallas - reference| = {err}"

    # Exercise the H-tiled (halo BlockSpec) path and check it matches too.
    y_tiled = jax.block_until_ready(fwd(x, params, max_tile_rows=8))
    err_tiled = float(jnp.max(jnp.abs(y_tiled - y_ref)))
    assert err_tiled < 6e-2, f"max |tiled pallas - reference| = {err_tiled}"

    # Final op is an untrained BatchNorm (gamma=1, beta=0) in training mode,
    # so every output channel has ~zero batch mean.
    chan_mean = jnp.mean(y, axis=(0, 2, 3))
    assert bool(jnp.all(jnp.abs(chan_mean) < 1e-2)), chan_mean

    print("KERNEL_OK")
</pallas_src>

<mosaic_0001>
module attributes {stable_mosaic.version = 11 : i64} {
  func.func @_conv_paths_kernel(%arg0: i32, %arg1: i32, %arg2: memref<1x16x16x4xf32, #tpu.memory_space<vmem>>, %arg3: memref<1x1x16x4xf32, #tpu.memory_space<vmem>>, %arg4: memref<1x1x16x4xf32, #tpu.memory_space<vmem>>, %arg5: memref<9x4x128xbf16, #tpu.memory_space<vmem>>, %arg6: memref<1x128xf32, #tpu.memory_space<vmem>>, %arg7: memref<1x8x256xbf16, #tpu.memory_space<vmem>>, %arg8: memref<1x1x8xf32, #tpu.memory_space<vmem>>, %arg9: memref<1x1x8xf32, #tpu.memory_space<vmem>>, %arg10: memref<18x32x4xbf16, #tpu.memory_space<vmem>>) attributes {dimension_semantics = [#tpu.dimension_semantics<parallel>, #tpu.dimension_semantics<parallel>], iteration_bounds = array<i64: 2, 1>, scalar_prefetch = 0 : i64, scratch_operands = 1 : i64, tpu.core_type = #tpu.core_type<tc>, window_params = [{transform_indices = @transform_0, window_bounds = array<i64: 1, 16, 16, 4>}, {transform_indices = @transform_1, window_bounds = array<i64: 1, 1, 16, 4>}, {transform_indices = @transform_2, window_bounds = array<i64: 1, 1, 16, 4>}, {pipeline_mode = #tpu.pipeline_mode<synchronous>, transform_indices = @transform_3, window_bounds = array<i64: 9, 4, 128>}, {pipeline_mode = #tpu.pipeline_mode<synchronous>, transform_indices = @transform_4, window_bounds = array<i64: 1, 128>}, {transform_indices = @transform_5, window_bounds = array<i64: 1, 8, 256>}, {transform_indices = @transform_6, window_bounds = array<i64: 1, 1, 8>}, {transform_indices = @transform_7, window_bounds = array<i64: 1, 1, 8>}]} {
    %cst = arith.constant 0.000000e+00 : bf16
    %0 = vector.broadcast %cst : bf16 to vector<18x8x4xbf16>
    %c0 = arith.constant 0 : index
    %c0_0 = arith.constant 0 : index
    %c0_1 = arith.constant 0 : index
    %1 = vector.load %arg10[%c0, %c0_0, %c0_1] : memref<18x32x4xbf16, #tpu.memory_space<vmem>>, vector<18x8x4xbf16>
    tpu.vector_store %arg10[%c0, %c0_0, %c0_1], %0 {strides = array<i32>} : memref<18x32x4xbf16, #tpu.memory_space<vmem>>, vector<18x8x4xbf16>,
    %cst_2 = arith.constant 0.000000e+00 : bf16
    %2 = vector.broadcast %cst_2 : bf16 to vector<18x8x4xbf16>
    %c0_3 = arith.constant 0 : index
    %c24 = arith.constant 24 : index
    %c0_4 = arith.constant 0 : index
    %3 = vector.load %arg10[%c0_3, %c24, %c0_4] : memref<18x32x4xbf16, #tpu.memory_space<vmem>>, vector<18x8x4xbf16>
    tpu.vector_store %arg10[%c0_3, %c24, %c0_4], %2 {strides = array<i32>} : memref<18x32x4xbf16, #tpu.memory_space<vmem>>, vector<18x8x4xbf16>,
    %c0_5 = arith.constant 0 : index
    %c0_6 = arith.constant 0 : index
    %c0_7 = arith.constant 0 : index
    %c0_8 = arith.constant 0 : index
    %4 = vector.load %arg3[%c0_5, %c0_6, %c0_7, %c0_8] : memref<1x1x16x4xf32, #tpu.memory_space<vmem>>, vector<1x1x16x4xf32>
    %5 = vector.shape_cast %4 : vector<1x1x16x4xf32> to vector<16x4xf32>
    %c0_i32 = arith.constant 0 : i32
    %6 = arith.cmpi sgt, %arg1, %c0_i32 : i32
    %7 = arith.extui %6 : i1 to i32
    %8 = arith.sitofp %7 : i32 to f32
    %9 = vector.broadcast %8 : f32 to vector<16x4xf32>
    %10 = arith.mulf %5, %9 : vector<16x4xf32>
    %c0_9 = arith.constant 0 : index
    %c0_10 = arith.constant 0 : index
    %c0_11 = arith.constant 0 : index
    %c0_12 = arith.constant 0 : index
    %11 = vector.load %arg4[%c0_9, %c0_10, %c0_11, %c0_12] : memref<1x1x16x4xf32, #tpu.memory_space<vmem>>, vector<1x1x16x4xf32>
    %12 = vector.shape_cast %11 : vector<1x1x16x4xf32> to vector<16x4xf32>
    %c0_i32_13 = arith.constant 0 : i32
    %13 = arith.cmpi slt, %arg1, %c0_i32_13 : i32
    %14 = arith.extui %13 : i1 to i32
    %15 = arith.sitofp %14 : i32 to f32
    %16 = vector.broadcast %15 : f32 to vector<16x4xf32>
    %17 = arith.mulf %12, %16 : vector<16x4xf32>
    %18 = arith.truncf %10 : vector<16x4xf32> to vector<16x4xbf16>
    %c0_14 = arith.constant 0 : index
    %c8 = arith.constant 8 : index
    %c0_15 = arith.constant 0 : index
    %19 = vector.load %arg10[%c0_14, %c8, %c0_15] : memref<18x32x4xbf16, #tpu.memory_space<vmem>>, vector<1x16x4xbf16>
    %20 = vector.shape_cast %19 : vector<1x16x4xbf16> to vector<16x4xbf16>
    %21 = vector.shape_cast %18 : vector<16x4xbf16> to vector<1x16x4xbf16>
    tpu.vector_store %arg10[%c0_14, %c8, %c0_15], %21 {strides = array<i32>} : memref<18x32x4xbf16, #tpu.memory_space<vmem>>, vector<1x16x4xbf16>,
    %22 = arith.truncf %17 : vector<16x4xf32> to vector<16x4xbf16>
    %c17 = arith.constant 17 : index
    %c8_16 = arith.constant 8 : index
    %c0_17 = arith.constant 0 : index
    %23 = vector.load %arg10[%c17, %c8_16, %c0_17] : memref<18x32x4xbf16, #tpu.memory_space<vmem>>, vector<1x16x4xbf16>
    %24 = vector.shape_cast %23 : vector<1x16x4xbf16> to vector<16x4xbf16>
    %25 = vector.shape_cast %22 : vector<16x4xbf16> to vector<1x16x4xbf16>
    tpu.vector_store %arg10[%c17, %c8_16, %c0_17], %25 {strides = array<i32>} : memref<18x32x4xbf16, #tpu.memory_space<vmem>>, vector<1x16x4xbf16>,
    %c0_18 = arith.constant 0 : index
    %c0_19 = arith.constant 0 : index
    %c0_20 = arith.constant 0 : index
    %c0_21 = arith.constant 0 : index
    %26 = vector.load %arg2[%c0_18, %c0_19, %c0_20, %c0_21] : memref<1x16x16x4xf32, #tpu.memory_space<vmem>>, vector<1x16x16x4xf32>
    %27 = vector.shape_cast %26 : vector<1x16x16x4xf32> to vector<16x16x4xf32>
    %28 = arith.truncf %27 : vector<16x16x4xf32> to vector<16x16x4xbf16>
    %c1 = arith.constant 1 : index
    %c8_22 = arith.constant 8 : index
    %c0_23 = arith.constant 0 : index
    %29 = vector.load %arg10[%c1, %c8_22, %c0_23] : memref<18x32x4xbf16, #tpu.memory_space<vmem>>, vector<16x16x4xbf16>
    tpu.vector_store %arg10[%c1, %c8_22, %c0_23], %28 {strides = array<i32>} : memref<18x32x4xbf16, #tpu.memory_space<vmem>>, vector<16x16x4xbf16>,
    %cst_24 = arith.constant 0.000000e+00 : f32
    %30 = vector.broadcast %cst_24 : f32 to vector<256x128xf32>
    %c0_25 = arith.constant 0 : index
    %c7 = arith.constant 7 : index
    %c0_26 = arith.constant 0 : index
    %31 = vector.load %arg10[%c0_25, %c7, %c0_26] : memref<18x32x4xbf16, #tpu.memory_space<vmem>>, vector<16x16x4xbf16>
    %32 = vector.shape_cast %31 : vector<16x16x4xbf16> to vector<256x4xbf16>
    %c0_27 = arith.constant 0 : index
    %c0_28 = arith.constant 0 : index
    %c0_29 = arith.constant 0 : index
    %33 = vector.load %arg5[%c0_27, %c0_28, %c0_29] : memref<9x4x128xbf16, #tpu.memory_space<vmem>>, vector<1x4x128xbf16>
    %34 = vector.shape_cast %33 : vector<1x4x128xbf16> to vector<4x128xbf16>
    %cst_30 = arith.constant dense<0.000000e+00> : vector<256x128xf32>
    %35 = tpu.matmul %32, %34, %cst_30 {dimension_numbers = #tpu.dot_dimension_numbers<[1], [0], [0], [1], [0, 0, 1, 1], [], []>} : vector<256x4xbf16>, vector<4x128xbf16>, vector<256x128xf32> -> vector<256x128xf32>
    %36 = arith.addf %30, %35 : vector<256x128xf32>
    %c0_31 = arith.constant 0 : index
    %c8_32 = arith.constant 8 : index
    %c0_33 = arith.constant 0 : index
    %37 = vector.load %arg10[%c0_31, %c8_32, %c0_33] : memref<18x32x4xbf16, #tpu.memory_space<vmem>>, vector<16x16x4xbf16>
    %38 = vector.shape_cast %37 : vector<16x16x4xbf16> to vector<256x4xbf16>
    %c1_34 = arith.constant 1 : index
    %c0_35 = arith.constant 0 : index
    %c0_36 = arith.constant 0 : index
    %39 = vector.load %arg5[%c1_34, %c0_35, %c0_36] : memref<9x4x128xbf16, #tpu.memory_space<vmem>>, vector<1x4x128xbf16>
    %40 = vector.shape_cast %39 : vector<1x4x128xbf16> to vector<4x128xbf16>
    %cst_37 = arith.constant dense<0.000000e+00> : vector<256x128xf32>
    %41 = tpu.matmul %38, %40, %cst_37 {dimension_numbers = #tpu.dot_dimension_numbers<[1], [0], [0], [1], [0, 0, 1, 1], [], []>} : vector<256x4xbf16>, vector<4x128xbf16>, vector<256x128xf32> -> vector<256x128xf32>
    %42 = arith.addf %36, %41 : vector<256x128xf32>
    %c0_38 = arith.constant 0 : index
    %c9 = arith.constant 9 : index
    %c0_39 = arith.constant 0 : index
    %43 = vector.load %arg10[%c0_38, %c9, %c0_39] : memref<18x32x4xbf16, #tpu.memory_space<vmem>>, vector<16x16x4xbf16>
    %44 = vector.shape_cast %43 : vector<16x16x4xbf16> to vector<256x4xbf16>
    %c2 = arith.constant 2 : index
    %c0_40 = arith.constant 0 : index
    %c0_41 = arith.constant 0 : index
    %45 = vector.load %arg5[%c2, %c0_40, %c0_41] : memref<9x4x128xbf16, #tpu.memory_space<vmem>>, vector<1x4x128xbf16>
    %46 = vector.shape_cast %45 : vector<1x4x128xbf16> to vector<4x128xbf16>
    %cst_42 = arith.constant dense<0.000000e+00> : vector<256x128xf32>
    %47 = tpu.matmul %44, %46, %cst_42 {dimension_numbers = #tpu.dot_dimension_numbers<[1], [0], [0], [1], [0, 0, 1, 1], [], []>} : vector<256x4xbf16>, vector<4x128xbf16>, vector<256x128xf32> -> vector<256x128xf32>
    %48 = arith.addf %42, %47 : vector<256x128xf32>
    %c1_43 = arith.constant 1 : index
    %c7_44 = arith.constant 7 : index
    %c0_45 = arith.constant 0 : index
    %49 = vector.load %arg10[%c1_43, %c7_44, %c0_45] : memref<18x32x4xbf16, #tpu.memory_space<vmem>>, vector<16x16x4xbf16>
    %50 = vector.shape_cast %49 : vector<16x16x4xbf16> to vector<256x4xbf16>
    %c3 = arith.constant 3 : index
    %c0_46 = arith.constant 0 : index
    %c0_47 = arith.constant 0 : index
    %51 = vector.load %arg5[%c3, %c0_46, %c0_47] : memref<9x4x128xbf16, #tpu.memory_space<vmem>>, vector<1x4x128xbf16>
    %52 = vector.shape_cast %51 : vector<1x4x128xbf16> to vector<4x128xbf16>
    %cst_48 = arith.constant dense<0.000000e+00> : vector<256x128xf32>
    %53 = tpu.matmul %50, %52, %cst_48 {dimension_numbers = #tpu.dot_dimension_numbers<[1], [0], [0], [1], [0, 0, 1, 1], [], []>} : vector<256x4xbf16>, vector<4x128xbf16>, vector<256x128xf32> -> vector<256x128xf32>
    %54 = arith.addf %48, %53 : vector<256x128xf32>
    %c1_49 = arith.constant 1 : index
    %c8_50 = arith.constant 8 : index
    %c0_51 = arith.constant 0 : index
    %55 = vector.load %arg10[%c1_49, %c8_50, %c0_51] : memref<18x32x4xbf16, #tpu.memory_space<vmem>>, vector<16x16x4xbf16>
    %56 = vector.shape_cast %55 : vector<16x16x4xbf16> to vector<256x4xbf16>
    %c4 = arith.constant 4 : index
    %c0_52 = arith.constant 0 : index
    %c0_53 = arith.constant 0 : index
    %57 = vector.load %arg5[%c4, %c0_52, %c0_53] : memref<9x4x128xbf16, #tpu.memory_space<vmem>>, vector<1x4x128xbf16>
    %58 = vector.shape_cast %57 : vector<1x4x128xbf16> to vector<4x128xbf16>
    %cst_54 = arith.constant dense<0.000000e+00> : vector<256x128xf32>
    %59 = tpu.matmul %56, %58, %cst_54 {dimension_numbers = #tpu.dot_dimension_numbers<[1], [0], [0], [1], [0, 0, 1, 1], [], []>} : vector<256x4xbf16>, vector<4x128xbf16>, vector<256x128xf32> -> vector<256x128xf32>
    %60 = arith.addf %54, %59 : vector<256x128xf32>
    %c1_55 = arith.constant 1 : index
    %c9_56 = arith.constant 9 : index
    %c0_57 = arith.constant 0 : index
    %61 = vector.load %arg10[%c1_55, %c9_56, %c0_57] : memref<18x32x4xbf16, #tpu.memory_space<vmem>>, vector<16x16x4xbf16>
    %62 = vector.shape_cast %61 : vector<16x16x4xbf16> to vector<256x4xbf16>
    %c5 = arith.constant 5 : index
    %c0_58 = arith.constant 0 : index
    %c0_59 = arith.constant 0 : index
    %63 = vector.load %arg5[%c5, %c0_58, %c0_59] : memref<9x4x128xbf16, #tpu.memory_space<vmem>>, vector<1x4x128xbf16>
    %64 = vector.shape_cast %63 : vector<1x4x128xbf16> to vector<4x128xbf16>
    %cst_60 = arith.constant dense<0.000000e+00> : vector<256x128xf32>
    %65 = tpu.matmul %62, %64, %cst_60 {dimension_numbers = #tpu.dot_dimension_numbers<[1], [0], [0], [1], [0, 0, 1, 1], [], []>} : vector<256x4xbf16>, vector<4x128xbf16>, vector<256x128xf32> -> vector<256x128xf32>
    %66 = arith.addf %60, %65 : vector<256x128xf32>
    %c2_61 = arith.constant 2 : index
    %c7_62 = arith.constant 7 : index
    %c0_63 = arith.constant 0 : index
    %67 = vector.load %arg10[%c2_61, %c7_62, %c0_63] : memref<18x32x4xbf16, #tpu.memory_space<vmem>>, vector<16x16x4xbf16>
    %68 = vector.shape_cast %67 : vector<16x16x4xbf16> to vector<256x4xbf16>
    %c6 = arith.constant 6 : index
    %c0_64 = arith.constant 0 : index
    %c0_65 = arith.constant 0 : index
    %69 = vector.load %arg5[%c6, %c0_64, %c0_65] : memref<9x4x128xbf16, #tpu.memory_space<vmem>>, vector<1x4x128xbf16>
    %70 = vector.shape_cast %69 : vector<1x4x128xbf16> to vector<4x128xbf16>
    %cst_66 = arith.constant dense<0.000000e+00> : vector<256x128xf32>
    %71 = tpu.matmul %68, %70, %cst_66 {dimension_numbers = #tpu.dot_dimension_numbers<[1], [0], [0], [1], [0, 0, 1, 1], [], []>} : vector<256x4xbf16>, vector<4x128xbf16>, vector<256x128xf32> -> vector<256x128xf32>
    %72 = arith.addf %66, %71 : vector<256x128xf32>
    %c2_67 = arith.constant 2 : index
    %c8_68 = arith.constant 8 : index
    %c0_69 = arith.constant 0 : index
    %73 = vector.load %arg10[%c2_67, %c8_68, %c0_69] : memref<18x32x4xbf16, #tpu.memory_space<vmem>>, vector<16x16x4xbf16>
    %74 = vector.shape_cast %73 : vector<16x16x4xbf16> to vector<256x4xbf16>
    %c7_70 = arith.constant 7 : index
    %c0_71 = arith.constant 0 : index
    %c0_72 = arith.constant 0 : index
    %75 = vector.load %arg5[%c7_70, %c0_71, %c0_72] : memref<9x4x128xbf16, #tpu.memory_space<vmem>>, vector<1x4x128xbf16>
    %76 = vector.shape_cast %75 : vector<1x4x128xbf16> to vector<4x128xbf16>
    %cst_73 = arith.constant dense<0.000000e+00> : vector<256x128xf32>
    %77 = tpu.matmul %74, %76, %cst_73 {dimension_numbers = #tpu.dot_dimension_numbers<[1], [0], [0], [1], [0, 0, 1, 1], [], []>} : vector<256x4xbf16>, vector<4x128xbf16>, vector<256x128xf32> -> vector<256x128xf32>
    %78 = arith.addf %72, %77 : vector<256x128xf32>
    %c2_74 = arith.constant 2 : index
    %c9_75 = arith.constant 9 : index
    %c0_76 = arith.constant 0 : index
    %79 = vector.load %arg10[%c2_74, %c9_75, %c0_76] : memref<18x32x4xbf16, #tpu.memory_space<vmem>>, vector<16x16x4xbf16>
    %80 = vector.shape_cast %79 : vector<16x16x4xbf16> to vector<256x4xbf16>
    %c8_77 = arith.constant 8 : index
    %c0_78 = arith.constant 0 : index
    %c0_79 = arith.constant 0 : index
    %81 = vector.load %arg5[%c8_77, %c0_78, %c0_79] : memref<9x4x128xbf16, #tpu.memory_space<vmem>>, vector<1x4x128xbf16>
    %82 = vector.shape_cast %81 : vector<1x4x128xbf16> to vector<4x128xbf16>
    %cst_80 = arith.constant dense<0.000000e+00> : vector<256x128xf32>
    %83 = tpu.matmul %80, %82, %cst_80 {dimension_numbers = #tpu.dot_dimension_numbers<[1], [0], [0], [1], [0, 0, 1, 1], [], []>} : vector<256x4xbf16>, vector<4x128xbf16>, vector<256x128xf32> -> vector<256x128xf32>
    %84 = arith.addf %78, %83 : vector<256x128xf32>
    %c0_81 = arith.constant 0 : index
    %c0_82 = arith.constant 0 : index
    %85 = vector.load %arg6[%c0_81, %c0_82] : memref<1x128xf32, #tpu.memory_space<vmem>>, vector<1x128xf32>
    %86 = vector.broadcast %85 : vector<1x128xf32> to vector<256x128xf32>
    %87 = arith.addf %84, %86 : vector<256x128xf32>
    %88 = vector.extract_strided_slice %87 {offsets = [0, 0], sizes = [256, 8], strides = [1, 1]} : vector<256x128xf32> to vector<256x8xf32>
    %89 = arith.truncf %88 : vector<256x8xf32> to vector<256x8xbf16>
    %90 = arith.extf %89 : vector<256x8xbf16> to vector<256x8xf32>
    %cst_83 = arith.constant dense<0.000000e+00> : vector<8xf32>
    %91 = vector.multi_reduction <add>, %90, %cst_83 [0] : vector<256x8xf32> to vector<8xf32>
    %92 = vector.shape_cast %91 : vector<8xf32> to vector<1x8xf32>
    %c0_84 = arith.constant 0 : index
    %c0_85 = arith.constant 0 : index
    %c0_86 = arith.constant 0 : index
    %93 = vector.load %arg8[%c0_84, %c0_85, %c0_86] : memref<1x1x8xf32, #tpu.memory_space<vmem>>, vector<1x1x8xf32>
    %94 = vector.shape_cast %93 : vector<1x1x8xf32> to vector<1x8xf32>
    %95 = vector.shape_cast %92 : vector<1x8xf32> to vector<1x1x8xf32>
    tpu.vector_store %arg8[%c0_84, %c0_85, %c0_86], %95 {strides = array<i32>} : memref<1x1x8xf32, #tpu.memory_space<vmem>>, vector<1x1x8xf32>,
    %96 = arith.mulf %90, %90 : vector<256x8xf32>
    %cst_87 = arith.constant dense<0.000000e+00> : vector<8xf32>
    %97 = vector.multi_reduction <add>, %96, %cst_87 [0] : vector<256x8xf32> to vector<8xf32>
    %98 = vector.shape_cast %97 : vector<8xf32> to vector<1x8xf32>
    %c0_88 = arith.constant 0 : index
    %c0_89 = arith.constant 0 : index
    %c0_90 = arith.constant 0 : index
    %99 = vector.load %arg9[%c0_88, %c0_89, %c0_90] : memref<1x1x8xf32, #tpu.memory_space<vmem>>, vector<1x1x8xf32>
    %100 = vector.shape_cast %99 : vector<1x1x8xf32> to vector<1x8xf32>
    %101 = vector.shape_cast %98 : vector<1x8xf32> to vector<1x1x8xf32>
    tpu.vector_store %arg9[%c0_88, %c0_89, %c0_90], %101 {strides = array<i32>} : memref<1x1x8xf32, #tpu.memory_space<vmem>>, vector<1x1x8xf32>,
    %102 = tpu.transpose %87, [1, 0] : vector<256x128xf32> -> vector<128x256xf32>
    %103 = vector.extract_strided_slice %102 {offsets = [0, 0], sizes = [8, 256], strides = [1, 1]} : vector<128x256xf32> to vector<8x256xf32>
    %104 = arith.truncf %103 : vector<8x256xf32> to vector<8x256xbf16>
    %c0_91 = arith.constant 0 : index
    %c0_92 = arith.constant 0 : index
    %c0_93 = arith.constant 0 : index
    %105 = vector.load %arg7[%c0_91, %c0_92, %c0_93] : memref<1x8x256xbf16, #tpu.memory_space<vmem>>, vector<1x8x256xbf16>
    %106 = vector.shape_cast %105 : vector<1x8x256xbf16> to vector<8x256xbf16>
    %107 = vector.shape_cast %104 : vector<8x256xbf16> to vector<1x8x256xbf16>
    tpu.vector_store %arg7[%c0_91, %c0_92, %c0_93], %107 {strides = array<i32>} : memref<1x8x256xbf16, #tpu.memory_space<vmem>>, vector<1x8x256xbf16>,
    return
  }
  func.func @transform_0(%arg0: i32, %arg1: i32) -> (i32, i32, i32, i32) {
    %c0_i32 = arith.constant 0 : i32
    %c0_i32_0 = arith.constant 0 : i32
    %c0_i32_1 = arith.constant 0 : i32
    return %arg0, %arg1, %c0_i32, %c0_i32_0 : i32, i32, i32, i32
  }
  func.func @transform_1(%arg0: i32, %arg1: i32) -> (i32, i32, i32, i32) {
    %c16_i32 = arith.constant 16 : i32
    %0 = arith.muli %arg1, %c16_i32 : i32
    %c1_i32 = arith.constant 1 : i32
    %1 = arith.subi %0, %c1_i32 : i32
    %c0_i32 = arith.constant 0 : i32
    %2 = arith.maxsi %1, %c0_i32 : i32
    %c0_i32_0 = arith.constant 0 : i32
    %c0_i32_1 = arith.constant 0 : i32
    %c0_i32_2 = arith.constant 0 : i32
    return %arg0, %2, %c0_i32_0, %c0_i32_1 : i32, i32, i32, i32
  }
  func.func @transform_2(%arg0: i32, %arg1: i32) -> (i32, i32, i32, i32) {
    %c16_i32 = arith.constant 16 : i32
    %0 = arith.muli %arg1, %c16_i32 : i32
    %c16_i32_0 = arith.constant 16 : i32
    %1 = arith.addi %0, %c16_i32_0 : i32
    %c15_i32 = arith.constant 15 : i32
    %2 = arith.minsi %1, %c15_i32 : i32
    %c0_i32 = arith.constant 0 : i32
    %c0_i32_1 = arith.constant 0 : i32
    %c0_i32_2 = arith.constant 0 : i32
    return %arg0, %2, %c0_i32, %c0_i32_1 : i32, i32, i32, i32
  }
  func.func @transform_3(%arg0: i32, %arg1: i32) -> (i32, i32, i32) {
    %c0_i32 = arith.constant 0 : i32
    %c0_i32_0 = arith.constant 0 : i32
    %c0_i32_1 = arith.constant 0 : i32
    %c0_i32_2 = arith.constant 0 : i32
    return %c0_i32, %c0_i32_0, %c0_i32_1 : i32, i32, i32
  }
  func.func @transform_4(%arg0: i32, %arg1: i32) -> (i32, i32) {
    %c0_i32 = arith.constant 0 : i32
    %c0_i32_0 = arith.constant 0 : i32
    %c0_i32_1 = arith.constant 0 : i32
    return %c0_i32, %c0_i32_0 : i32, i32
  }
  func.func @transform_5(%arg0: i32, %arg1: i32) -> (i32, i32, i32) {
    %c0_i32 = arith.constant 0 : i32
    %c0_i32_0 = arith.constant 0 : i32
    return %arg0, %c0_i32, %arg1 : i32, i32, i32
  }
  func.func @transform_6(%arg0: i32, %arg1: i32) -> (i32, i32, i32) {
    %c1_i32 = arith.constant 1 : i32
    %0 = arith.muli %arg0, %c1_i32 : i32
    %1 = arith.addi %0, %arg1 : i32
    %c0_i32 = arith.constant 0 : i32
    %c0_i32_0 = arith.constant 0 : i32
    %c0_i32_1 = arith.constant 0 : i32
    return %1, %c0_i32, %c0_i32_0 : i32, i32, i32
  }
  func.func @transform_7(%arg0: i32, %arg1: i32) -> (i32, i32, i32) {
    %c1_i32 = arith.constant 1 : i32
    %0 = arith.muli %arg0, %c1_i32 : i32
    %1 = arith.addi %0, %arg1 : i32
    %c0_i32 = arith.constant 0 : i32
    %c0_i32_0 = arith.constant 0 : i32
    %c0_i32_1 = arith.constant 0 : i32
    return %1, %c0_i32, %c0_i32_0 : i32, i32, i32
  }
}

module attributes {stable_mosaic.version = 11 : i64} {
  func.func @_relu_affine_rowstats_kernel(%arg0: i32, %arg1: memref<16x256xbf16, #tpu.memory_space<vmem>>, %arg2: memref<16x1xf32, #tpu.memory_space<vmem>>, %arg3: memref<16x1xf32, #tpu.memory_space<vmem>>, %arg4: memref<16x1xf32, #tpu.memory_space<vmem>>, %arg5: memref<16x1xf32, #tpu.memory_space<vmem>>) attributes {dimension_semantics = [#tpu.dimension_semantics<parallel>], iteration_bounds = array<i64: 1>, scalar_prefetch = 0 : i64, scratch_operands = 0 : i64, tpu.core_type = #tpu.core_type<tc>, window_params = [{transform_indices = @transform_0, window_bounds = array<i64: 16, 256>}, {transform_indices = @transform_1, window_bounds = array<i64: 16, 1>}, {transform_indices = @transform_2, window_bounds = array<i64: 16, 1>}, {transform_indices = @transform_3, window_bounds = array<i64: 16, 1>}, {transform_indices = @transform_4, window_bounds = array<i64: 16, 1>}]} {
    %c0 = arith.constant 0 : index
    %c0_0 = arith.constant 0 : index
    %0 = vector.load %arg1[%c0, %c0_0] : memref<16x256xbf16, #tpu.memory_space<vmem>>, vector<16x256xbf16>
    %1 = arith.extf %0 : vector<16x256xbf16> to vector<16x256xf32>
    %c0_1 = arith.constant 0 : index
    %c0_2 = arith.constant 0 : index
    %2 = vector.load %arg2[%c0_1, %c0_2] : memref<16x1xf32, #tpu.memory_space<vmem>>, vector<16x1xf32>
    %3 = vector.broadcast %2 : vector<16x1xf32> to vector<16x256xf32>
    %4 = arith.mulf %1, %3 : vector<16x256xf32>
    %c0_3 = arith.constant 0 : index
    %c0_4 = arith.constant 0 : index
    %5 = vector.load %arg3[%c0_3, %c0_4] : memref<16x1xf32, #tpu.memory_space<vmem>>, vector<16x1xf32>
    %6 = vector.broadcast %5 : vector<16x1xf32> to vector<16x256xf32>
    %7 = arith.addf %4, %6 : vector<16x256xf32>
    %cst = arith.constant 0.000000e+00 : f32
    %8 = vector.broadcast %cst : f32 to vector<16x256xf32>
    %9 = arith.maximumf %7, %8 : vector<16x256xf32>
    %cst_5 = arith.constant dense<0.000000e+00> : vector<16xf32>
    %10 = vector.multi_reduction <add>, %9, %cst_5 [1] : vector<16x256xf32> to vector<16xf32>
    %11 = vector.shape_cast %10 : vector<16xf32> to vector<16x1xf32>
    %c0_6 = arith.constant 0 : index
    %c0_7 = arith.constant 0 : index
    %12 = vector.load %arg4[%c0_6, %c0_7] : memref<16x1xf32, #tpu.memory_space<vmem>>, vector<16x1xf32>
    tpu.vector_store %arg4[%c0_6, %c0_7], %11 {strides = array<i32>} : memref<16x1xf32, #tpu.memory_space<vmem>>, vector<16x1xf32>,
    %13 = arith.mulf %9, %9 : vector<16x256xf32>
    %cst_8 = arith.constant dense<0.000000e+00> : vector<16xf32>
    %14 = vector.multi_reduction <add>, %13, %cst_8 [1] : vector<16x256xf32> to vector<16xf32>
    %15 = vector.shape_cast %14 : vector<16xf32> to vector<16x1xf32>
    %c0_9 = arith.constant 0 : index
    %c0_10 = arith.constant 0 : index
    %16 = vector.load %arg5[%c0_9, %c0_10] : memref<16x1xf32, #tpu.memory_space<vmem>>, vector<16x1xf32>
    tpu.vector_store %arg5[%c0_9, %c0_10], %15 {strides = array<i32>} : memref<16x1xf32, #tpu.memory_space<vmem>>, vector<16x1xf32>,
    return
  }
  func.func @transform_0(%arg0: i32) -> (i32, i32) {
    %c0_i32 = arith.constant 0 : i32
    %c0_i32_0 = arith.constant 0 : i32
    return %arg0, %c0_i32 : i32, i32
  }
  func.func @transform_1(%arg0: i32) -> (i32, i32) {
    %c0_i32 = arith.constant 0 : i32
    %c0_i32_0 = arith.constant 0 : i32
    return %arg0, %c0_i32 : i32, i32
  }
  func.func @transform_2(%arg0: i32) -> (i32, i32) {
    %c0_i32 = arith.constant 0 : i32
    %c0_i32_0 = arith.constant 0 : i32
    return %arg0, %c0_i32 : i32, i32
  }
  func.func @transform_3(%arg0: i32) -> (i32, i32) {
    %c0_i32 = arith.constant 0 : i32
    %c0_i32_0 = arith.constant 0 : i32
    return %arg0, %c0_i32 : i32, i32
  }
  func.func @transform_4(%arg0: i32) -> (i32, i32) {
    %c0_i32 = arith.constant 0 : i32
    %c0_i32_0 = arith.constant 0 : i32
    return %arg0, %c0_i32 : i32, i32
  }
}

module attributes {stable_mosaic.version = 11 : i64} {
  func.func @_bn_relu_bn_kernel(%arg0: i32, %arg1: memref<16x256xbf16, #tpu.memory_space<vmem>>, %arg2: memref<16x1xf32, #tpu.memory_space<vmem>>, %arg3: memref<16x1xf32, #tpu.memory_space<vmem>>, %arg4: memref<16x1xf32, #tpu.memory_space<vmem>>, %arg5: memref<16x1xf32, #tpu.memory_space<vmem>>, %arg6: memref<16x256xf32, #tpu.memory_space<vmem>>) attributes {dimension_semantics = [#tpu.dimension_semantics<parallel>], iteration_bounds = array<i64: 1>, scalar_prefetch = 0 : i64, scratch_operands = 0 : i64, tpu.core_type = #tpu.core_type<tc>, window_params = [{transform_indices = @transform_0, window_bounds = array<i64: 16, 256>}, {transform_indices = @transform_1, window_bounds = array<i64: 16, 1>}, {transform_indices = @transform_2, window_bounds = array<i64: 16, 1>}, {transform_indices = @transform_3, window_bounds = array<i64: 16, 1>}, {transform_indices = @transform_4, window_bounds = array<i64: 16, 1>}, {transform_indices = @transform_5, window_bounds = array<i64: 16, 256>}]} {
    %c0 = arith.constant 0 : index
    %c0_0 = arith.constant 0 : index
    %0 = vector.load %arg1[%c0, %c0_0] : memref<16x256xbf16, #tpu.memory_space<vmem>>, vector<16x256xbf16>
    %1 = arith.extf %0 : vector<16x256xbf16> to vector<16x256xf32>
    %c0_1 = arith.constant 0 : index
    %c0_2 = arith.constant 0 : index
    %2 = vector.load %arg2[%c0_1, %c0_2] : memref<16x1xf32, #tpu.memory_space<vmem>>, vector<16x1xf32>
    %3 = vector.broadcast %2 : vector<16x1xf32> to vector<16x256xf32>
    %4 = arith.mulf %1, %3 : vector<16x256xf32>
    %c0_3 = arith.constant 0 : index
    %c0_4 = arith.constant 0 : index
    %5 = vector.load %arg3[%c0_3, %c0_4] : memref<16x1xf32, #tpu.memory_space<vmem>>, vector<16x1xf32>
    %6 = vector.broadcast %5 : vector<16x1xf32> to vector<16x256xf32>
    %7 = arith.addf %4, %6 : vector<16x256xf32>
    %cst = arith.constant 0.000000e+00 : f32
    %8 = vector.broadcast %cst : f32 to vector<16x256xf32>
    %9 = arith.maximumf %7, %8 : vector<16x256xf32>
    %c0_5 = arith.constant 0 : index
    %c0_6 = arith.constant 0 : index
    %10 = vector.load %arg4[%c0_5, %c0_6] : memref<16x1xf32, #tpu.memory_space<vmem>>, vector<16x1xf32>
    %11 = vector.broadcast %10 : vector<16x1xf32> to vector<16x256xf32>
    %12 = arith.mulf %9, %11 : vector<16x256xf32>
    %c0_7 = arith.constant 0 : index
    %c0_8 = arith.constant 0 : index
    %13 = vector.load %arg5[%c0_7, %c0_8] : memref<16x1xf32, #tpu.memory_space<vmem>>, vector<16x1xf32>
    %14 = vector.broadcast %13 : vector<16x1xf32> to vector<16x256xf32>
    %15 = arith.addf %12, %14 : vector<16x256xf32>
    %c0_9 = arith.constant 0 : index
    %c0_10 = arith.constant 0 : index
    %16 = vector.load %arg6[%c0_9, %c0_10] : memref<16x256xf32, #tpu.memory_space<vmem>>, vector<16x256xf32>
    tpu.vector_store %arg6[%c0_9, %c0_10], %15 {strides = array<i32>} : memref<16x256xf32, #tpu.memory_space<vmem>>, vector<16x256xf32>,
    return
  }
  func.func @transform_0(%arg0: i32) -> (i32, i32) {
    %c0_i32 = arith.constant 0 : i32
    %c0_i32_0 = arith.constant 0 : i32
    return %arg0, %c0_i32 : i32, i32
  }
  func.func @transform_1(%arg0: i32) -> (i32, i32) {
    %c0_i32 = arith.constant 0 : i32
    %c0_i32_0 = arith.constant 0 : i32
    return %arg0, %c0_i32 : i32, i32
  }
  func.func @transform_2(%arg0: i32) -> (i32, i32) {
    %c0_i32 = arith.constant 0 : i32
    %c0_i32_0 = arith.constant 0 : i32
    return %arg0, %c0_i32 : i32, i32
  }
  func.func @transform_3(%arg0: i32) -> (i32, i32) {
    %c0_i32 = arith.constant 0 : i32
    %c0_i32_0 = arith.constant 0 : i32
    return %arg0, %c0_i32 : i32, i32
  }
  func.func @transform_4(%arg0: i32) -> (i32, i32) {
    %c0_i32 = arith.constant 0 : i32
    %c0_i32_0 = arith.constant 0 : i32
    return %arg0, %c0_i32 : i32, i32
  }
  func.func @transform_5(%arg0: i32) -> (i32, i32) {
    %c0_i32 = arith.constant 0 : i32
    %c0_i32_0 = arith.constant 0 : i32
    return %arg0, %c0_i32 : i32, i32
  }
}

</mosaic_0001>

<bundles_post_ra>
// kernel: tile.28
= control target key start
LH: loop header
LB: loop body
LE: loop exit
PB: predicated region body
PF: predicated region fallthrough
CT: control target
= control target key end

     0   :  { %s22_s0 = inlined_call_operand.vmem [shape: f32[8], index: 0, kind: input, shape index: {}]   ;;  %s23_s1 = inlined_call_operand.vmem [shape: f32[2,8], index: 1, kind: output, shape index: {}]  }
   0x1   :  { %v4_v0 = vld [vmem:[%s22_s0] ss:$0 sm:$0xff] }
   0x2   :  { %5 = vst [vmem:[%s23_s1] sm:$0x3] %v4_v0 }

// kernel: tile.0
= control target key start
LH: loop header
LB: loop body
LE: loop exit
PB: predicated region body
PF: predicated region fallthrough
CT: control target
= control target key end

     0   :  { %s66_s8 = smov 125   ;;  %s67_s9 = smov 123   ;;  %vm7_vm0 = vcmask 7168   ;;  %s117_s0 = inlined_call_operand.vmem [shape: f32[2,8], index: 0, kind: input, shape index: {}]   ;;  %s118_s1 = inlined_call_operand.vmem [shape: f32[16,1], index: 1, kind: output, shape index: {}]  }
   0x1   :  { %v4_v0 = vld [vmem:[%s117_s0] sm:$0x3]  ;;  %s65_s0 = smov 127   ;;  %s68_s10 = smov 126  }
   0x2   :  { %5 = vst [vmem:[#allocation0] sm:$0x3] %v4_v0  ;;  %s69_s11 = smov 124   ;;  %s70_s12 = smov 122  }
   0x3   :  { %s71_s13 = smov 121  }
   0x9   :  { %v9_v1 = vld [vmem:[#allocation0] sm:$0x3]  }
   0xa   :  { %v21_v2 = vld [vmem:[#allocation0] sm:$0x3]   ;;  %10 = vrot.lane.b32.xlu0 %v9_v1, %s65_s0 }
   0xb   :  { %22 = vrot.lane.b32.xlu1 %v21_v2, %s66_s8  ;;  %v33_v3 = vld [vmem:[#allocation0] sm:$0x3]  }
   0xc   :  { %34 = vrot.lane.b32.xlu2 %v33_v3, %s67_s9  ;;  %v15_v4 = vld [vmem:[#allocation0] sm:$0x3]  }
   0xd   :  { %v27_v5 = vld [vmem:[#allocation0] sm:$0x3]  }
   0xe   :  { %v39_v6 = vld [vmem:[#allocation0] sm:$0x3]  }
   0xf   :  { %v45_v7 = vld [vmem:[#allocation0] sm:$0x3]  }
  0x10   :  { %v6_v8 = vld [vmem:[#allocation0] sm:$0x3]  }
  0x11   :  { %8 = vst.msk [vmem:[%s118_s1] ss:$8 sm:$0x3] %vm7_vm0, %v6_v8  }
  0x12   :  { %16 = vrot.lane.b32.xlu0 %v15_v4, %s68_s10 }
  0x13   :  { %28 = vrot.lane.b32.xlu1 %v27_v5, %s69_s11 }
  0x14   :  { %40 = vrot.lane.b32.xlu2 %v39_v6, %s70_s12 }
  0x1a   :  { %46 = vrot.lane.b32.xlu0 %v45_v7, %s71_s13 }
  0x66   :  { %v35_v9 = vpop.permute.xlu2 %34  }
  0x67   :  { %55 = vst.msk [vmem:[%s118_s1 + $0x5] ss:$8 sm:$0x3] %vm7_vm0, %v35_v9  }
  0x6e   :  { %v41_v10 = vpop.permute.xlu2 %40  }
  0x6f   :  { %56 = vst.msk [vmem:[%s118_s1 + $0x6] ss:$8 sm:$0x3] %vm7_vm0, %v41_v10  }
  0x7c   :  { %v11_v11 = vpop.permute.xlu0 %10  }
  0x7d   :  { %v23_v12 = vpop.permute.xlu1 %22   ;;  %51 = vst.msk [vmem:[%s118_s1 + $0x1] ss:$8 sm:$0x3] %vm7_vm0, %v11_v11  }
  0x7e   :  { %53 = vst.msk [vmem:[%s118_s1 + $0x3] ss:$8 sm:$0x3] %vm7_vm0, %v23_v12  }
  0x84   :  { %v17_v13 = vpop.permute.xlu0 %16  }
  0x85   :  { %v29_v14 = vpop.permute.xlu1 %28   ;;  %52 = vst.msk [vmem:[%s118_s1 + $0x2] ss:$8 sm:$0x3] %vm7_vm0, %v17_v13  }
  0x86   :  { %54 = vst.msk [vmem:[%s118_s1 + $0x4] ss:$8 sm:$0x3] %vm7_vm0, %v29_v14  }
  0x8c   :  { %v47_v15 = vpop.permute.xlu0 %46  }
  0x8d   :  { %57 = vst.msk [vmem:[%s118_s1 + $0x7] ss:$8 sm:$0x3] %vm7_vm0, %v47_v15  }

// kernel: respath_block_forward.4
= control target key start
LH: loop header
LB: loop body
LE: loop exit
PB: predicated region body
PF: predicated region fallthrough
CT: control target
= control target key end

     0   :  { %v90_v0 = vmov 0   ;;  %vm64_vm0 = vcmask 7168   ;;  %s146_s2 = inlined_call_operand.vmem [shape: f32[16,1], index: 2, kind: input, shape index: {}]   ;;  %s147_s1 = inlined_call_operand.vmem [shape: f32[16,1], index: 1, kind: input, shape index: {}]   ;;  %s148_s0 = inlined_call_operand.vmem [shape: bf16[16,256], index: 0, kind: input, shape index: {}]   ;;  %s149_s3 = inlined_call_operand.vmem [shape: f32[16,1], index: 3, kind: output, shape index: {0}]   ;;  %s150_s4 = inlined_call_operand.vmem [shape: f32[16,1], index: 4, kind: output, shape index: {1}]  }
   0x1   :  { %89 = vset.pattern.permute.xlu1 %v90_v0  ;;  %88 = vset.pattern.permute.xlu0 %v90_v0  ;;  %v38_v1 = vld [vmem:[%s146_s2] sm:$0xff]  ;;  %v39_v3 = vld [vmem:[%s146_s2 + $0x8] sm:$0xff] }
   0x2   :  { %v22_v2 = vld [vmem:[%s147_s1] sm:$0xff]  ;;  %42 = vperm.xlu1 %89, %v38_v1   ;;  %v23_v4 = vld [vmem:[%s147_s1 + $0x8] sm:$0xff] }
   0x3   :  { %26 = vperm.xlu0 %88, %v22_v2   ;;  %v16_v5 = vld [vmem:[%s148_s0] sm:$0xff]  ;;  %v17_v12 = vld [vmem:[%s148_s0 + $0x8] sm:$0xff] }
   0x4   :  { %v18_v6 = vunpack.c.l.bf16 %v16_v5  ;;  %v19_v7 = vunpack.c.h.bf16 %v16_v5  ;;  %v20_v15 = vunpack.c.l.bf16 %v17_v12  ;;  %v21_v16 = vunpack.c.h.bf16 %v17_v12 }
   0xa   :  { %47 = vperm.xlu1 %89, %v39_v3  }
   0xb   :  { %31 = vperm.xlu0 %88, %v23_v4  }
  0x74   :  { %v43_v8 = vpop.permute.xlu1 %42 }
  0x75   :  { %v27_v9 = vpop.permute.xlu0 %26 }
  0x76   :  { %v34_v10 = vmul.f32 %v27_v9, %v18_v6  ;;  %v35_v11 = vmul.f32 %v27_v9, %v19_v7 }
  0x78   :  { %v50_v13 = vadd.f32 %v43_v8, %v34_v10  ;;  %v51_v14 = vadd.f32 %v43_v8, %v35_v11 }
  0x7a   :  { %v54_v17 = vmax.f32 %v50_v13, 0.0  ;;  %v55_v18 = vmax.f32 %v51_v14, 0.0 }
  0x7c   :  { %v58_v19 = vadd.f32 %v55_v18, %v54_v17  ;;  %v67_v20 = vmul.f32 %v54_v17, %v54_v17  ;;  %v68_v21 = vmul.f32 %v55_v18, %v55_v18  ;;  %v48_v26 = vpop.permute.xlu1 %47 }
  0x7d   :  { %v32_v22 = vpop.permute.xlu0 %31 }
  0x7e   :  { %v36_v23 = vmul.f32 %v32_v22, %v20_v15  ;;  %v37_v24 = vmul.f32 %v32_v22, %v21_v16  ;;  %59 = vadd.xlane.f32.xlu2 %v58_v19  ;;  %v71_v25 = vadd.f32 %v68_v21, %v67_v20 }
  0x80   :  { %v52_v27 = vadd.f32 %v48_v26, %v36_v23  ;;  %v53_v28 = vadd.f32 %v48_v26, %v37_v24  ;;  %72 = vadd.xlane.f32.xlu0 %v71_v25 }
  0x82   :  { %v56_v29 = vmax.f32 %v52_v27, 0.0  ;;  %v57_v30 = vmax.f32 %v53_v28, 0.0 }
  0x84   :  { %v61_v31 = vadd.f32 %v57_v30, %v56_v29  ;;  %v69_v32 = vmul.f32 %v56_v29, %v56_v29  ;;  %v70_v33 = vmul.f32 %v57_v30, %v57_v30 }
  0x86   :  { %62 = vadd.xlane.f32.xlu2 %v61_v31  ;;  %v74_v34 = vadd.f32 %v70_v33, %v69_v32 }
  0x88   :  { %75 = vadd.xlane.f32.xlu1 %v74_v34 }
  0xf1   :  { %v60_v35 = vpop.xlane.xlu2 %59 }
  0xf2   :  { %65 = vst.msk [vmem:[%s149_s3] sm:$0xff] %vm64_vm0, %v60_v35 }
  0xf3   :  { %v73_v36 = vpop.xlane.xlu0 %72 }
  0xf4   :  { %77 = vst.msk [vmem:[%s150_s4] sm:$0xff] %vm64_vm0, %v73_v36 }
  0xf9   :  { %v63_v37 = vpop.xlane.xlu2 %62 }
  0xfa   :  { %66 = vst.msk [vmem:[%s149_s3 + $0x8] sm:$0xff] %vm64_vm0, %v63_v37 }
  0xfb   :  { %v76_v38 = vpop.xlane.xlu1 %75 }
  0xfc   :  { %78 = vst.msk [vmem:[%s150_s4 + $0x8] sm:$0xff] %vm64_vm0, %v76_v38 }

// kernel: respath_block_forward.5
= control target key start
LH: loop header
LB: loop body
LE: loop exit
PB: predicated region body
PF: predicated region fallthrough
CT: control target
= control target key end

     0   :  { %v106_v0 = vmov 0   ;;  %s179_s2 = inlined_call_operand.vmem [shape: f32[16,1], index: 2, kind: input, shape index: {}]   ;;  %s180_s1 = inlined_call_operand.vmem [shape: f32[16,1], index: 1, kind: input, shape index: {}]   ;;  %s181_s3 = inlined_call_operand.vmem [shape: f32[16,1], index: 3, kind: input, shape index: {}]   ;;  %s182_s4 = inlined_call_operand.vmem [shape: f32[16,1], index: 4, kind: input, shape index: {}]   ;;  %s183_s0 = inlined_call_operand.vmem [shape: bf16[16,256], index: 0, kind: input, shape index: {}]   ;;  %s184_s5 = inlined_call_operand.vmem [shape: f32[16,256], index: 5, kind: output, shape index: {}]  }
   0x1   :  { %104 = vset.pattern.permute.xlu1 %v106_v0  ;;  %103 = vset.pattern.permute.xlu0 %v106_v0  ;;  %v42_v1 = vld [vmem:[%s179_s2] sm:$0xff]  ;;  %v43_v4 = vld [vmem:[%s179_s2 + $0x8] sm:$0xff] }
   0x2   :  { %v26_v2 = vld [vmem:[%s180_s1] sm:$0xff]  ;;  %46 = vperm.xlu1 %104, %v42_v1   ;;  %105 = vset.pattern.permute.xlu2 %v106_v0  ;;  %v27_v5 = vld [vmem:[%s180_s1 + $0x8] sm:$0xff] }
   0x3   :  { %30 = vperm.xlu0 %103, %v26_v2   ;;  %v62_v3 = vld [vmem:[%s181_s3] sm:$0xff]  ;;  %v63_v6 = vld [vmem:[%s181_s3 + $0x8] sm:$0xff] }
   0x4   :  { %66 = vperm.xlu2 %105, %v62_v3   ;;  %v79_v7 = vld [vmem:[%s182_s4 + $0x8] sm:$0xff]  ;;  %v78_v8 = vld [vmem:[%s182_s4] sm:$0xff] }
   0x5   :  { %v20_v9 = vld [vmem:[%s183_s0] sm:$0xff]  ;;  %v21_v14 = vld [vmem:[%s183_s0 + $0x8] sm:$0xff] }
   0x6   :  { %v22_v10 = vunpack.c.l.bf16 %v20_v9  ;;  %v23_v13 = vunpack.c.h.bf16 %v20_v9  ;;  %v24_v18 = vunpack.c.l.bf16 %v21_v14  ;;  %v25_v19 = vunpack.c.h.bf16 %v21_v14 }
   0xa   :  { %51 = vperm.xlu1 %104, %v43_v4  }
   0xb   :  { %35 = vperm.xlu0 %103, %v27_v5  }
   0xc   :  { %71 = vperm.xlu2 %105, %v63_v6  }
  0x12   :  { %87 = vperm.xlu1 %104, %v79_v7  }
  0x13   :  { %82 = vperm.xlu0 %103, %v78_v8  }
  0x5e   :  { %v67_v16 = vpop.permute.xlu2 %66 }
  0x66   :  { %v72_v32 = vpop.permute.xlu2 %71 }
  0x74   :  { %v47_v11 = vpop.permute.xlu1 %46 }
  0x75   :  { %v31_v12 = vpop.permute.xlu0 %30 }
  0x76   :  { %v38_v15 = vmul.f32 %v31_v12, %v22_v10  ;;  %v39_v17 = vmul.f32 %v31_v12, %v23_v13 }
  0x78   :  { %v54_v20 = vadd.f32 %v47_v11, %v38_v15  ;;  %v55_v21 = vadd.f32 %v47_v11, %v39_v17 }
  0x7a   :  { %v58_v26 = vmax.f32 %v54_v20, 0.0  ;;  %v59_v29 = vmax.f32 %v55_v21, 0.0 }
  0x7c   :  { %v52_v22 = vpop.permute.xlu1 %51  ;;  %v74_v35 = vmul.f32 %v67_v16, %v58_v26  ;;  %v75_v38 = vmul.f32 %v67_v16, %v59_v29 }
  0x7d   :  { %v36_v23 = vpop.permute.xlu0 %35 }
  0x7e   :  { %v40_v24 = vmul.f32 %v36_v23, %v24_v18  ;;  %v41_v25 = vmul.f32 %v36_v23, %v25_v19 }
  0x80   :  { %v56_v27 = vadd.f32 %v52_v22, %v40_v24  ;;  %v57_v28 = vadd.f32 %v52_v22, %v41_v25 }
  0x82   :  { %v60_v30 = vmax.f32 %v56_v27, 0.0  ;;  %v61_v31 = vmax.f32 %v57_v28, 0.0 }
  0x84   :  { %v76_v33 = vmul.f32 %v72_v32, %v60_v30  ;;  %v77_v34 = vmul.f32 %v72_v32, %v61_v31  ;;  %v88_v36 = vpop.permute.xlu1 %87 }
  0x85   :  { %v83_v37 = vpop.permute.xlu0 %82 }
  0x86   :  { %v92_v39 = vadd.f32 %v88_v36, %v76_v33  ;;  %v93_v40 = vadd.f32 %v88_v36, %v77_v34  ;;  %v90_v41 = vadd.f32 %v83_v37, %v74_v35  ;;  %v91_v42 = vadd.f32 %v83_v37, %v75_v38 }
  0x88   :  { %96 = vst [vmem:[%s184_s5 + $0x10] sm:$0xff] %v92_v39 }
  0x89   :  { %97 = vst [vmem:[%s184_s5 + $0x18] sm:$0xff] %v93_v40 }
  0x8a   :  { %94 = vst [vmem:[%s184_s5] sm:$0xff] %v90_v41 }
  0x8b   :  { %95 = vst [vmem:[%s184_s5 + $0x8] sm:$0xff] %v91_v42 }

// kernel: respath_block_forward.3
= control target key start
LH: loop header
LB: loop body
LE: loop exit
PB: predicated region body
PF: predicated region fallthrough
CT: control target
= control target key end

     0   :  { %s6287_s24 = smov 0   ;;  %s6289_s25 = smov 0   ;;  %s8179_s0 = inlined_call_operand.vmem [shape: f32[2,16,16,4], index: 0, kind: input, shape index: {}, may-alias: {0,1,2}]   ;;  %s8180_s1 = inlined_call_operand.vmem [shape: f32[2,16,16,4], index: 1, kind: input, shape index: {}, may-alias: {0,1,2}]   ;;  %s8181_s2 = inlined_call_operand.vmem [shape: f32[2,16,16,4], index: 2, kind: input, shape index: {}, may-alias: {0,1,2}]   ;;  %s8182_s3 = inlined_call_operand.vmem [shape: bf16[9,4,128], index: 3, kind: input, shape index: {}]   ;;  %s8183_s4 = inlined_call_operand.vmem [shape: f32[1,128], index: 4, kind: input, shape index: {}]   ;;  %s8184_s5 = inlined_call_operand.vmem [shape: bf16[2,8,256], index: 5, kind: output, shape index: {0}]   ;;  %s8185_s6 = inlined_call_operand.vmem [shape: f32[2,1,8], index: 6, kind: output, shape index: {1}]   ;;  %s8186_s7 = inlined_call_operand.vmem [shape: f32[2,1,8], index: 7, kind: output, shape index: {2}]  }
   0x1   :  { %s6291_s26 = smov 0  }
   0x2 LB: > { %s30_s27 = sadd.s32 1, %s6240_s25  ;;  %p5698_p0 = scmp.ge.s32.totalorder %s6244_s26, 1  ;;  %s6244_s26 = sphi %s6291_s26, %s18_s26   ;;  %s6240_s25 = sphi %s6289_s25, %s8254_s25   ;;  %s6236_s24 = sphi %s6287_s24, %s8253_s24  }
   0x3   : > { %p32_p1 = scmp.ge.s32.totalorder %s30_s27, 2  ;;  %p332_p2 = scmp.lt.s32.totalorder %s6244_s26, 3 }
   0x5   : > { %s8256_s27 = smov (%p32_p1, %s30_s27), 0  ;;  %p333_p3 = pnand %p5698_p0, %p332_p2 }
   0x7   : > { %336 = sbr.rel (%p333_p3) target bundleno = 791 (0x317), region = 40 }
   0xc   : > { %v5723_v0 = vld [vmem:[%s8182_s3 + $0x2] sm:$0x3]  ;;  %vm1167_vm0 = vcmask 1041408   ;;  %p408_p4 = scmp.lt.s32.totalorder %s6236_s24, 1  ;;  %v5820_v2 = vld [vmem:[%s8182_s3 + $0x4] sm:$0x3] }
   0xd   : > { %v1169_v1 = vsel %vm1167_vm0, %v5723_v0, 0  ;;  %v5853_v3 = vld [vmem:[%s8182_s3 + $0x6] sm:$0x3]  ;;  %v1982_v4 = vsel %vm1167_vm0, %v5820_v2, 0  ;;  %v1035_v6 = vld [vmem:[%s8182_s3] sm:$0x3] }
   0xe   : > { %6155 = vmatpush.bf16.msra.mxu1 %v1169_v1  ;;  %6156 = vmatpush.bf16.msra.mxu2 %v1169_v1  ;;  %s8258_s24 = smov (!%p408_p4, %s6236_s24), 1  ;;  %v2604_v5 = vsel %vm1167_vm0, %v5853_v3, 0  ;;  %v1357_v7 = vsel %vm1167_vm0, %v1035_v6, 0  ;;  %v5870_v8 = vld [vmem:[%s8182_s3 + $0x8] sm:$0x3]  ;;  %vm473_vm1 = vcmask 27648  }
   0xf   : > { %6157 = vmatpush.bf16.msra.mxu3 %v1169_v1  ;;  %1178 = vmatpush.bf16.msra.mxu0 %v1169_v1  ;;  %s6327_s15 = sshll.u32 %s8258_s24, 8  ;;  %v2858_v9 = vsel %vm1167_vm0, %v5870_v8, 0  ;;  %vm1118_vm2 = vcmask 31744   ;;  %vm680_vm3 = vsmask.f32 256  ;;  %vm5266_vm9 = vcmask 64512   ;;  %s470_s28 = scalar_lea.vmem %s8186_s7, %s8258_s24 }
  0x10   : > { %s6334_s18 = scalar_lea.vmem %s8179_s0, %s6327_s15  ;;  %s430_s21 = scalar_lea.vmem %s8180_s1, %s6327_s15  ;;  %vm681_vm4 = vsmask.f32 4368  ;;  %vm1496_vm5 = vsmask.f32 3328  ;;  %vm1497_vm6 = vsmask.f32 7440 }
  0x11   : > { %v541_v10 = vld [vmem:[%s6334_s18 + $0x30] sm:$0xff]  ;;  %v542_v11 = vld [vmem:[%s6334_s18 + $0x38] sm:$0xff]  ;;  %v510_v20 = vld [vmem:[%s430_s21] sm:$0xff]  ;;  %s6104_s13 = sadd.s32 240, %s6327_s15  ;;  %vm5336_vm10 = vcmask 57344   ;;  %s6105_s29 = sshll.u32 %s8258_s24, 3 }
  0x12   : > { %1991 = vmatpush.bf16.msrb.mxu2 %v1982_v4  ;;  %1366 = vmatpush.bf16.msrb.mxu1 %v1357_v7  ;;  %v549_v12 = vld [vmem:[%s6334_s18 + $0x70] sm:$0xff]  ;;  %v573_v13 = vpack.c.bf16 %v541_v10, %v541_v10  ;;  %v574_v14 = vpack.c.bf16 %v542_v11, %v542_v11  ;;  %v550_v15 = vld [vmem:[%s6334_s18 + $0x78] sm:$0xff]  ;;  %v511_v21 = vld [vmem:[%s430_s21 + $0x8] sm:$0xff]  ;;  %v516_v23 = vmul.f32 0.0, %v510_v20  ;;  %v6246_v20 = vmov 0   ;;  %s447_s16 = scalar_lea.vmem %s8181_s2, %s6104_s13  ;;  %s465_s21 = scalar_lea.vmem %s8185_s6, %s8258_s24 }
  0x13   : > { %2613 = vmatpush.bf16.msrb.mxu3 %v2604_v5  ;;  %2867 = vmatpush.bf16.msrb.mxu0 %v2858_v9  ;;  %v581_v16 = vpack.c.bf16 %v549_v12, %v549_v12  ;;  %v557_v17 = vld [vmem:[%s6334_s18 + $0xb0] sm:$0xff]  ;;  %v558_v18 = vld [vmem:[%s6334_s18 + $0xb8] sm:$0xff]  ;;  %v582_v19 = vpack.c.bf16 %v550_v15, %v550_v15  ;;  %v517_v24 = vmul.f32 0.0, %v511_v21  ;;  %v543_v26 = vld [vmem:[%s6334_s18 + $0x40] sm:$0xff]  ;;  %474 = vst.msk [vmem:[#allocation2] sm:$0xf] %vm473_vm1, %v6246_v20  ;;  %s460_s9 = scalar_lea.vmem %s8184_s5, %s6105_s29 }
  0x14   : > { %606 = vst.msk [vmem:[#allocation2 + $0x44] sm:$0xf] %vm473_vm1, %v573_v13  ;;  %v589_v22 = vpack.c.bf16 %v557_v17, %v557_v17  ;;  %v590_v25 = vpack.c.bf16 %v558_v18, %v558_v18  ;;  %v526_v27 = vpack.c.bf16 %v516_v23, %v516_v23  ;;  %v544_v28 = vld [vmem:[%s6334_s18 + $0x48] sm:$0xff]  ;;  %v551_v30 = vld [vmem:[%s6334_s18 + $0x80] sm:$0xff]  ;;  %v575_v31 = vpack.c.bf16 %v543_v26, %v543_v26  ;;  %v545_v43 = vld [vmem:[%s6334_s18 + $0x50] sm:$0xff] }
  0x15   : > { %607 = vst.msk [vmem:[#allocation2 + $0x48] sm:$0xf] %vm473_vm1, %v574_v14  ;;  %v527_v29 = vpack.c.bf16 %v517_v24, %v517_v24  ;;  %v552_v32 = vld [vmem:[%s6334_s18 + $0x88] sm:$0xff]  ;;  %v576_v33 = vpack.c.bf16 %v544_v28, %v544_v28  ;;  %v559_v34 = vld [vmem:[%s6334_s18 + $0xc0] sm:$0xff]  ;;  %v583_v35 = vpack.c.bf16 %v551_v30, %v551_v30  ;;  %v546_v46 = vld [vmem:[%s6334_s18 + $0x58] sm:$0xff]  ;;  %v577_v50 = vpack.c.bf16 %v545_v43, %v545_v43 }
  0x16   : > { %614 = vst.msk [vmem:[#allocation2 + $0x84] sm:$0xf] %vm473_vm1, %v581_v16  ;;  %v560_v36 = vld [vmem:[%s6334_s18 + $0xc8] sm:$0xff]  ;;  %v584_v37 = vpack.c.bf16 %v552_v32, %v552_v32  ;;  %v535_v38 = vld [vmem:[%s6334_s18] sm:$0xff]  ;;  %v591_v40 = vpack.c.bf16 %v559_v34, %v559_v34  ;;  %v553_v48 = vld [vmem:[%s6334_s18 + $0x90] sm:$0xff]  ;;  %v578_v52 = vpack.c.bf16 %v546_v46, %v546_v46 }
  0x17   : > { %615 = vst.msk [vmem:[#allocation2 + $0x88] sm:$0xf] %vm473_vm1, %v582_v19  ;;  %v536_v41 = vld [vmem:[%s6334_s18 + $0x8] sm:$0xff]  ;;  %v592_v42 = vpack.c.bf16 %v560_v36, %v560_v36  ;;  %v567_v45 = vpack.c.bf16 %v535_v38, %v535_v38  ;;  %v554_v51 = vld [vmem:[%s6334_s18 + $0x98] sm:$0xff]  ;;  %v561_v53 = vld [vmem:[%s6334_s18 + $0xd0] sm:$0xff]  ;;  %v585_v55 = vpack.c.bf16 %v553_v48, %v553_v48 }
  0x18   : > { %622 = vst.msk [vmem:[#allocation2 + $0xc4] sm:$0xf] %vm473_vm1, %v589_v22  ;;  %v568_v47 = vpack.c.bf16 %v536_v41, %v536_v41  ;;  %v562_v56 = vld [vmem:[%s6334_s18 + $0xd8] sm:$0xff]  ;;  %v586_v57 = vpack.c.bf16 %v554_v51, %v554_v51  ;;  %v537_v58 = vld [vmem:[%s6334_s18 + $0x10] sm:$0xff]  ;;  %v593_v59 = vpack.c.bf16 %v561_v53, %v561_v53  ;;  %v547_v62 = vld [vmem:[%s6334_s18 + $0x60] sm:$0xff] }
  0x19   : > { %623 = vst.msk [vmem:[#allocation2 + $0xc8] sm:$0xf] %vm473_vm1, %v590_v25  ;;  %v538_v60 = vld [vmem:[%s6334_s18 + $0x18] sm:$0xff]  ;;  %v594_v61 = vpack.c.bf16 %v562_v56, %v562_v56  ;;  %v569_v63 = vpack.c.bf16 %v537_v58, %v537_v58  ;;  %v548_v0 = vld [vmem:[%s6334_s18 + $0x68] sm:$0xff]  ;;  %v555_v2 = vld [vmem:[%s6334_s18 + $0xa0] sm:$0xff]  ;;  %v579_v3 = vpack.c.bf16 %v547_v62, %v547_v62 }
  0x1a   : > { %528 = vst.msk [vmem:[#allocation2 + $0x4] sm:$0xf] %vm473_vm1, %v526_v27  ;;  %v570_v1 = vpack.c.bf16 %v538_v60, %v538_v60  ;;  %v556_v4 = vld [vmem:[%s6334_s18 + $0xa8] sm:$0xff]  ;;  %v580_v5 = vpack.c.bf16 %v548_v0, %v548_v0  ;;  %v563_v6 = vld [vmem:[%s6334_s18 + $0xe0] sm:$0xff]  ;;  %v587_v8 = vpack.c.bf16 %v555_v2, %v555_v2  ;;  %v6082_v46 = vld [vmem:[%s8182_s3 + $0x10] sm:$0x3] }
  0x1b   : > { %529 = vst.msk [vmem:[#allocation2 + $0x8] sm:$0xf] %vm473_vm1, %v527_v29  ;;  %v564_v9 = vld [vmem:[%s6334_s18 + $0xe8] sm:$0xff]  ;;  %v588_v10 = vpack.c.bf16 %v556_v4, %v556_v4  ;;  %v539_v11 = vld [vmem:[%s6334_s18 + $0x20] sm:$0xff]  ;;  %v595_v13 = vpack.c.bf16 %v563_v6, %v563_v6  ;;  %vm6499_vm7 = vmor %vm680_vm3, %vm681_vm4 }
  0x1c   : > { %v6110_v39 = vld [vmem:[#allocation2 + $0x44] sm:$0xff]  ;;  %608 = vst.msk [vmem:[#allocation2 + $0x54] sm:$0xf] %vm473_vm1, %v575_v31  ;;  %v596_v15 = vpack.c.bf16 %v564_v9, %v564_v9  ;;  %v571_v17 = vpack.c.bf16 %v539_v11, %v539_v11  ;;  %v5984_v38 = vld [vmem:[%s8182_s3 + $0xc] sm:$0x3]  ;;  %vm6517_vm8 = vmor %vm1496_vm5, %vm1497_vm6 }
  0x1d   : > { %609 = vst.msk [vmem:[#allocation2 + $0x58] sm:$0xf] %vm473_vm1, %v576_v33  ;;  %5792 = vmatmul.msk.bf16.vlgmr.msra.gmra.mxu1 %vm1118_vm2, %v6110_v39  ;;  %v540_v14 = vld [vmem:[%s6334_s18 + $0x28] sm:$0xff]  ;;  %v4135_v41 = vsel %vm1167_vm0, %v5984_v38, 0 }
  0x1e   : > { %v6114_v44 = vld [vmem:[#allocation2 + $0x84] sm:$0xff]  ;;  %616 = vst.msk [vmem:[#allocation2 + $0x94] sm:$0xf] %vm473_vm1, %v583_v35  ;;  %v572_v18 = vpack.c.bf16 %v540_v14, %v540_v14 }
  0x1f   : > { %617 = vst.msk [vmem:[#allocation2 + $0x98] sm:$0xf] %vm473_vm1, %v584_v37  ;;  %5796 = vmatmul.msk.bf16.vlgmr.msra.gmra.mxu2 %vm1118_vm2, %v6114_v44  ;;  %v5951_v43 = vld [vmem:[%s8182_s3 + $0xa] sm:$0x3] }
  0x20   : > { %v6118_v49 = vld [vmem:[#allocation2 + $0xc4] sm:$0xff]  ;;  %624 = vst.msk [vmem:[#allocation2 + $0xd4] sm:$0xf] %vm473_vm1, %v591_v40  ;;  %4144 = vmatpush.bf16.msra.mxu2 %v4135_v41 }
  0x21   : > { %625 = vst.msk [vmem:[#allocation2 + $0xd8] sm:$0xf] %vm473_vm1, %v592_v42  ;;  %5800 = vmatmul.msk.bf16.vlgmr.msra.gmra.mxu3 %vm1118_vm2, %v6118_v49  ;;  %v6418_v22 = vld [vmem:[#allocation2 + $0x4] sm:$0xf]  ;;  %v6001_v42 = vld [vmem:[%s8182_s3 + $0xe] sm:$0x3] }
  0x22   : > { %v6106_v54 = vld [vmem:[#allocation2 + $0x4] sm:$0xff]  ;;  %600 = vst.msk [vmem:[#allocation2 + $0x14] sm:$0xf] %vm473_vm1, %v567_v45  ;;  %v689_v27 = vshrl.u32 %v6418_v22, 16  ;;  %v4389_v44 = vsel %vm1167_vm0, %v6001_v42, 0  ;;  %v3512_v45 = vsel %vm1167_vm0, %v5951_v43, 0 }
  0x23   : > { %601 = vst.msk [vmem:[#allocation2 + $0x18] sm:$0xf] %vm473_vm1, %v568_v47  ;;  %5788 = vmatmul.msk.bf16.vlgmr.msra.gmra.mxu0 %vm1118_vm2, %v6106_v54  ;;  %v1448_v23 = vld [vmem:[#allocation2 + $0x4] sm:$0xf]  ;;  %v1449_v25 = vld [vmem:[#allocation2 + $0x8] sm:$0xf]  ;;  %4398 = vmatpush.bf16.msra.mxu3 %v4389_v44 }
  0x24   : > { %610 = vst.msk [vmem:[#allocation2 + $0x64] sm:$0xf] %vm473_vm1, %v577_v50  ;;  %v6111_v7 = vld [vmem:[#allocation2 + $0x54] sm:$0xff]  ;;  %v6430_v28 = vld [vmem:[#allocation2 + $0x8] sm:$0xf]  ;;  %v1500_v29 = vshrl.u32 %v1448_v23, 16  ;;  %3521 = vmatpush.bf16.msra.mxu1 %v3512_v45 }
  0x25   : > { %611 = vst.msk [vmem:[#allocation2 + $0x68] sm:$0xf] %vm473_vm1, %v578_v52  ;;  %v1503_v30 = vshll.u32 %v1448_v23, 16  ;;  %v1509_v31 = vshll.u32 %v1449_v25, 16  ;;  %v6439_v33 = vrot.slane %v689_v27, 7  ;;  %v698_v34 = vshrl.u32 %v6430_v28, 16 }
  0x26   : > { %618 = vst.msk [vmem:[#allocation2 + $0xa4] sm:$0xf] %vm473_vm1, %v585_v55  ;;  %v6115_v12 = vld [vmem:[#allocation2 + $0x94] sm:$0xff]  ;;  %v1513_v35 = vshrl.u32 %v1449_v25, 16  ;;  %v1502_v36 = vrot.slane %v1500_v29, 4  ;;  %v5043_v49 = vsel %vm1167_vm0, %v6082_v46, 0 }
  0x27   : > { %619 = vst.msk [vmem:[#allocation2 + $0xa8] sm:$0xf] %vm473_vm1, %v586_v57  ;;  %v1505_v37 = vrot.slane %v1503_v30, 5  ;;  %v6452_v39 = vrot.slane %v1509_v31, 5  ;;  %v632_v50 = vld [vmem:[#allocation2] sm:$0x8]  ;;  %5052 = vmatpush.bf16.msra.mxu0 %v5043_v49 }
  0x28   : > { %626 = vst.msk [vmem:[#allocation2 + $0xe4] sm:$0xf] %vm473_vm1, %v593_v59  ;;  %v6119_v16 = vld [vmem:[#allocation2 + $0xd4] sm:$0xff]  ;;  %v1515_v47 = vrot.slane %v1513_v35, 4  ;;  %v700_v53 = vrot.slane %v698_v34, 7  ;;  %v701_v54 = vshll.u32 %v6430_v28, 16 }
  0x29   : > { %627 = vst.msk [vmem:[#allocation2 + $0xe8] sm:$0xf] %vm473_vm1, %v594_v61  ;;  %v6454_v40 = vld [vmem:[#allocation2 + $0x14] sm:$0xf]  ;;  %v684_v57 = vshrl.u32 %v632_v50, 16  ;;  %v1506_v58 = vor.u32 %v1505_v37, %v1502_v36  ;;  %v692_v62 = vshll.u32 %v6418_v22, 16 }
  0x2a   : > { %602 = vst.msk [vmem:[#allocation2 + $0x24] sm:$0xf] %vm473_vm1, %v569_v63  ;;  %v6107_v19 = vld [vmem:[#allocation2 + $0x14] sm:$0xff]  ;;  %v2159_v52 = vshrl.u32 %v6454_v40, 16  ;;  %v1516_v59 = vor.u32 %v1515_v47, %v6452_v39  ;;  %v696_v63 = vrot.slane %v6439_v33, 4  ;;  %v2162_v2 = vshll.u32 %v6454_v40, 16 }
  0x2b   : > { %603 = vst.msk [vmem:[#allocation2 + $0x28] sm:$0xf] %vm473_vm1, %v570_v1  ;;  %v2107_v48 = vld [vmem:[#allocation2 + $0x18] sm:$0xf]  ;;  %v1507_v9 = vrot.slane %v1506_v58, 4 }
  0x2c   : > { %612 = vst.msk [vmem:[#allocation2 + $0x74] sm:$0xf] %vm473_vm1, %v579_v3  ;;  %v6112_v21 = vld [vmem:[#allocation2 + $0x64] sm:$0xff]  ;;  %v2168_v55 = vshrl.u32 %v2107_v48, 16  ;;  %v2161_v1 = vrot.slane %v2159_v52, 7  ;;  %v703_v3 = vor.u32 %v701_v54, %v700_v53 }
  0x2d   : > { %613 = vst.msk [vmem:[#allocation2 + $0x78] sm:$0xf] %vm473_vm1, %v580_v5  ;;  %5793 = vmatmul.msk.bf16.gmra.mxu1 %vm1118_vm2, %v6111_v7  ;;  %v2171_v5 = vshll.u32 %v2107_v48, 16  ;;  %v1451_v14 = vld [vmem:[#allocation2 + $0x14] sm:$0xf] }
  0x2e   : > { %620 = vst.msk [vmem:[#allocation2 + $0xb4] sm:$0xf] %vm473_vm1, %v587_v8  ;;  %v6116_v24 = vld [vmem:[#allocation2 + $0xa4] sm:$0xff]  ;;  %v2170_v4 = vrot.slane %v2168_v55, 7  ;;  %v5707_v8 = vrot.slane %v684_v57, 11  ;;  %v1527_v27 = vshll.u32 %v1451_v14, 16 }
  0x2f   : > { %621 = vst.msk [vmem:[#allocation2 + $0xb8] sm:$0xf] %vm473_vm1, %v588_v10  ;;  %5797 = vmatmul.msk.bf16.gmra.mxu2 %vm1118_vm2, %v6115_v12  ;;  %v1517_v10 = vrot.slane %v1516_v59, 4  ;;  %v694_v12 = vor.u32 %v692_v62, %v6439_v33  ;;  %v636_v23 = vld [vmem:[#allocation2 + $0x14] sm:$0xf]  ;;  %v1512_v33 = vsel %vm6517_vm8, %v1507_v9, %v6452_v39 }
  0x30   : > { %628 = vst.msk [vmem:[#allocation2 + $0xf4] sm:$0xf] %vm473_vm1, %v595_v13  ;;  %v6120_v26 = vld [vmem:[#allocation2 + $0xe4] sm:$0xff]  ;;  %v2173_v22 = vor.u32 %v2171_v5, %v2170_v4  ;;  %v711_v37 = vshrl.u32 %v636_v23, 16  ;;  %v1529_v42 = vrot.slane %v1527_v27, 5  ;;  %v1885_v46 = vunpack.c.l.b16 %v1512_v33 }
  0x31   : > { %629 = vst.msk [vmem:[#allocation2 + $0xf8] sm:$0xf] %vm473_vm1, %v596_v15  ;;  %5801 = vmatmul.msk.bf16.gmra.mxu3 %vm1118_vm2, %v6119_v16  ;;  %v2164_v16 = vor.u32 %v2162_v2, %v2161_v1  ;;  %v695_v28 = vsel %vm6499_vm7, %v5707_v8, %v694_v12  ;;  %v2109_v45 = vld [vmem:[#allocation2 + $0x24] sm:$0xf]  ;;  %v714_v53 = vshll.u32 %v636_v23, 16 }
  0x32   : > { %604 = vst.msk [vmem:[#allocation2 + $0x34] sm:$0xf] %vm473_vm1, %v571_v17  ;;  %v6108_v32 = vld [vmem:[#allocation2 + $0x24] sm:$0xff]  ;;  %v2166_v17 = vrot.slane %v2161_v1, 4  ;;  %v1260_v40 = vunpack.c.l.b16 %v695_v28  ;;  %v713_v52 = vrot.slane %v711_v37, 7  ;;  %v2181_v58 = vshrl.u32 %v2109_v45, 16 }
  0x33   : > { %605 = vst.msk [vmem:[#allocation2 + $0x38] sm:$0xf] %vm473_vm1, %v572_v18  ;;  %5789 = vmatmul.msk.bf16.gmra.mxu0 %vm1118_vm2, %v6107_v19  ;;  %v1452_v18 = vld [vmem:[#allocation2 + $0x18] sm:$0xf]  ;;  %v704_v19 = vsel %vm6499_vm7, %v696_v63, %v703_v3  ;;  %v2184_v8 = vshll.u32 %v2109_v45, 16 }
  0x34   : > { %475 = vst.msk [vmem:[#allocation2 + $0x10] sm:$0xf] %vm473_vm1, %v6246_v20  ;;  %v6113_v56 = vld [vmem:[#allocation2 + $0x74] sm:$0xff]  ;;  %v1533_v30 = vshll.u32 %v1452_v18, 16  ;;  %v1537_v31 = vshrl.u32 %v1452_v18, 16  ;;  %v2174_v36 = vsel %vm6499_vm7, %v2166_v17, %v2173_v22  ;;  %v716_v2 = vor.u32 %v714_v53, %v713_v52 }
  0x35   : > { %476 = vst.msk [vmem:[#allocation2 + $0x20] sm:$0xf] %vm473_vm1, %v6246_v20  ;;  %v2508_v49 = vunpack.c.l.b16 %v2174_v36  ;;  %v718_v3 = vrot.slane %v713_v52, 4  ;;  %v1454_v18 = vld [vmem:[#allocation2 + $0x24] sm:$0xf] }
  0x36   : > { %477 = vst.msk [vmem:[#allocation2 + $0x30] sm:$0xf] %vm473_vm1, %v6246_v20  ;;  %v6117_v61 = vld [vmem:[#allocation2 + $0xb4] sm:$0xff]  ;;  %v1535_v43 = vrot.slane %v1533_v30, 5  ;;  %v1539_v44 = vrot.slane %v1537_v31, 4  ;;  %v1548_v31 = vshrl.u32 %v1454_v18, 16 }
  0x37   : > { %478 = vst.msk [vmem:[#allocation2 + $0x40] sm:$0xf] %vm473_vm1, %v6246_v20 }
  0x38   : > { %479 = vst.msk [vmem:[#allocation2 + $0x50] sm:$0xf] %vm473_vm1, %v6246_v20  ;;  %v6121_v0 = vld [vmem:[#allocation2 + $0xf4] sm:$0xff]  ;;  %v1540_v59 = vor.u32 %v1539_v44, %v1535_v43 }
  0x39   : > { %480 = vst.msk [vmem:[#allocation2 + $0x60] sm:$0xf] %vm473_vm1, %v6246_v20 }
  0x3a   : > { %481 = vst.msk [vmem:[#allocation2 + $0x70] sm:$0xf] %vm473_vm1, %v6246_v20  ;;  %v6109_v6 = vld [vmem:[#allocation2 + $0x34] sm:$0xff]  ;;  %v1541_v9 = vrot.slane %v1540_v59, 4 }
  0x3b   : > { %482 = vst.msk [vmem:[#allocation2 + $0x80] sm:$0xf] %vm473_vm1, %v6246_v20  ;;  %v2105_v51 = vld [vmem:[#allocation2 + $0x10] sm:$0x8] }
  0x3c   : > { %483 = vst.msk [vmem:[#allocation2 + $0x90] sm:$0xf] %vm473_vm1, %v6246_v20  ;;  %v2154_v60 = vshrl.u32 %v2105_v51, 16  ;;  %v635_v29 = vld [vmem:[#allocation2 + $0x10] sm:$0x8] }
  0x3d   : > { %5794 = vmatmul.msk.bf16.gmra.mxu1 %vm1118_vm2, %v6112_v21  ;;  %484 = vst.msk [vmem:[#allocation2 + $0xa0] sm:$0xf] %vm473_vm1, %v6246_v20  ;;  %v706_v41 = vshrl.u32 %v635_v29, 16  ;;  %v2110_v51 = vld [vmem:[#allocation2 + $0x28] sm:$0xf] }
  0x3e   : > { %485 = vst.msk [vmem:[#allocation2 + $0xb0] sm:$0xf] %vm473_vm1, %v6246_v20  ;;  %v5837_v11 = vrot.slane %v2154_v60, 11  ;;  %v2190_v62 = vshrl.u32 %v2110_v51, 16  ;;  %v2193_v12 = vshll.u32 %v2110_v51, 16 }
  0x3f   : > { %5798 = vmatmul.msk.bf16.gmra.mxu2 %vm1118_vm2, %v6116_v24  ;;  %486 = vst.msk [vmem:[#allocation2 + $0xc0] sm:$0xf] %vm473_vm1, %v6246_v20  ;;  %v637_v24 = vld [vmem:[#allocation2 + $0x18] sm:$0xf]  ;;  %v5708_v1 = vrot.slane %v706_v41, 11 }
  0x40   : > { %487 = vst.msk [vmem:[#allocation2 + $0xd0] sm:$0xf] %vm473_vm1, %v6246_v20  ;;  %v2165_v34 = vsel %vm6499_vm7, %v5837_v11, %v2164_v16  ;;  %v720_v38 = vshrl.u32 %v637_v24, 16  ;;  %v723_v55 = vshll.u32 %v637_v24, 16  ;;  %v2192_v11 = vrot.slane %v2190_v62, 7 }
  0x41   : > { %5802 = vmatmul.msk.bf16.gmra.mxu3 %vm1118_vm2, %v6120_v26  ;;  %488 = vst.msk [vmem:[#allocation2 + $0xe0] sm:$0xf] %vm473_vm1, %v6246_v20  ;;  %v1524_v26 = vshrl.u32 %v1451_v14, 16  ;;  %v2507_v48 = vunpack.c.l.b16 %v2165_v34  ;;  %v6122_v14 = vld [vmem:[#allocation2 + $0x14] sm:$0xff]  ;;  %v717_v16 = vsel %vm6499_vm7, %v5708_v1, %v716_v2  ;;  %v638_v29 = vld [vmem:[#allocation2 + $0x20] sm:$0x8] }
  0x42   : > { %489 = vst.msk [vmem:[#allocation2 + $0xf0] sm:$0xf] %vm473_vm1, %v6246_v20  ;;  %v722_v54 = vrot.slane %v720_v38, 7  ;;  %v2195_v28 = vor.u32 %v2193_v12, %v2192_v11  ;;  %v728_v41 = vshrl.u32 %v638_v29, 16  ;;  %v2111_v53 = vld [vmem:[#allocation2 + $0x30] sm:$0x8] }
  0x43   : > { %5790 = vmatmul.msk.bf16.gmra.mxu0 %vm1118_vm2, %v6108_v32  ;;  %490 = vst.msk [vmem:[#allocation2 + $0x100] sm:$0xf] %vm473_vm1, %v6246_v20  ;;  %v1261_v32 = vunpack.c.l.b16 %v704_v19  ;;  %v1526_v39 = vrot.slane %v1524_v26, 4  ;;  %v1455_v19 = vld [vmem:[#allocation2 + $0x28] sm:$0xf] }
  0x44   : > { %491 = vst.msk [vmem:[#allocation2 + $0x110] sm:$0xf] %vm473_vm1, %v6246_v20  ;;  %v725_v4 = vor.u32 %v723_v55, %v722_v54  ;;  %v1557_v33 = vshll.u32 %v1455_v19, 16  ;;  %v1561_v34 = vshrl.u32 %v1455_v19, 16  ;;  %v5709_v59 = vrot.slane %v728_v41, 11  ;;  %v6123_v12 = vld [vmem:[#allocation2 + $0x24] sm:$0xff] }
  0x45   : > { %492 = vst.msk [vmem:[#allocation2 + $0xc] sm:$0xf] %vm473_vm1, %v6246_v20  ;;  %v1530_v57 = vor.u32 %v1529_v42, %v1526_v39  ;;  %v2112_v42 = vld [vmem:[#allocation2 + $0x34] sm:$0xf]  ;;  %v1458_v11 = vld [vmem:[#allocation2 + $0x38] sm:$0xf] }
  0x46   : > { %493 = vst.msk [vmem:[#allocation2 + $0x1c] sm:$0xf] %vm473_vm1, %v6246_v20  ;;  %v726_v17 = vsel %vm6499_vm7, %v718_v3, %v725_v4  ;;  %v1563_v51 = vrot.slane %v1561_v34, 4  ;;  %v2203_v54 = vshrl.u32 %v2112_v42, 16  ;;  %v2198_v3 = vshrl.u32 %v2111_v53, 16 }
  0x47   : > { %494 = vst.msk [vmem:[#allocation2 + $0x2c] sm:$0xf] %vm473_vm1, %v6246_v20  ;;  %v1263_v36 = vunpack.c.l.b16 %v726_v17 }
  0x48   : > { %495 = vst.msk [vmem:[#allocation2 + $0x3c] sm:$0xf] %vm473_vm1, %v6246_v20  ;;  %v2205_v4 = vrot.slane %v2203_v54, 7  ;;  %v5839_v17 = vrot.slane %v2198_v3, 11 }
  0x49   : > { %496 = vst.msk [vmem:[#allocation2 + $0x4c] sm:$0xf] %vm473_vm1, %v6246_v20 }
  0x4a   : > { %497 = vst.msk [vmem:[#allocation2 + $0x5c] sm:$0xf] %vm473_vm1, %v6246_v20  ;;  %v2210_v19 = vrot.slane %v2205_v4, 4 }
  0x4b   : > { %498 = vst.msk [vmem:[#allocation2 + $0x6c] sm:$0xf] %vm473_vm1, %v6246_v20 }
  0x4c   : > { %499 = vst.msk [vmem:[#allocation2 + $0x7c] sm:$0xf] %vm473_vm1, %v6246_v20  ;;  %v1450_v13 = vld [vmem:[#allocation2 + $0xc] sm:$0x1] }
  0x4d   : > { %5795 = vmatmul.msk.bf16.gmra.mxu1 %vm1118_vm2, %v6113_v56  ;;  %500 = vst.msk [vmem:[#allocation2 + $0x8c] sm:$0xf] %vm473_vm1, %v6246_v20  ;;  %v1519_v15 = vshll.u32 %v1450_v13, 16  ;;  %v1453_v50 = vld [vmem:[#allocation2 + $0x1c] sm:$0x1]  ;;  %v1292_v56 = vpack.c.b16 %v1261_v32, %v1260_v40  ;;  %v1551_v32 = vshll.u32 %v1454_v18, 16 }
  0x4e   : > { %501 = vst.msk [vmem:[#allocation2 + $0x9c] sm:$0xf] %vm473_vm1, %v6246_v20  ;;  %v1543_v60 = vshll.u32 %v1453_v50, 16  ;;  %v639_v13 = vld [vmem:[#allocation2 + $0x24] sm:$0xf]  ;;  %v1559_v50 = vrot.slane %v1557_v33, 5 }
  0x4f   : > { %5799 = vmatmul.msk.bf16.gmra.mxu2 %vm1118_vm2, %v6117_v61  ;;  %502 = vst.msk [vmem:[#allocation2 + $0xac] sm:$0xf] %vm473_vm1, %v6246_v20  ;;  %v1521_v25 = vrot.slane %v1519_v15, 5  ;;  %v2108_v61 = vld [vmem:[#allocation2 + $0x20] sm:$0x8]  ;;  %v736_v45 = vshll.u32 %v639_v13, 16 }
  0x50   : > { %503 = vst.msk [vmem:[#allocation2 + $0xbc] sm:$0xf] %vm473_vm1, %v6246_v20  ;;  %v2176_v5 = vshrl.u32 %v2108_v61, 16  ;;  %v640_v15 = vld [vmem:[#allocation2 + $0x28] sm:$0xf]  ;;  %v1564_v1 = vor.u32 %v1563_v51, %v1559_v50 }
  0x51   : > { %5803 = vmatmul.msk.bf16.gmra.mxu3 %vm1118_vm2, %v6121_v0  ;;  %504 = vst.msk [vmem:[#allocation2 + $0xcc] sm:$0xf] %vm473_vm1, %v6246_v20  ;;  %v1522_v35 = vsel %vm6517_vm8, %v1517_v10, %v1521_v25  ;;  %v2539_v0 = vpack.c.b16 %v2508_v49, %v2507_v48  ;;  %v1545_v10 = vrot.slane %v1543_v60, 5  ;;  %v733_v25 = vshrl.u32 %v639_v13, 16  ;;  %v1456_v52 = vld [vmem:[#allocation2 + $0x2c] sm:$0x1] }
  0x52   : > { %505 = vst.msk [vmem:[#allocation2 + $0xdc] sm:$0xf] %vm473_vm1, %v6246_v20  ;;  %v1886_v47 = vunpack.c.l.b16 %v1522_v35  ;;  %v5838_v23 = vrot.slane %v2176_v5, 11  ;;  %v742_v30 = vshrl.u32 %v640_v15, 16  ;;  %v1262_v35 = vunpack.c.l.b16 %v717_v16  ;;  %v2116_v51 = vld [vmem:[#allocation2 + $0x48] sm:$0xf] }
  0x53   : > { %5791 = vmatmul.msk.bf16.gmra.mxu0 %vm1118_vm2, %v6109_v6  ;;  %506 = vst.msk [vmem:[#allocation2 + $0xec] sm:$0xf] %vm473_vm1, %v6246_v20  ;;  %v2183_v6 = vrot.slane %v2181_v58, 7  ;;  %v1546_v26 = vsel %vm6517_vm8, %v1541_v9, %v1545_v10  ;;  %v735_v39 = vrot.slane %v733_v25, 7  ;;  %v1550_v48 = vrot.slane %v1548_v31, 4 }
  0x54   : > { %507 = vst.msk [vmem:[#allocation2 + $0xfc] sm:$0xf] %vm473_vm1, %v6246_v20  ;;  %v1917_v63 = vpack.c.b16 %v1886_v47, %v1885_v46  ;;  %v1888_v38 = vunpack.c.l.b16 %v1546_v26  ;;  %v744_v46 = vrot.slane %v742_v30, 7  ;;  %v745_v47 = vshll.u32 %v640_v15, 16  ;;  %v1457_v10 = vld [vmem:[#allocation2 + $0x34] sm:$0xf] }
  0x55   : > { %508 = vst.msk [vmem:[#allocation2 + $0x10c] sm:$0xf] %vm473_vm1, %v6246_v20  ;;  %v2186_v24 = vor.u32 %v2184_v8, %v2183_v6  ;;  %v2188_v27 = vrot.slane %v2183_v6, 4  ;;  %v1553_v49 = vrot.slane %v1551_v32, 5  ;;  %v738_v61 = vor.u32 %v736_v45, %v735_v39  ;;  %v641_v32 = vld [vmem:[#allocation2 + $0x30] sm:$0x8] }
  0x56   : > { %509 = vst.msk [vmem:[#allocation2 + $0x11c] sm:$0xf] %vm473_vm1, %v6246_v20  ;;  %v1531_v20 = vrot.slane %v1530_v57, 4  ;;  %v740_v62 = vrot.slane %v735_v39, 4  ;;  %v1567_v2 = vshll.u32 %v1456_v52, 16  ;;  %v1565_v15 = vrot.slane %v1564_v1, 4 }
  0x57   : > { %v2187_v40 = vsel %vm6499_vm7, %v5838_v23, %v2186_v24  ;;  %v2196_v44 = vsel %vm6499_vm7, %v2188_v27, %v2195_v28  ;;  %v739_v9 = vsel %vm6499_vm7, %v5709_v59, %v738_v61  ;;  %v642_v23 = vld [vmem:[#allocation2 + $0x34] sm:$0xf]  ;;  %v643_v24 = vld [vmem:[#allocation2 + $0x38] sm:$0xf]  ;;  %v1572_v25 = vshrl.u32 %v1457_v10, 16 }
  0x58   : > { %v1536_v22 = vsel %vm6517_vm8, %v1531_v20, %v1535_v43  ;;  %v2113_v43 = vld [vmem:[#allocation2 + $0x38] sm:$0xf]  ;;  %v2509_v57 = vunpack.c.l.b16 %v2187_v40  ;;  %v2510_v58 = vunpack.c.l.b16 %v2196_v44  ;;  %v2206_v20 = vshll.u32 %v2112_v42, 16 }
  0x59   : > { %v1887_v37 = vunpack.c.l.b16 %v1536_v22  ;;  %v2212_v55 = vshrl.u32 %v2113_v43, 16  ;;  %v2215_v6 = vshll.u32 %v2113_v43, 16  ;;  %v1569_v16 = vrot.slane %v1567_v2, 5 }
  0x5a   : > { %v2540_v8 = vpack.c.b16 %v2510_v58, %v2509_v57  ;;  %v2208_v18 = vor.u32 %v2206_v20, %v2205_v4  ;;  %v1575_v26 = vshll.u32 %v1457_v10, 16  ;;  %v1581_v27 = vshll.u32 %v1458_v11, 16  ;;  %v2114_v58 = vld [vmem:[#allocation2 + $0x40] sm:$0x8] }
  0x5b   : > { %v1918_v60 = vpack.c.b16 %v1888_v38, %v1887_v37  ;;  %v2214_v5 = vrot.slane %v2212_v55, 7  ;;  %v1585_v28 = vshrl.u32 %v1458_v11, 16  ;;  %v1264_v29 = vunpack.c.l.b16 %v739_v9  ;;  %v1459_v38 = vld [vmem:[#allocation2 + $0x3c] sm:$0x1]  ;;  %v6124_v11 = vld [vmem:[#allocation2 + $0x34] sm:$0xff] }
  0x5c   : > { %v1570_v31 = vsel %vm6517_vm8, %v1565_v15, %v1569_v16  ;;  %v755_v33 = vshrl.u32 %v642_v23, 16  ;;  %v764_v37 = vshrl.u32 %v643_v24, 16  ;;  %v1574_v40 = vrot.slane %v1572_v25, 4  ;;  %v1461_v15 = vld [vmem:[#allocation2 + $0x48] sm:$0xf] }
  0x5d   : > { %5804 = vmatmul.msk.bf16.vlgmr.msrb.gmra.mxu1 %vm1118_vm2, %v1292_v56  ;;  %v1293_v56 = vpack.c.b16 %v1263_v36, %v1262_v35  ;;  %v2217_v22 = vor.u32 %v2215_v6, %v2214_v5  ;;  %v2209_v35 = vsel %vm6499_vm7, %v5839_v17, %v2208_v18  ;;  %v1577_v41 = vrot.slane %v1575_v26, 5 }
  0x5e   : > { %v1583_v39 = vrot.slane %v1581_v27, 5  ;;  %v1587_v42 = vrot.slane %v1585_v28, 4  ;;  %v1890_v44 = vunpack.c.l.b16 %v1570_v31  ;;  %v750_v45 = vshrl.u32 %v641_v32, 16  ;;  %v646_v27 = vld [vmem:[#allocation2 + $0x48] sm:$0xf] }
  0x5f   : > { %5821 = vmatmul.msk.bf16.vlgmr.msrb.gmra.mxu2 %vm1118_vm2, %v1917_v63  ;;  %v747_v63 = vor.u32 %v745_v47, %v744_v46  ;;  %v2218_v36 = vsel %vm6499_vm7, %v2210_v19, %v2217_v22  ;;  %v2115_v46 = vld [vmem:[#allocation2 + $0x44] sm:$0xf]  ;;  %v2511_v47 = vunpack.c.l.b16 %v2209_v35  ;;  %v766_v52 = vrot.slane %v764_v37, 7  ;;  %v2119_v37 = vld [vmem:[#allocation2 + $0x58] sm:$0xf] }
  0x60   : > { %v767_v53 = vshll.u32 %v643_v24, 16  ;;  %v1591_v54 = vshll.u32 %v1459_v38, 16  ;;  %v1588_v57 = vor.u32 %v1587_v42, %v1583_v39  ;;  %v2225_v59 = vshrl.u32 %v2115_v46, 16  ;;  %v645_v24 = vld [vmem:[#allocation2 + $0x44] sm:$0xf] }
  0x61   : > { %5854 = vmatmul.msk.bf16.vlgmr.msrb.gmra.mxu3 %vm1118_vm2, %v2539_v0  ;;  %v1554_v0 = vor.u32 %v1553_v49, %v1550_v48  ;;  %v748_v13 = vsel %vm6499_vm7, %v740_v62, %v747_v63  ;;  %v2512_v48 = vunpack.c.l.b16 %v2218_v36  ;;  %v757_v49 = vrot.slane %v755_v33, 7 }
  0x62   : > { %v1265_v34 = vunpack.c.l.b16 %v748_v13  ;;  %v5710_v63 = vrot.slane %v750_v45, 11  ;;  %v769_v2 = vor.u32 %v767_v53, %v766_v52  ;;  %v1593_v3 = vrot.slane %v1591_v54, 5 }
  0x63   : > { %5935 = vmatmul.msk.bf16.vlgmr.msrb.gmra.mxu0 %vm1118_vm2, %v6122_v14  ;;  %v1555_v14 = vrot.slane %v1554_v0, 4  ;;  %v2541_v62 = vpack.c.b16 %v2512_v48, %v2511_v47  ;;  %v762_v1 = vrot.slane %v757_v49, 4  ;;  %v2220_v4 = vshrl.u32 %v2114_v58, 16 }
  0x64   : > { %v1294_v55 = vpack.c.b16 %v1265_v34, %v1264_v29  ;;  %v1589_v5 = vrot.slane %v1588_v57, 4  ;;  %v2227_v6 = vrot.slane %v2225_v59, 7  ;;  %v2237_v10 = vshll.u32 %v2116_v51, 16  ;;  %v2118_v34 = vld [vmem:[#allocation2 + $0x54] sm:$0xf] }
  0x65   : > { %v1560_v30 = vsel %vm6517_vm8, %v1555_v14, %v1559_v50  ;;  %v758_v50 = vshll.u32 %v642_v23, 16  ;;  %v770_v14 = vsel %vm6499_vm7, %v762_v1, %v769_v2  ;;  %v5840_v18 = vrot.slane %v2220_v4, 11  ;;  %v1463_v4 = vld [vmem:[#allocation2 + $0x54] sm:$0xf] }
  0x66   : > { %v1889_v43 = vunpack.c.l.b16 %v1560_v30  ;;  %v1594_v17 = vsel %vm6517_vm8, %v1589_v5, %v1593_v3  ;;  %v2232_v22 = vrot.slane %v2227_v6, 4  ;;  %v1605_v28 = vshll.u32 %v1461_v15, 16 }
  0x67   : > { %v760_v0 = vor.u32 %v758_v50, %v757_v49  ;;  %v1609_v29 = vshrl.u32 %v1461_v15, 16  ;;  %v1267_v31 = vunpack.c.l.b16 %v770_v14  ;;  %v1892_v33 = vunpack.c.l.b16 %v1594_v17  ;;  %v2117_v50 = vld [vmem:[#allocation2 + $0x50] sm:$0x8]  ;;  %v648_v17 = vld [vmem:[#allocation2 + $0x54] sm:$0xf] }
  0x68   : > { %v1919_v61 = vpack.c.b16 %v1890_v44, %v1889_v43  ;;  %v777_v36 = vshrl.u32 %v645_v24, 16  ;;  %v1462_v43 = vld [vmem:[#allocation2 + $0x4c] sm:$0x1]  ;;  %v1607_v44 = vrot.slane %v1605_v28, 5  ;;  %v789_v57 = vshll.u32 %v646_v27, 16 }
  0x69   : > { %v761_v13 = vsel %vm6499_vm7, %v5710_v63, %v760_v0  ;;  %v1611_v45 = vrot.slane %v1609_v29, 4  ;;  %v1615_v59 = vshll.u32 %v1462_v43, 16  ;;  %v2250_v63 = vshll.u32 %v2118_v34, 16  ;;  %v1465_v43 = vld [vmem:[#allocation2 + $0x5c] sm:$0x1] }
  0x6a   : > { %v1266_v30 = vunpack.c.l.b16 %v761_v13  ;;  %v779_v54 = vrot.slane %v777_v36, 7  ;;  %v2259_v1 = vshll.u32 %v2119_v37, 16 }
  0x6c   : > { %v1295_v47 = vpack.c.b16 %v1267_v31, %v1266_v30  ;;  %v784_v5 = vrot.slane %v779_v54, 4  ;;  %v799_v30 = vshrl.u32 %v648_v17, 16 }
  0x6d   : > { %5805 = vmatmul.msk.bf16.gmra.mxu1 %vm1118_vm2, %v1293_v56  ;;  %v1578_v56 = vor.u32 %v1577_v41, %v1574_v40  ;;  %v644_v40 = vld [vmem:[#allocation2 + $0x40] sm:$0x8]  ;;  %v786_v41 = vshrl.u32 %v646_v27, 16 }
  0x6e   : > { %v772_v53 = vshrl.u32 %v644_v40, 16 }
  0x6f   : > { %5822 = vmatmul.msk.bf16.gmra.mxu2 %vm1118_vm2, %v1918_v60  ;;  %v2234_v60 = vshrl.u32 %v2116_v51, 16  ;;  %v1579_v20 = vrot.slane %v1578_v56, 4  ;;  %v2256_v51 = vshrl.u32 %v2119_v37, 16  ;;  %v788_v56 = vrot.slane %v786_v41, 7 }
  0x70   : > { %v5711_v3 = vrot.slane %v772_v53, 11 }
  0x71   : > { %5855 = vmatmul.msk.bf16.gmra.mxu3 %vm1118_vm2, %v2540_v8  ;;  %v2228_v8 = vshll.u32 %v2115_v46, 16  ;;  %v2236_v9 = vrot.slane %v2234_v60, 7  ;;  %v1584_v16 = vsel %vm6517_vm8, %v1579_v20, %v1583_v39  ;;  %v2247_v46 = vshrl.u32 %v2118_v34, 16 }
  0x72   : > { %v1891_v32 = vunpack.c.l.b16 %v1584_v16  ;;  %v1612_v60 = vor.u32 %v1611_v45, %v1607_v44  ;;  %v2258_v0 = vrot.slane %v2256_v51, 7 }
  0x73   : > { %5936 = vmatmul.msk.bf16.gmra.mxu0 %vm1118_vm2, %v6123_v12  ;;  %v1460_v12 = vld [vmem:[#allocation2 + $0x44] sm:$0xf]  ;;  %v2230_v19 = vor.u32 %v2228_v8, %v2227_v6  ;;  %v2239_v23 = vor.u32 %v2237_v10, %v2236_v9  ;;  %v791_v6 = vor.u32 %v789_v57, %v788_v56  ;;  %v1464_v9 = vld [vmem:[#allocation2 + $0x58] sm:$0xf]  ;;  %v2120_v56 = vld [vmem:[#allocation2 + $0x60] sm:$0x8] }
  0x74   : > { %v1596_v25 = vshrl.u32 %v1460_v12, 16  ;;  %v1599_v26 = vshll.u32 %v1460_v12, 16  ;;  %v1920_v48 = vpack.c.b16 %v1892_v33, %v1891_v32  ;;  %v6125_v10 = vld [vmem:[#allocation2 + $0x44] sm:$0xff]  ;;  %v1617_v12 = vrot.slane %v1615_v59, 5  ;;  %v647_v32 = vld [vmem:[#allocation2 + $0x50] sm:$0x8] }
  0x75   : > { %v2231_v35 = vsel %vm6499_vm7, %v5840_v18, %v2230_v19  ;;  %v2240_v38 = vsel %vm6499_vm7, %v2232_v22, %v2239_v23  ;;  %v2261_v16 = vor.u32 %v2259_v1, %v2258_v0  ;;  %v1620_v18 = vshrl.u32 %v1463_v4, 16  ;;  %v649_v22 = vld [vmem:[#allocation2 + $0x58] sm:$0xf] }
  0x76   : > { %v1598_v39 = vrot.slane %v1596_v25, 4  ;;  %v1601_v42 = vrot.slane %v1599_v26, 5  ;;  %v2513_v49 = vunpack.c.l.b16 %v2231_v35  ;;  %v2514_v52 = vunpack.c.l.b16 %v2240_v38 }
  0x77   : > { %v1623_v19 = vshll.u32 %v1463_v4, 16  ;;  %v1629_v23 = vshll.u32 %v1464_v9, 16  ;;  %v792_v26 = vsel %vm6499_vm7, %v784_v5, %v791_v6  ;;  %v808_v33 = vshrl.u32 %v649_v22, 16 }
  0x78   : > { %v1602_v58 = vor.u32 %v1601_v42, %v1598_v39  ;;  %v2542_v2 = vpack.c.b16 %v2514_v52, %v2513_v49  ;;  %v1622_v34 = vrot.slane %v1620_v18, 4  ;;  %v1269_v37 = vunpack.c.l.b16 %v792_v26  ;;  %v2122_v49 = vld [vmem:[#allocation2 + $0x68] sm:$0xf] }
  0x79   : > { %v1625_v35 = vrot.slane %v1623_v19, 5  ;;  %v6614_v38 = vrot.slane %v1629_v23, 5  ;;  %v811_v51 = vshll.u32 %v649_v22, 16  ;;  %v2278_v59 = vshrl.u32 %v2122_v49, 16  ;;  %v1467_v23 = vld [vmem:[#allocation2 + $0x68] sm:$0xf] }
  0x7a   : > { %v1603_v8 = vrot.slane %v1602_v58, 4 }
  0x7b   : > { %v1626_v52 = vor.u32 %v1625_v35, %v1622_v34  ;;  %v1653_v35 = vshll.u32 %v1467_v23, 16 }
  0x7c   : > { %v1608_v27 = vsel %vm6517_vm8, %v1603_v8, %v1607_v44  ;;  %v2121_v44 = vld [vmem:[#allocation2 + $0x64] sm:$0xf]  ;;  %v2280_v8 = vrot.slane %v2278_v59, 7 }
  0x7d   : > { %5806 = vmatmul.msk.bf16.gmra.mxu1 %vm1118_vm2, %v1294_v55  ;;  %v780_v55 = vshll.u32 %v645_v24, 16  ;;  %v1633_v24 = vshrl.u32 %v1464_v9, 16  ;;  %v1893_v41 = vunpack.c.l.b16 %v1608_v27  ;;  %v2269_v57 = vshrl.u32 %v2121_v44, 16 }
  0x7e   : > { %v2272_v6 = vshll.u32 %v2121_v44, 16  ;;  %v2281_v9 = vshll.u32 %v2122_v49, 16 }
  0x7f   : > { %5823 = vmatmul.msk.bf16.gmra.mxu2 %vm1118_vm2, %v1919_v61  ;;  %v2242_v61 = vshrl.u32 %v2117_v50, 16  ;;  %v782_v20 = vor.u32 %v780_v55, %v779_v54  ;;  %v1635_v40 = vrot.slane %v1633_v24, 4  ;;  %v810_v50 = vrot.slane %v808_v33, 7 }
  0x80   : > { %v1639_v55 = vshll.u32 %v1465_v43, 16  ;;  %v2271_v5 = vrot.slane %v2269_v57, 7  ;;  %v2283_v27 = vor.u32 %v2281_v9, %v2280_v8 }
  0x81   : > { %5856 = vmatmul.msk.bf16.gmra.mxu3 %vm1118_vm2, %v2541_v62  ;;  %v2249_v62 = vrot.slane %v2247_v46, 7  ;;  %v5841_v13 = vrot.slane %v2242_v61, 11  ;;  %v783_v25 = vsel %vm6499_vm7, %v5711_v3, %v782_v20  ;;  %v794_v46 = vshrl.u32 %v647_v32, 16 }
  0x82   : > { %v1268_v36 = vunpack.c.l.b16 %v783_v25  ;;  %v1636_v54 = vor.u32 %v1635_v40, %v6614_v38  ;;  %v813_v1 = vor.u32 %v811_v51, %v810_v50  ;;  %v2264_v3 = vshrl.u32 %v2120_v56, 16 }
  0x83   : > { %5937 = vmatmul.msk.bf16.gmra.mxu0 %vm1118_vm2, %v6124_v11  ;;  %v1613_v11 = vrot.slane %v1612_v60, 4  ;;  %v2252_v14 = vor.u32 %v2250_v63, %v2249_v62  ;;  %v2254_v15 = vrot.slane %v2249_v62, 4  ;;  %v5712_v62 = vrot.slane %v794_v46, 11  ;;  %v2125_v46 = vld [vmem:[#allocation2 + $0x78] sm:$0xf] }
  0x84   : > { %v1296_v53 = vpack.c.b16 %v1269_v37, %v1268_v36  ;;  %v1637_v4 = vrot.slane %v1636_v54, 4  ;;  %v1641_v20 = vrot.slane %v1639_v55, 5  ;;  %v5842_v19 = vrot.slane %v2264_v3, 11 }
  0x85   : > { %v1618_v28 = vsel %vm6517_vm8, %v1613_v11, %v1617_v12  ;;  %v2253_v29 = vsel %vm6499_vm7, %v5841_v13, %v2252_v14  ;;  %v2262_v31 = vsel %vm6499_vm7, %v2254_v15, %v2261_v16  ;;  %v1466_v11 = vld [vmem:[#allocation2 + $0x64] sm:$0xf]  ;;  %v652_v16 = vld [vmem:[#allocation2 + $0x68] sm:$0xf]  ;;  %v2274_v22 = vor.u32 %v2272_v6, %v2271_v5 }
  0x86   : > { %v1894_v39 = vunpack.c.l.b16 %v1618_v28  ;;  %v2515_v42 = vunpack.c.l.b16 %v2253_v29  ;;  %v2516_v45 = vunpack.c.l.b16 %v2262_v31  ;;  %v651_v15 = vld [vmem:[#allocation2 + $0x64] sm:$0xf]  ;;  %v1642_v18 = vsel %vm6517_vm8, %v1637_v4, %v1641_v20 }
  0x87   : > { %v2276_v26 = vrot.slane %v2271_v5, 4  ;;  %v1644_v28 = vshrl.u32 %v1466_v11, 16  ;;  %v1647_v29 = vshll.u32 %v1466_v11, 16  ;;  %v821_v31 = vshrl.u32 %v651_v15, 16 }
  0x88   : > { %v1921_v60 = vpack.c.b16 %v1894_v39, %v1893_v41  ;;  %v2543_v61 = vpack.c.b16 %v2516_v45, %v2515_v42  ;;  %v830_v32 = vshrl.u32 %v652_v16, 16  ;;  %v1657_v36 = vshrl.u32 %v1467_v23, 16  ;;  %v2124_v39 = vld [vmem:[#allocation2 + $0x74] sm:$0xf]  ;;  %v1470_v23 = vld [vmem:[#allocation2 + $0x78] sm:$0xf] }
  0x89   : > { %v1896_v40 = vunpack.c.l.b16 %v1642_v18  ;;  %v2275_v41 = vsel %vm6499_vm7, %v5842_v19, %v2274_v22  ;;  %v2284_v42 = vsel %vm6499_vm7, %v2276_v26, %v2283_v27  ;;  %v1646_v44 = vrot.slane %v1644_v28, 4 }
  0x8a   : > { %v1649_v45 = vrot.slane %v1647_v29, 5  ;;  %v832_v49 = vrot.slane %v830_v32, 7  ;;  %v833_v50 = vshll.u32 %v652_v16, 16  ;;  %v1659_v54 = vrot.slane %v1657_v36, 4  ;;  %v1469_v16 = vld [vmem:[#allocation2 + $0x74] sm:$0xf] }
  0x8b   : > { %v2291_v55 = vshrl.u32 %v2124_v39, 16  ;;  %v2517_v57 = vunpack.c.l.b16 %v2275_v41  ;;  %v2518_v59 = vunpack.c.l.b16 %v2284_v42  ;;  %v2294_v11 = vshll.u32 %v2124_v39, 16 }
  0x8c   : > { %v835_v20 = vor.u32 %v833_v50, %v832_v49  ;;  %v1671_v36 = vshll.u32 %v1469_v16, 16  ;;  %v1677_v41 = vshll.u32 %v1470_v23, 16  ;;  %v1681_v39 = vshrl.u32 %v1470_v23, 16  ;;  %v2128_v50 = vld [vmem:[#allocation2 + $0x88] sm:$0xf] }
  0x8d   : > { %5807 = vmatmul.msk.bf16.gmra.mxu1 %vm1118_vm2, %v1295_v47  ;;  %v801_v47 = vrot.slane %v799_v30, 7  ;;  %v650_v30 = vld [vmem:[#allocation2 + $0x60] sm:$0x8] }
  0x8e   : > { %v816_v43 = vshrl.u32 %v650_v30, 16 }
  0x8f   : > { %5824 = vmatmul.msk.bf16.gmra.mxu2 %vm1118_vm2, %v1920_v48  ;;  %v802_v48 = vshll.u32 %v648_v17, 16  ;;  %v806_v0 = vrot.slane %v801_v47, 4 }
  0x91   : > { %5857 = vmatmul.msk.bf16.gmra.mxu3 %vm1118_vm2, %v2542_v2  ;;  %v804_v63 = vor.u32 %v802_v48, %v801_v47  ;;  %v1627_v2 = vrot.slane %v1626_v52, 4  ;;  %v814_v14 = vsel %vm6499_vm7, %v806_v0, %v813_v1  ;;  %v823_v47 = vrot.slane %v821_v31, 7  ;;  %v1468_v52 = vld [vmem:[#allocation2 + $0x6c] sm:$0x1] }
  0x92   : > { %v1271_v37 = vunpack.c.l.b16 %v814_v14  ;;  %v824_v48 = vshll.u32 %v651_v15, 16  ;;  %v5713_v1 = vrot.slane %v816_v43, 11  ;;  %v1663_v5 = vshll.u32 %v1468_v52, 16 }
  0x93   : > { %5938 = vmatmul.msk.bf16.gmra.mxu0 %vm1118_vm2, %v6125_v10  ;;  %v6126_v10 = vld [vmem:[#allocation2 + $0x54] sm:$0xff]  ;;  %v805_v13 = vsel %vm6499_vm7, %v5712_v62, %v804_v63  ;;  %v1632_v17 = vsel %vm6517_vm8, %v1627_v2, %v6614_v38  ;;  %v1650_v2 = vor.u32 %v1649_v45, %v1646_v44  ;;  %v828_v4 = vrot.slane %v823_v47, 4  ;;  %v2127_v45 = vld [vmem:[#allocation2 + $0x84] sm:$0xf] }
  0x94   : > { %v1270_v34 = vunpack.c.l.b16 %v805_v13  ;;  %v1895_v38 = vunpack.c.l.b16 %v1632_v17  ;;  %v826_v3 = vor.u32 %v824_v48, %v823_v47  ;;  %v2544_v13 = vpack.c.b16 %v2518_v59, %v2517_v57  ;;  %v6127_v17 = vld [vmem:[#allocation2 + $0x64] sm:$0xff] }
  0x95   : > { %v2303_v15 = vshll.u32 %v2125_v46, 16  ;;  %v1651_v19 = vrot.slane %v1650_v2, 4  ;;  %v1665_v22 = vrot.slane %v1663_v5, 5  ;;  %v836_v27 = vsel %vm6499_vm7, %v828_v4, %v835_v20  ;;  %v2126_v4 = vld [vmem:[#allocation2 + $0x80] sm:$0x8] }
  0x96   : > { %v1297_v56 = vpack.c.b16 %v1271_v37, %v1270_v34  ;;  %v1922_v0 = vpack.c.b16 %v1896_v40, %v1895_v38  ;;  %v827_v18 = vsel %vm6499_vm7, %v5713_v1, %v826_v3  ;;  %v654_v34 = vld [vmem:[#allocation2 + $0x74] sm:$0xf]  ;;  %v655_v40 = vld [vmem:[#allocation2 + $0x78] sm:$0xf]  ;;  %v1273_v43 = vunpack.c.l.b16 %v836_v27 }
  0x97   : > { %v1272_v42 = vunpack.c.l.b16 %v827_v18  ;;  %v843_v49 = vshrl.u32 %v654_v34, 16  ;;  %v1673_v57 = vrot.slane %v1671_v36, 5  ;;  %v2322_v20 = vshrl.u32 %v2128_v50, 16 }
  0x98   : > { %v2316_v27 = vshll.u32 %v2127_v45, 16 }
  0x99   : > { %v1298_v1 = vpack.c.b16 %v1273_v43, %v1272_v42 }
  0x9a   : > { %v6617_v58 = vpop.f32.mrf.mxu1 }
  0x9d   : > { %5808 = vmatmul.msk.bf16.gmra.mxu1 %vm1118_vm2, %v1296_v53  ;;  %v6646_v53 = vrot.slane %v1653_v35, 5  ;;  %v1668_v35 = vshrl.u32 %v1469_v16, 16 }
  0x9f   : > { %5825 = vmatmul.msk.bf16.gmra.mxu2 %vm1118_vm2, %v1921_v60  ;;  %v2123_v60 = vld [vmem:[#allocation2 + $0x70] sm:$0x8]  ;;  %v1660_v8 = vor.u32 %v1659_v54, %v6646_v53  ;;  %v1656_v44 = vsel %vm6517_vm8, %v1651_v19, %v6646_v53  ;;  %v1471_v53 = vld [vmem:[#allocation2 + $0x7c] sm:$0x1] }
  0xa0   : > { %v6621_v12 = vpop.f32.mrf.mxu0  ;;  %v2286_v9 = vshrl.u32 %v2123_v60, 16  ;;  %v653_v54 = vld [vmem:[#allocation2 + $0x70] sm:$0x8]  ;;  %v1897_v59 = vunpack.c.l.b16 %v1656_v44  ;;  %v6680_v60 = vrot.slane %v1677_v41, 5  ;;  %v1687_v16 = vshll.u32 %v1471_v53, 16 }
  0xa1   : > { %5858 = vmatmul.msk.bf16.gmra.mxu3 %vm1118_vm2, %v2543_v61  ;;  %v2300_v61 = vshrl.u32 %v2125_v46, 16  ;;  %v1661_v28 = vrot.slane %v1660_v8, 4 }
  0xa2   : > { %v6633_v24 = vpop.f32.mrf.mxu2  ;;  %v6635_v25 = vpop.f32.mrf.mxu1  ;;  %v5843_v29 = vrot.slane %v2286_v9, 11  ;;  %v838_v9 = vshrl.u32 %v653_v54, 16  ;;  %v1689_v43 = vrot.slane %v1687_v16, 5  ;;  %v657_v54 = vld [vmem:[#allocation2 + $0x84] sm:$0xf] }
  0xa3   : > { %5939 = vmatmul.msk.bf16.gmra.mxu0 %vm1118_vm2, %v6126_v10  ;;  %v2293_v10 = vrot.slane %v2291_v55, 7  ;;  %v2302_v14 = vrot.slane %v2300_v61, 7  ;;  %v1666_v47 = vsel %vm6517_vm8, %v1661_v28, %v1665_v22  ;;  %v852_v55 = vshrl.u32 %v655_v40, 16 }
  0xa4   : > { %v6638_v33 = vpop.f32.mrf.mxu3  ;;  %v1683_v61 = vrot.slane %v1681_v39, 4  ;;  %v1898_v2 = vunpack.c.l.b16 %v1666_v47  ;;  %v2308_v22 = vshrl.u32 %v2126_v4, 16  ;;  %v1472_v39 = vld [vmem:[#allocation2 + $0x84] sm:$0xf] }
  0xa5   : > { %8191 = vst [vmem:[#allocation3_spill] sm:$0xff] %v6638_v33  ;;  %v2296_v30 = vor.u32 %v2294_v11, %v2293_v10  ;;  %v2298_v31 = vrot.slane %v2293_v10, 4  ;;  %v2305_v32 = vor.u32 %v2303_v15, %v2302_v14  ;;  %v845_v10 = vrot.slane %v843_v49, 7 }
  0xa6   : > { %v846_v11 = vshll.u32 %v654_v34, 16  ;;  %v855_v14 = vshll.u32 %v655_v40, 16  ;;  %v1684_v19 = vor.u32 %v1683_v61, %v6680_v60  ;;  %v1923_v28 = vpack.c.b16 %v1898_v2, %v1897_v59 }
  0xa7   : > { %v2297_v48 = vsel %vm6499_vm7, %v5843_v29, %v2296_v30  ;;  %v2306_v52 = vsel %vm6499_vm7, %v2298_v31, %v2305_v32  ;;  %v2324_v29 = vrot.slane %v2322_v20, 7  ;;  %v2325_v30 = vshll.u32 %v2128_v50, 16  ;;  %v1473_v50 = vld [vmem:[#allocation2 + $0x88] sm:$0xf] }
  0xa8   : > { %v6644_v51 = vpop.f32.mrf.mxu0  ;;  %v2519_v3 = vunpack.c.l.b16 %v2297_v48  ;;  %v2520_v8 = vunpack.c.l.b16 %v2306_v52  ;;  %v5714_v34 = vrot.slane %v838_v9, 11  ;;  %v850_v36 = vrot.slane %v845_v10, 4  ;;  %v656_v9 = vld [vmem:[#allocation2 + $0x80] sm:$0x8] }
  0xa9   : > { %v1685_v42 = vrot.slane %v1684_v19, 4  ;;  %v5844_v44 = vrot.slane %v2308_v22, 11  ;;  %v2327_v49 = vor.u32 %v2325_v30, %v2324_v29  ;;  %v1701_v4 = vshll.u32 %v1473_v50, 16 }
  0xaa   : > { %v6648_v62 = vpop.f32.mrf.mxu2  ;;  %v6650_v63 = vpop.f32.mrf.mxu1  ;;  %v2545_v32 = vpack.c.b16 %v2520_v8, %v2519_v3  ;;  %v1705_v20 = vshrl.u32 %v1473_v50, 16  ;;  %v860_v29 = vshrl.u32 %v656_v9, 16 }
  0xab   : > { %v1690_v2 = vsel %vm6517_vm8, %v1685_v42, %v1689_v43  ;;  %v6716_v30 = vrot.slane %v1701_v4, 5  ;;  %v1476_v4 = vld [vmem:[#allocation2 + $0x98] sm:$0xf] }
  0xac   : > { %v6652_v6 = vpop.f32.mrf.mxu3  ;;  %v1900_v22 = vunpack.c.l.b16 %v1690_v2 }
  0xad   : > { %8192 = vst [vmem:[#allocation4_spill] sm:$0xff] %v6652_v6  ;;  %5809 = vmatmul.msk.bf16.gmra.mxu1 %vm1118_vm2, %v1297_v56  ;;  %v1670_v56 = vrot.slane %v1668_v35, 4  ;;  %v848_v35 = vor.u32 %v846_v11, %v845_v10  ;;  %v865_v10 = vshrl.u32 %v657_v54, 16 }
  0xaf   : > { %5826 = vmatmul.msk.bf16.gmra.mxu2 %vm1118_vm2, %v1922_v0  ;;  %v2313_v0 = vshrl.u32 %v2127_v45, 16  ;;  %v1674_v15 = vor.u32 %v1673_v57, %v1670_v56  ;;  %v6128_v45 = vld [vmem:[#allocation2 + $0x74] sm:$0xff]  ;;  %v1692_v56 = vshrl.u32 %v1472_v39, 16  ;;  %v1695_v57 = vshll.u32 %v1472_v39, 16  ;;  %v1474_v39 = vld [vmem:[#allocation2 + $0x8c] sm:$0x1] }
  0xb0   : > { %v6659_v26 = vpop.f32.mrf.mxu0  ;;  %v849_v59 = vsel %vm6499_vm7, %v5714_v34, %v848_v35  ;;  %v2131_v34 = vld [vmem:[#allocation2 + $0x98] sm:$0xf]  ;;  %v867_v35 = vrot.slane %v865_v10, 7 }
  0xb1   : > { %5859 = vmatmul.msk.bf16.gmra.mxu3 %vm1118_vm2, %v2544_v13  ;;  %v854_v13 = vrot.slane %v852_v55, 7  ;;  %v2315_v23 = vrot.slane %v2313_v0, 7  ;;  %v1675_v41 = vrot.slane %v1674_v15, 4  ;;  %v658_v55 = vld [vmem:[#allocation2 + $0x88] sm:$0xf]  ;;  %v1697_v15 = vrot.slane %v1695_v57, 5 }
  0xb2   : > { %v6664_v37 = vpop.f32.mrf.mxu2  ;;  %v6666_v38 = vpop.f32.mrf.mxu1  ;;  %v872_v2 = vrot.slane %v867_v35, 4 }
  0xb3   : > { %5940 = vmatmul.msk.bf16.gmra.mxu0 %vm1118_vm2, %v6127_v17  ;;  %v857_v40 = vor.u32 %v855_v14, %v854_v13  ;;  %v2318_v47 = vor.u32 %v2316_v27, %v2315_v23  ;;  %v2320_v48 = vrot.slane %v2315_v23, 4  ;;  %v1680_v61 = vsel %vm6517_vm8, %v1675_v41, %v6680_v60  ;;  %v2130_v27 = vld [vmem:[#allocation2 + $0x94] sm:$0xf] }
  0xb4   : > { %v6672_v46 = vpop.f32.mrf.mxu3  ;;  %v874_v60 = vshrl.u32 %v658_v55, 16  ;;  %v1274_v13 = vunpack.c.l.b16 %v849_v59  ;;  %v1694_v14 = vrot.slane %v1692_v56, 4  ;;  %v1899_v19 = vunpack.c.l.b16 %v1680_v61 }
  0xb5   : > { %8193 = vst [vmem:[#allocation5_spill] sm:$0xff] %v6672_v46  ;;  %v858_v53 = vsel %vm6499_vm7, %v850_v36, %v857_v40  ;;  %v2319_v3 = vsel %vm6499_vm7, %v5844_v44, %v2318_v47  ;;  %v2328_v8 = vsel %vm6499_vm7, %v2320_v48, %v2327_v49  ;;  %v868_v36 = vshll.u32 %v657_v54, 16  ;;  %v1475_v54 = vld [vmem:[#allocation2 + $0x94] sm:$0xf]  ;;  %v1479_v46 = vld [vmem:[#allocation2 + $0xa8] sm:$0xf] }
  0xb6   : > { %v1275_v16 = vunpack.c.l.b16 %v858_v53  ;;  %v2521_v23 = vunpack.c.l.b16 %v2319_v3  ;;  %v876_v40 = vrot.slane %v874_v60, 7  ;;  %v877_v41 = vshll.u32 %v658_v55, 16 }
  0xb7   : > { %v1698_v43 = vor.u32 %v1697_v15, %v1694_v14  ;;  %v2335_v44 = vshrl.u32 %v2130_v27, 16  ;;  %v2344_v48 = vshrl.u32 %v2131_v34, 16  ;;  %v1924_v56 = vpack.c.b16 %v1900_v22, %v1899_v19  ;;  %v660_v15 = vld [vmem:[#allocation2 + $0x94] sm:$0xf] }
  0xb8   : > { %v6682_v5 = vpop.f32.mrf.mxu0  ;;  %v1299_v47 = vpack.c.b16 %v1275_v16, %v1274_v13  ;;  %v1711_v53 = vshll.u32 %v1474_v39, 16  ;;  %v5715_v61 = vrot.slane %v860_v29, 11  ;;  %v870_v55 = vor.u32 %v868_v36, %v867_v35  ;;  %v661_v36 = vld [vmem:[#allocation2 + $0x98] sm:$0xf] }
  0xb9   : > { %v879_v3 = vor.u32 %v877_v41, %v876_v40  ;;  %v2337_v10 = vrot.slane %v2335_v44, 7  ;;  %v2338_v60 = vshll.u32 %v2130_v27, 16  ;;  %v2346_v13 = vrot.slane %v2344_v48, 7 }
  0xba   : > { %v6684_v17 = vpop.f32.mrf.mxu2  ;;  %v6686_v18 = vpop.f32.mrf.mxu1  ;;  %v2347_v14 = vshll.u32 %v2131_v34, 16  ;;  %v1716_v16 = vshrl.u32 %v1475_v54, 16  ;;  %v1719_v19 = vshll.u32 %v1475_v54, 16  ;;  %v1729_v29 = vshrl.u32 %v1476_v4, 16 }
  0xbb   : > { %v871_v35 = vsel %vm6499_vm7, %v5715_v61, %v870_v55  ;;  %v880_v27 = vsel %vm6499_vm7, %v872_v2, %v879_v3  ;;  %v2340_v39 = vor.u32 %v2338_v60, %v2337_v10  ;;  %v2342_v44 = vrot.slane %v2337_v10, 4  ;;  %v1477_v55 = vld [vmem:[#allocation2 + $0x9c] sm:$0x1] }
  0xbc   : > { %v6689_v31 = vpop.f32.mrf.mxu3  ;;  %v1718_v48 = vrot.slane %v1716_v16, 4  ;;  %v896_v61 = vshrl.u32 %v661_v36, 16  ;;  %v1731_v2 = vrot.slane %v1729_v29, 4  ;;  %v1277_v3 = vunpack.c.l.b16 %v880_v27  ;;  %v2134_v16 = vld [vmem:[#allocation2 + $0xa8] sm:$0xf] }
  0xbd   : > { %8194 = vst [vmem:[#allocation6_spill] sm:$0xff] %v6689_v31  ;;  %5810 = vmatmul.msk.bf16.gmra.mxu1 %vm1118_vm2, %v1298_v1  ;;  %v2132_v27 = vld [vmem:[#allocation2 + $0xa0] sm:$0x8] }
  0xbe   : > { %v898_v29 = vrot.slane %v896_v61, 7 }
  0xbf   : > { %5827 = vmatmul.msk.bf16.gmra.mxu2 %vm1118_vm2, %v1923_v28  ;;  %v2522_v28 = vunpack.c.l.b16 %v2328_v8  ;;  %v1699_v8 = vrot.slane %v1698_v43, 4  ;;  %v887_v43 = vshrl.u32 %v660_v15, 16 }
  0xc0   : > { %v6693_v52 = vpop.f32.mrf.mxu0 }
  0xc1   : > { %5860 = vmatmul.msk.bf16.gmra.mxu3 %vm1118_vm2, %v2545_v32  ;;  %v1707_v32 = vrot.slane %v1705_v20, 4  ;;  %v2546_v57 = vpack.c.b16 %v2522_v28, %v2521_v23  ;;  %v1713_v23 = vrot.slane %v1711_v53, 5  ;;  %v1725_v28 = vshll.u32 %v1476_v4, 16 }
  0xc2   : > { %v6703_v0 = vpop.f32.mrf.mxu2  ;;  %v6705_v1 = vpop.f32.mrf.mxu1  ;;  %v1704_v34 = vsel %vm6517_vm8, %v1699_v8, %v6716_v30  ;;  %v2133_v8 = vld [vmem:[#allocation2 + $0xa4] sm:$0xf] }
  0xc3   : > { %5941 = vmatmul.msk.bf16.gmra.mxu0 %vm1118_vm2, %v6128_v45  ;;  %v2129_v45 = vld [vmem:[#allocation2 + $0x90] sm:$0x8]  ;;  %v1708_v59 = vor.u32 %v1707_v32, %v6716_v30  ;;  %v6129_v32 = vld [vmem:[#allocation2 + $0x84] sm:$0xff]  ;;  %v6745_v30 = vrot.slane %v1725_v28, 5  ;;  %v1901_v4 = vunpack.c.l.b16 %v1704_v34  ;;  %v1735_v28 = vshll.u32 %v1477_v55, 16 }
  0xc4   : > { %v6714_v11 = vpop.f32.mrf.mxu3  ;;  %v2330_v9 = vshrl.u32 %v2129_v45, 16  ;;  %v659_v45 = vld [vmem:[#allocation2 + $0x90] sm:$0x8]  ;;  %v2357_v34 = vshrl.u32 %v2133_v8, 16 }
  0xc5   : > { %8195 = vst [vmem:[#allocation7_spill] sm:$0xff] %v6714_v11  ;;  %v1709_v22 = vrot.slane %v1708_v59, 4  ;;  %v882_v60 = vshrl.u32 %v659_v45, 16  ;;  %v2366_v11 = vshrl.u32 %v2134_v16, 16 }
  0xc6   : > { %v5845_v41 = vrot.slane %v2330_v9, 11 }
  0xc7   : > { %v1714_v54 = vsel %vm6517_vm8, %v1709_v22, %v1713_v23 }
  0xc8   : > { %v6718_v42 = vpop.f32.mrf.mxu0  ;;  %v2341_v10 = vsel %vm6499_vm7, %v5845_v41, %v2340_v39 }
  0xca   : > { %v6720_v49 = vpop.f32.mrf.mxu2  ;;  %v6722_v50 = vpop.f32.mrf.mxu1 }
  0xcc   : > { %v6725_v20 = vpop.f32.mrf.mxu3 }
  0xcd   : > { %8196 = vst [vmem:[#allocation8_spill] sm:$0xff] %v6725_v20  ;;  %5811 = vmatmul.msk.bf16.gmra.mxu1 %vm1118_vm2, %v1299_v47  ;;  %v2349_v47 = vor.u32 %v2347_v14, %v2346_v13  ;;  %v889_v13 = vrot.slane %v887_v43, 7  ;;  %v890_v14 = vshll.u32 %v660_v15, 16  ;;  %v2523_v20 = vunpack.c.l.b16 %v2341_v10  ;;  %v664_v10 = vld [vmem:[#allocation2 + $0xa8] sm:$0xf] }
  0xce   : > { %v5716_v15 = vrot.slane %v882_v60, 11  ;;  %v2368_v60 = vrot.slane %v2366_v11, 7 }
  0xcf   : > { %5828 = vmatmul.msk.bf16.gmra.mxu2 %vm1118_vm2, %v1924_v56  ;;  %v1721_v56 = vrot.slane %v1719_v19, 5  ;;  %v1902_v19 = vunpack.c.l.b16 %v1714_v54  ;;  %v2350_v22 = vsel %vm6499_vm7, %v2342_v44, %v2349_v47  ;;  %v892_v43 = vor.u32 %v890_v14, %v889_v13  ;;  %v1478_v54 = vld [vmem:[#allocation2 + $0xa4] sm:$0xf] }
  0xd0   : > { %v6733_v40 = vpop.f32.mrf.mxu0  ;;  %v2524_v39 = vunpack.c.l.b16 %v2350_v22  ;;  %v894_v45 = vrot.slane %v889_v13, 4  ;;  %v1737_v44 = vrot.slane %v1735_v28, 5  ;;  %v2352_v47 = vshrl.u32 %v2132_v27, 16 }
  0xd1   : > { %5861 = vmatmul.msk.bf16.gmra.mxu3 %vm1118_vm2, %v2546_v57  ;;  %v1276_v57 = vunpack.c.l.b16 %v871_v35  ;;  %v1722_v23 = vor.u32 %v1721_v56, %v1718_v48  ;;  %v1732_v35 = vor.u32 %v1731_v2, %v6745_v30  ;;  %v2360_v48 = vshll.u32 %v2133_v8, 16  ;;  %v663_v56 = vld [vmem:[#allocation2 + $0xa4] sm:$0xf] }
  0xd2   : > { %v6739_v59 = vpop.f32.mrf.mxu2  ;;  %v6741_v53 = vpop.f32.mrf.mxu1  ;;  %v1925_v55 = vpack.c.b16 %v1902_v19, %v1901_v4  ;;  %v2369_v14 = vshll.u32 %v2134_v16, 16  ;;  %v1740_v13 = vshrl.u32 %v1478_v54, 16  ;;  %v909_v28 = vshrl.u32 %v663_v56, 16  ;;  %v662_v19 = vld [vmem:[#allocation2 + $0xa0] sm:$0x8] }
  0xd3   : > { %5942 = vmatmul.msk.bf16.gmra.mxu0 %vm1118_vm2, %v6129_v32  ;;  %v899_v32 = vshll.u32 %v661_v36, 16  ;;  %v1723_v31 = vrot.slane %v1722_v23, 4  ;;  %v2547_v23 = vpack.c.b16 %v2524_v39, %v2523_v20  ;;  %v1743_v8 = vshll.u32 %v1478_v54, 16 }
  0xd4   : > { %v6748_v9 = vpop.f32.mrf.mxu3  ;;  %v893_v4 = vsel %vm6499_vm7, %v5716_v15, %v892_v43  ;;  %v5846_v16 = vrot.slane %v2352_v47, 11  ;;  %v2371_v39 = vor.u32 %v2369_v14, %v2368_v60  ;;  %v1742_v15 = vrot.slane %v1740_v13, 4  ;;  %v1480_v60 = vld [vmem:[#allocation2 + $0xac] sm:$0x1] }
  0xd5   : > { %8197 = vst [vmem:[#allocation9_spill] sm:$0xff] %v6748_v9  ;;  %v1300_v9 = vpack.c.b16 %v1277_v3, %v1276_v57  ;;  %v901_v2 = vor.u32 %v899_v32, %v898_v29  ;;  %v1733_v57 = vrot.slane %v1732_v35, 4  ;;  %v2359_v3 = vrot.slane %v2357_v34, 7 }
  0xd6   : > { %v918_v29 = vshrl.u32 %v664_v10, 16  ;;  %v1749_v32 = vshll.u32 %v1479_v46, 16  ;;  %v1753_v35 = vshrl.u32 %v1479_v46, 16  ;;  %v1728_v11 = vsel %vm6517_vm8, %v1723_v31, %v6745_v30 }
  0xd7   : > { %v1738_v20 = vsel %vm6517_vm8, %v1733_v57, %v1737_v44  ;;  %v2362_v27 = vor.u32 %v2360_v48, %v2359_v3  ;;  %v2364_v34 = vrot.slane %v2359_v3, 4  ;;  %v904_v46 = vshrl.u32 %v662_v19, 16 }
  0xd8   : > { %v6755_v41 = vpop.f32.mrf.mxu0  ;;  %v911_v54 = vrot.slane %v909_v28, 7  ;;  %v921_v31 = vshll.u32 %v664_v10, 16  ;;  %v6774_v30 = vrot.slane %v1749_v32, 5  ;;  %v1755_v44 = vrot.slane %v1753_v35, 4  ;;  %v2137_v28 = vld [vmem:[#allocation2 + $0xb8] sm:$0xf] }
  0xd9   : > { %v6776_v48 = vunpack.c.l.b16 %v1728_v11  ;;  %v1904_v3 = vunpack.c.l.b16 %v1738_v20  ;;  %v2363_v13 = vsel %vm6499_vm7, %v5846_v16, %v2362_v27  ;;  %v2372_v10 = vsel %vm6499_vm7, %v2364_v34, %v2371_v39  ;;  %v2135_v20 = vld [vmem:[#allocation2 + $0xb0] sm:$0x8] }
  0xda   : > { %v6757_v36 = vpop.f32.mrf.mxu2  ;;  %v1368_v61 = vpop.f32.mrf.mxu1  ;;  %v1756_v11 = vor.u32 %v1755_v44, %v6774_v30  ;;  %v2526_v16 = vunpack.c.l.b16 %v2372_v10  ;;  %v2391_v10 = vshll.u32 %v2137_v28, 16 }
  0xdb   : > { %v1369_v22 = vadd.f32 %v1368_v61, %v6621_v12  ;;  %v902_v12 = vsel %vm6499_vm7, %v894_v45, %v901_v2  ;;  %v912_v61 = vshll.u32 %v663_v56, 16  ;;  %v1745_v45 = vrot.slane %v1743_v8, 5 }
  0xdc   : > { %v6760_v6 = vpop.f32.mrf.mxu3  ;;  %v920_v2 = vrot.slane %v918_v29, 7  ;;  %v916_v29 = vrot.slane %v911_v54, 4 }
  0xdd   : > { %8198 = vst [vmem:[#allocation10_spill] sm:$0xff] %v6760_v6  ;;  %5812 = vmatmul.msk.bf16.gmra.mxu1 %vm1118_vm2, %v1300_v9  ;;  %v6130_v9 = vld [vmem:[#allocation2 + $0x94] sm:$0xff]  ;;  %v1279_v6 = vunpack.c.l.b16 %v902_v12  ;;  %v914_v19 = vor.u32 %v912_v61, %v911_v54  ;;  %v1746_v32 = vor.u32 %v1745_v45, %v1742_v15  ;;  %v1757_v61 = vrot.slane %v1756_v11, 4 }
  0xde   : > { %v923_v12 = vor.u32 %v921_v31, %v920_v2  ;;  %v2374_v2 = vshrl.u32 %v2135_v20, 16  ;;  %v1481_v31 = vld [vmem:[#allocation2 + $0xb4] sm:$0xf] }
  0xdf   : > { %5829 = vmatmul.msk.bf16.gmra.mxu2 %vm1118_vm2, %v1925_v55  ;;  %v1278_v55 = vunpack.c.l.b16 %v893_v4  ;;  %v5717_v4 = vrot.slane %v904_v46, 11  ;;  %v1747_v15 = vrot.slane %v1746_v32, 4  ;;  %v6796_v32 = vld [vmem:[#allocation2 + $0xb4] sm:$0xf] }
  0xe0   : > { %v2869_v43 = vpop.f32.mrf.mxu0  ;;  %v924_v54 = vsel %vm6499_vm7, %v916_v29, %v923_v12  ;;  %v1767_v12 = vshll.u32 %v1481_v31, 16 }
  0xe1   : > { %5862 = vmatmul.msk.bf16.gmra.mxu3 %vm1118_vm2, %v2547_v23  ;;  %v2136_v23 = vld [vmem:[#allocation2 + $0xb4] sm:$0xf]  ;;  %v1301_v39 = vpack.c.b16 %v1279_v6, %v1278_v55  ;;  %v915_v46 = vsel %vm6499_vm7, %v5717_v4, %v914_v19  ;;  %v1482_v6 = vld [vmem:[#allocation2 + $0xb8] sm:$0xf]  ;;  %v1281_v19 = vunpack.c.l.b16 %v924_v54  ;;  %v1752_v29 = vsel %vm6517_vm8, %v1747_v15, %v6774_v30  ;;  %v6131_v30 = vld [vmem:[#allocation2 + $0xa4] sm:$0xff] }
  0xe2   : > { %v1993_v47 = vpop.f32.mrf.mxu2  ;;  %v1370_v57 = vpop.f32.mrf.mxu1  ;;  %v2139_v15 = vld [vmem:[#allocation2 + $0xc4] sm:$0xf] }
  0xe3   : > { %5943 = vmatmul.msk.bf16.gmra.mxu0 %vm1118_vm2, %v6130_v9  ;;  %v2073_v14 = vadd.f32 %v1993_v47, %v1369_v22  ;;  %v1371_v56 = vadd.f32 %v1370_v57, %v6644_v51  ;;  %v1759_v22 = vshll.u32 %v1480_v60, 16  ;;  %v2379_v51 = vshrl.u32 %v2136_v23, 16 }
  0xe4   : > { %v2615_v8 = vpop.f32.mrf.mxu3  ;;  %v2388_v9 = vshrl.u32 %v2137_v28, 16  ;;  %v2525_v47 = vunpack.c.l.b16 %v2363_v13  ;;  %v1926_v57 = vpack.c.b16 %v1904_v3, %v6776_v48  ;;  %v667_v28 = vld [vmem:[#allocation2 + $0xb8] sm:$0xf] }
  0xe5   : > { %v2695_v35 = vadd.f32 %v2615_v8, %v2073_v14  ;;  %v1761_v45 = vrot.slane %v1759_v22, 5  ;;  %v2381_v14 = vrot.slane %v2379_v51, 7  ;;  %v1280_v8 = vunpack.c.l.b16 %v915_v46 }
  0xe6   : > { %v2390_v13 = vrot.slane %v2388_v9, 7  ;;  %v2548_v3 = vpack.c.b16 %v2526_v16, %v2525_v47  ;;  %v1777_v22 = vshrl.u32 %v1482_v6, 16  ;;  %v6802_v47 = vunpack.c.l.b16 %v1752_v29  ;;  %v665_v16 = vld [vmem:[#allocation2 + $0xb0] sm:$0x8] }
  0xe7   : > { %v6785_v27 = vadd.f32 %v2869_v43, %v2695_v35  ;;  %v2382_v43 = vshll.u32 %v2136_v23, 16  ;;  %v1764_v35 = vshrl.u32 %v1481_v31, 16  ;;  %v5847_v23 = vrot.slane %v2374_v2, 11 }
  0xe8   : > { %v2871_v34 = vpop.f32.mrf.mxu0  ;;  %v2386_v51 = vrot.slane %v2381_v14, 4  ;;  %v2393_v9 = vor.u32 %v2391_v10, %v2390_v13  ;;  %v931_v46 = vshrl.u32 %v6796_v32, 16  ;;  %v940_v54 = vshrl.u32 %v667_v28, 16 }
  0xe9   : > { %8199 = vst [vmem:[#allocation11_spill] sm:$0xff] %v6785_v27  ;;  %v2384_v20 = vor.u32 %v2382_v43, %v2381_v14  ;;  %v1766_v2 = vrot.slane %v1764_v35, 4  ;;  %v1769_v31 = vrot.slane %v1767_v12, 5  ;;  %v1779_v14 = vrot.slane %v1777_v22, 4 }
  0xea   : > { %v1995_v44 = vpop.f32.mrf.mxu2  ;;  %v1373_v60 = vpop.f32.mrf.mxu1  ;;  %v2401_v29 = vshrl.u32 %v2139_v15, 16  ;;  %v943_v22 = vshll.u32 %v667_v28, 16 }
  0xeb   : > { %v2074_v55 = vadd.f32 %v1995_v44, %v1371_v56  ;;  %v1374_v48 = vadd.f32 %v1373_v60, %v6659_v26  ;;  %v1773_v56 = vshll.u32 %v1482_v6, 16  ;;  %v1762_v26 = vsel %vm6517_vm8, %v1757_v61, %v1761_v45  ;;  %v2140_v44 = vld [vmem:[#allocation2 + $0xc8] sm:$0xf] }
  0xec   : > { %v2617_v4 = vpop.f32.mrf.mxu3  ;;  %v6808_v61 = vpack.c.b16 %v1281_v19, %v1280_v8  ;;  %v6810_v45 = vunpack.c.l.b16 %v1762_v26  ;;  %v2385_v10 = vsel %vm6499_vm7, %v5847_v23, %v2384_v20  ;;  %v2394_v6 = vsel %vm6499_vm7, %v2386_v51, %v2393_v9 }
  0xed   : > { %v2696_v11 = vadd.f32 %v2617_v4, %v2074_v55  ;;  %5813 = vmatmul.msk.bf16.gmra.mxu1 %vm1118_vm2, %v1301_v39  ;;  %v926_v55 = vshrl.u32 %v665_v16, 16  ;;  %v2138_v4 = vld [vmem:[#allocation2 + $0xc0] sm:$0x8]  ;;  %v933_v19 = vrot.slane %v931_v46, 7  ;;  %v2410_v35 = vshrl.u32 %v2140_v44, 16 }
  0xee   : > { %v1770_v23 = vor.u32 %v1769_v31, %v1766_v2  ;;  %v2396_v9 = vshrl.u32 %v2138_v4, 16  ;;  %v2527_v16 = vunpack.c.l.b16 %v2385_v10  ;;  %v2403_v27 = vrot.slane %v2401_v29, 7  ;;  %v1484_v46 = vld [vmem:[#allocation2 + $0xc4] sm:$0xf]  ;;  %v1485_v4 = vld [vmem:[#allocation2 + $0xc8] sm:$0xf] }
  0xef   : > { %5830 = vmatmul.msk.bf16.gmra.mxu2 %vm1118_vm2, %v1926_v57  ;;  %v6805_v60 = vadd.f32 %v2871_v34, %v2696_v11  ;;  %v6812_v57 = vrot.slane %v1773_v56, 5  ;;  %v1483_v34 = vld [vmem:[#allocation2 + $0xbc] sm:$0x1]  ;;  %v934_v11 = vshll.u32 %v6796_v32, 16  ;;  %v942_v56 = vrot.slane %v940_v54, 7 }
  0xf0   : > { %v2874_v39 = vpop.f32.mrf.mxu0  ;;  %v1783_v51 = vshll.u32 %v1483_v34, 16  ;;  %v938_v54 = vrot.slane %v933_v19, 4  ;;  %v1771_v2 = vrot.slane %v1770_v23, 4  ;;  %v669_v31 = vld [vmem:[#allocation2 + $0xc4] sm:$0xf] }
  0xf1   : > { %8200 = vst [vmem:[#allocation12_spill] sm:$0xff] %v6805_v60  ;;  %5863 = vmatmul.msk.bf16.gmra.mxu3 %vm1118_vm2, %v2548_v3  ;;  %v1780_v20 = vor.u32 %v1779_v14, %v6812_v57  ;;  %v2528_v60 = vunpack.c.l.b16 %v2394_v6  ;;  %v936_v32 = vor.u32 %v934_v11, %v933_v19  ;;  %v945_v28 = vor.u32 %v943_v22, %v942_v56 }
  0xf2   : > { %v1998_v43 = vpop.f32.mrf.mxu2  ;;  %v1375_v13 = vpop.f32.mrf.mxu1  ;;  %v1927_v14 = vpack.c.b16 %v6810_v45, %v6802_v47  ;;  %v1785_v10 = vrot.slane %v1783_v51, 5  ;;  %v5848_v6 = vrot.slane %v2396_v9, 11  ;;  %v953_v56 = vshrl.u32 %v669_v31, 16 }
  0xf3   : > { %5944 = vmatmul.msk.bf16.gmra.mxu0 %vm1118_vm2, %v6131_v30  ;;  %v2075_v3 = vadd.f32 %v1998_v43, %v1374_v48  ;;  %v1376_v8 = vadd.f32 %v1375_v13, %v6682_v5  ;;  %v2404_v30 = vshll.u32 %v2139_v15, 16  ;;  %v5718_v48 = vrot.slane %v926_v55, 11 }
  0xf4   : > { %v2620_v12 = vpop.f32.mrf.mxu3  ;;  %v2412_v43 = vrot.slane %v2410_v35, 7  ;;  %v2413_v5 = vshll.u32 %v2140_v44, 16  ;;  %v1781_v34 = vrot.slane %v1780_v20, 4  ;;  %v2408_v44 = vrot.slane %v2403_v27, 4 }
  0xf5   : > { %v2697_v26 = vadd.f32 %v2620_v12, %v2075_v3  ;;  %v2406_v29 = vor.u32 %v2404_v30, %v2403_v27  ;;  %v670_v3 = vld [vmem:[#allocation2 + $0xc8] sm:$0xf]  ;;  %v1791_v35 = vshll.u32 %v1484_v46, 16  ;;  %v2549_v23 = vpack.c.b16 %v2528_v60, %v2527_v16 }
  0xf6   : > { %v2415_v11 = vor.u32 %v2413_v5, %v2412_v43  ;;  %v937_v47 = vsel %vm6499_vm7, %v5718_v48, %v936_v32  ;;  %v946_v45 = vsel %vm6499_vm7, %v938_v54, %v945_v28  ;;  %v1776_v27 = vsel %vm6517_vm8, %v1771_v2, %v6812_v57  ;;  %v6132_v48 = vld [vmem:[#allocation2 + $0xb4] sm:$0xff] }
  0xf7   : > { %v6822_v13 = vadd.f32 %v2874_v39, %v2697_v26  ;;  %v1788_v39 = vshrl.u32 %v1484_v46, 16  ;;  %v668_v26 = vld [vmem:[#allocation2 + $0xc0] sm:$0x8]  ;;  %v1801_v51 = vshrl.u32 %v1485_v4, 16  ;;  %v1786_v60 = vsel %vm6517_vm8, %v1781_v34, %v1785_v10 }
  0xf8   : > { %v2876_v33 = vpop.f32.mrf.mxu0  ;;  %v2407_v9 = vsel %vm6499_vm7, %v5848_v6, %v2406_v29  ;;  %v1793_v30 = vrot.slane %v1791_v35, 5  ;;  %v2416_v57 = vsel %vm6499_vm7, %v2408_v44, %v2415_v11  ;;  %v948_v43 = vshrl.u32 %v668_v26, 16  ;;  %v1486_v11 = vld [vmem:[#allocation2 + $0xcc] sm:$0x1]  ;;  %v1487_v26 = vld [vmem:[#allocation2 + $0xd4] sm:$0xf] }
  0xf9   : > { %8201 = vst [vmem:[#allocation13_spill] sm:$0xff] %v6822_v13  ;;  %v1790_v16 = vrot.slane %v1788_v39, 4  ;;  %v955_v5 = vrot.slane %v953_v56, 7  ;;  %v1282_v32 = vunpack.c.l.b16 %v937_v47  ;;  %v1283_v54 = vunpack.c.l.b16 %v946_v45 }
  0xfa   : > { %v2000_v15 = vpop.f32.mrf.mxu2  ;;  %v1378_v55 = vpop.f32.mrf.mxu1  ;;  %v6843_v28 = vunpack.c.l.b16 %v1776_v27  ;;  %v965_v10 = vshll.u32 %v670_v3, 16  ;;  %v2529_v29 = vunpack.c.l.b16 %v2407_v9  ;;  %v5719_v35 = vrot.slane %v948_v43, 11  ;;  %v2143_v27 = vld [vmem:[#allocation2 + $0xd8] sm:$0xf] }
  0xfb   : > { %v2076_v12 = vadd.f32 %v2000_v15, %v1376_v8  ;;  %v1379_v19 = vadd.f32 %v1378_v55, %v6693_v52  ;;  %v962_v52 = vshrl.u32 %v670_v3, 16  ;;  %v1797_v8 = vshll.u32 %v1485_v4, 16  ;;  %v2142_v3 = vld [vmem:[#allocation2 + $0xd4] sm:$0xf] }
  0xfc   : > { %v2622_v22 = vpop.f32.mrf.mxu3  ;;  %v6850_v55 = vunpack.c.l.b16 %v1786_v60  ;;  %v1794_v44 = vor.u32 %v1793_v30, %v1790_v16  ;;  %v673_v16 = vld [vmem:[#allocation2 + $0xd8] sm:$0xf]  ;;  %v2423_v43 = vshrl.u32 %v2142_v3, 16 }
  0xfd   : > { %v2698_v20 = vadd.f32 %v2622_v22, %v2076_v12  ;;  %5814 = vmatmul.msk.bf16.gmra.mxu1 %vm1118_vm2, %v6808_v61  ;;  %v956_v61 = vshll.u32 %v669_v31, 16  ;;  %v964_v34 = vrot.slane %v962_v52, 7  ;;  %v6848_v6 = vrot.slane %v1797_v8, 5  ;;  %v1488_v30 = vld [vmem:[#allocation2 + $0xd8] sm:$0xf] }
  0xfe   : > { %v2530_v31 = vunpack.c.l.b16 %v2416_v57  ;;  %v1928_v52 = vpack.c.b16 %v6850_v55, %v6843_v28  ;;  %v1807_v8 = vshll.u32 %v1486_v11, 16  ;;  %v6859_v9 = vrot.slane %v1794_v44, 4  ;;  %v671_v55 = vld [vmem:[#allocation2 + $0xd0] sm:$0x8] }
  0xff   : > { %5831 = vmatmul.msk.bf16.gmra.mxu2 %vm1118_vm2, %v1927_v14  ;;  %v6845_v2 = vadd.f32 %v2876_v33, %v2698_v20  ;;  %v1803_v14 = vrot.slane %v1801_v51, 4  ;;  %v958_v12 = vor.u32 %v956_v61, %v955_v5  ;;  %v967_v47 = vor.u32 %v965_v10, %v964_v34  ;;  %v672_v51 = vld [vmem:[#allocation2 + $0xd4] sm:$0xf] }
 0x100   : > { %v2879_v46 = vpop.f32.mrf.mxu0  ;;  %v1303_v20 = vpack.c.b16 %v1283_v54, %v1282_v32  ;;  %v1812_v61 = vshrl.u32 %v1487_v26, 16  ;;  %v1815_v32 = vshll.u32 %v1487_v26, 16  ;;  %v975_v10 = vshrl.u32 %v672_v51, 16 }
 0x101   : > { %8202 = vst [vmem:[#allocation14_spill] sm:$0xff] %v6845_v2  ;;  %5864 = vmatmul.msk.bf16.gmra.mxu3 %vm1118_vm2, %v2549_v23  ;;  %v960_v23 = vrot.slane %v955_v5, 4  ;;  %v1804_v45 = vor.u32 %v1803_v14, %v6848_v6  ;;  %v959_v60 = vsel %vm6499_vm7, %v5719_v35, %v958_v12  ;;  %v2432_v5 = vshrl.u32 %v2143_v27, 16 }
 0x102   : > { %v2003_v4 = vpop.f32.mrf.mxu2  ;;  %v1380_v15 = vpop.f32.mrf.mxu1  ;;  %v2426_v35 = vshll.u32 %v2142_v3, 16  ;;  %v2435_v12 = vshll.u32 %v2143_v27, 16  ;;  %v970_v26 = vshrl.u32 %v671_v55, 16  ;;  %v987_v2 = vshll.u32 %v673_v16, 16 }
 0x103   : > { %5945 = vmatmul.msk.bf16.gmra.mxu0 %vm1118_vm2, %v6132_v48  ;;  %v2077_v39 = vadd.f32 %v2003_v4, %v1379_v19  ;;  %v1381_v33 = vadd.f32 %v1380_v15, %v6718_v42  ;;  %v2141_v19 = vld [vmem:[#allocation2 + $0xd0] sm:$0x8]  ;;  %v2550_v42 = vpack.c.b16 %v2530_v31, %v2529_v29  ;;  %v6865_v54 = vsel %vm6499_vm7, %v960_v23, %v967_v47 }
 0x104   : > { %v2625_v56 = vpop.f32.mrf.mxu3  ;;  %v1805_v28 = vrot.slane %v1804_v45, 4  ;;  %v2418_v34 = vshrl.u32 %v2141_v19, 16  ;;  %v1809_v15 = vrot.slane %v1807_v8, 5  ;;  %v984_v29 = vshrl.u32 %v673_v16, 16 }
 0x105   : > { %v2699_v22 = vadd.f32 %v2625_v56, %v2077_v39  ;;  %v1821_v31 = vshll.u32 %v1488_v30, 16  ;;  %v2425_v56 = vrot.slane %v2423_v43, 7  ;;  %v1814_v23 = vrot.slane %v1812_v61, 4  ;;  %v1489_v43 = vld [vmem:[#allocation2 + $0xdc] sm:$0x1] }
 0x106   : > { %v1817_v47 = vrot.slane %v1815_v32, 5  ;;  %v977_v19 = vrot.slane %v975_v10, 7  ;;  %v978_v8 = vshll.u32 %v672_v51, 16  ;;  %v1284_v3 = vunpack.c.l.b16 %v959_v60 }
 0x107   : > { %v6861_v48 = vadd.f32 %v2879_v46, %v2699_v22  ;;  %v1825_v46 = vshrl.u32 %v1488_v30, 16  ;;  %v2434_v22 = vrot.slane %v2432_v5, 7  ;;  %v6869_v13 = vrot.slane %v1821_v31, 5 }
 0x108   : > { %v2881_v57 = vpop.f32.mrf.mxu0  ;;  %v1285_v27 = vunpack.c.l.b16 %v6865_v54  ;;  %v1800_v30 = vsel %vm6517_vm8, %v6859_v9, %v6848_v6  ;;  %v1810_v51 = vsel %vm6517_vm8, %v1805_v28, %v1809_v15  ;;  %v2428_v16 = vor.u32 %v2426_v35, %v2425_v56 }
 0x109   : > { %8203 = vst [vmem:[#allocation15_spill] sm:$0xff] %v6861_v48  ;;  %v986_v48 = vrot.slane %v984_v29, 7  ;;  %v2430_v61 = vrot.slane %v2425_v56, 4  ;;  %v5720_v60 = vrot.slane %v970_v26, 11  ;;  %v980_v54 = vor.u32 %v978_v8, %v977_v19 }
 0x10a   : > { %v2005_v14 = vpop.f32.mrf.mxu2  ;;  %v1383_v4 = vpop.f32.mrf.mxu1  ;;  %v1818_v10 = vor.u32 %v1817_v47, %v1814_v23  ;;  %v982_v55 = vrot.slane %v977_v19, 4  ;;  %v1910_v29 = vunpack.c.l.b16 %v1810_v51  ;;  %v1490_v23 = vld [vmem:[#allocation2 + $0xe4] sm:$0xf]  ;;  %v1491_v19 = vld [vmem:[#allocation2 + $0xe8] sm:$0xf] }
 0x10b   : > { %v2078_v44 = vadd.f32 %v2005_v14, %v1381_v33  ;;  %v1384_v39 = vadd.f32 %v1383_v4, %v6733_v40  ;;  %v1827_v33 = vrot.slane %v1825_v46, 4  ;;  %v6133_v40 = vld [vmem:[#allocation2 + $0xc4] sm:$0xff]  ;;  %v989_v6 = vor.u32 %v987_v2, %v986_v48 }
 0x10c   : > { %v2627_v11 = vpop.f32.mrf.mxu3  ;;  %v2145_v46 = vld [vmem:[#allocation2 + $0xe4] sm:$0xf]  ;;  %v981_v48 = vsel %vm6499_vm7, %v5720_v60, %v980_v54 }
 0x10d   : > { %v2700_v45 = vadd.f32 %v2627_v11, %v2078_v44  ;;  %5815 = vmatmul.msk.bf16.gmra.mxu1 %vm1118_vm2, %v1303_v20  ;;  %v5849_v20 = vrot.slane %v2418_v34, 11  ;;  %v1828_v9 = vor.u32 %v1827_v33, %v6869_v13  ;;  %v1831_v34 = vshll.u32 %v1489_v43, 16  ;;  %v2146_v44 = vld [vmem:[#allocation2 + $0xe8] sm:$0xf]  ;;  %v2144_v11 = vld [vmem:[#allocation2 + $0xe0] sm:$0x8] }
 0x10e   : > { %v2454_v26 = vshrl.u32 %v2146_v44, 16  ;;  %v2440_v43 = vshrl.u32 %v2144_v11, 16 }
 0x10f   : > { %5832 = vmatmul.msk.bf16.gmra.mxu2 %vm1118_vm2, %v1928_v52  ;;  %v6879_v32 = vadd.f32 %v2881_v57, %v2700_v45  ;;  %v2437_v52 = vor.u32 %v2435_v12, %v2434_v22  ;;  %v1909_v57 = vunpack.c.l.b16 %v1800_v30  ;;  %v1819_v12 = vrot.slane %v1818_v10, 4 }
 0x110   : > { %v2884_v5 = vpop.f32.mrf.mxu0  ;;  %v1829_v56 = vrot.slane %v1828_v9, 4  ;;  %v1833_v22 = vrot.slane %v1831_v34, 5  ;;  %v2445_v45 = vshrl.u32 %v2145_v46, 16  ;;  %v2448_v10 = vshll.u32 %v2145_v46, 16 }
 0x111   : > { %5865 = vmatmul.msk.bf16.gmra.mxu3 %vm1118_vm2, %v2550_v42  ;;  %v2429_v42 = vsel %vm6499_vm7, %v5849_v20, %v2428_v16  ;;  %v2438_v2 = vsel %vm6499_vm7, %v2430_v61, %v2437_v52  ;;  %v1929_v47 = vpack.c.b16 %v1910_v29, %v1909_v57  ;;  %v1286_v20 = vunpack.c.l.b16 %v981_v48  ;;  %v6902_v16 = vld [vmem:[#allocation2 + $0xe8] sm:$0xf]  ;;  %v674_v29 = vld [vmem:[#allocation2 + $0xe0] sm:$0x8]  ;;  %v565_v48 = vld [vmem:[%s6334_s18 + $0xf0] sm:$0xff] }
 0x112   : > { %v2008_v14 = vpop.f32.mrf.mxu2  ;;  %v1385_v4 = vpop.f32.mrf.mxu1  ;;  %v2532_v30 = vunpack.c.l.b16 %v2438_v2  ;;  %v1836_v61 = vshrl.u32 %v1490_v23, 16  ;;  %v1839_v52 = vshll.u32 %v1490_v23, 16  ;;  %v1834_v54 = vsel %vm6517_vm8, %v1829_v56, %v1833_v22  ;;  %v566_v22 = vld [vmem:[%s6334_s18 + $0xf8] sm:$0xff] }
 0x113   : > { %5946 = vmatmul.msk.bf16.gmra.mxu0 %vm1118_vm2, %v6133_v40  ;;  %v2079_v28 = vadd.f32 %v2008_v14, %v1384_v39  ;;  %v1386_v15 = vadd.f32 %v1385_v4, %v6755_v41  ;;  %v1304_v39 = vpack.c.b16 %v1285_v27, %v1284_v3  ;;  %v990_v41 = vsel %vm6499_vm7, %v982_v55, %v989_v6  ;;  %v6900_v27 = vld [vmem:[#allocation2 + $0xe4] sm:$0xf] }
 0x114   : > { %v2630_v31 = vpop.f32.mrf.mxu3  ;;  %v2531_v40 = vunpack.c.l.b16 %v2429_v42  ;;  %v1287_v51 = vunpack.c.l.b16 %v990_v41  ;;  %v1824_v3 = vsel %vm6517_vm8, %v1819_v12, %v6869_v13  ;;  %v1845_v14 = vshll.u32 %v1491_v19, 16  ;;  %v6134_v12 = vld [vmem:[#allocation2 + $0xd4] sm:$0xff] }
 0x115   : > { %v2701_v35 = vadd.f32 %v2630_v31, %v2079_v28  ;;  %v1849_v4 = vshrl.u32 %v1491_v19, 16  ;;  %v2447_v6 = vrot.slane %v2445_v45, 7  ;;  %v2456_v9 = vrot.slane %v2454_v26, 7  ;;  %v1492_v19 = vld [vmem:[#allocation2 + $0xec] sm:$0x1] }
 0x116   : > { %v2457_v34 = vshll.u32 %v2146_v44, 16  ;;  %v2551_v28 = vpack.c.b16 %v2532_v30, %v2531_v40  ;;  %v6906_v57 = vunpack.c.l.b16 %v1824_v3  ;;  %v997_v31 = vshrl.u32 %v6900_v27, 16  ;;  %v2148_v40 = vld [vmem:[#allocation2 + $0xf4] sm:$0xf] }
 0x117   : > { %v6893_v8 = vadd.f32 %v2884_v5, %v2701_v35  ;;  %v1006_v42 = vshrl.u32 %v6902_v16, 16  ;;  %v6911_v46 = vrot.slane %v2440_v43, 11  ;;  %v1838_v2 = vrot.slane %v1836_v61, 4 }
 0x118   : > { %v6895_v33 = vpop.f32.mrf.mxu0  ;;  %v6914_v44 = vpack.c.b16 %v1287_v51, %v1286_v20  ;;  %v6916_v11 = vunpack.c.l.b16 %v1834_v54  ;;  %v6918_v41 = vrot.slane %v1845_v14, 5  ;;  %v1851_v56 = vrot.slane %v1849_v4, 4  ;;  %v2149_v51 = vld [vmem:[#allocation2 + $0xf8] sm:$0xf] }
 0x119   : > { %v2450_v23 = vor.u32 %v2448_v10, %v2447_v6  ;;  %v2452_v45 = vrot.slane %v2447_v6, 4  ;;  %v2459_v26 = vor.u32 %v2457_v34, %v2456_v9  ;;  %v999_v43 = vrot.slane %v997_v31, 7  ;;  %v2147_v6 = vld [vmem:[#allocation2 + $0xf0] sm:$0x8] }
 0x11a   : > { %v2010_v60 = vpop.f32.mrf.mxu2  ;;  %v1388_v5 = vpop.f32.mrf.mxu1  ;;  %v1000_v3 = vshll.u32 %v6900_v27, 16  ;;  %v1008_v20 = vrot.slane %v1006_v42, 7  ;;  %v597_v61 = vpack.c.bf16 %v565_v48, %v565_v48  ;;  %v598_v54 = vpack.c.bf16 %v566_v22, %v566_v22 }
 0x11b   : > { %v2080_v55 = vadd.f32 %v2010_v60, %v1386_v15  ;;  %v1841_v15 = vrot.slane %v1839_v52, 5  ;;  %v1389_v52 = vadd.f32 %v1388_v5, %v6617_v58  ;;  %v1009_v60 = vshll.u32 %v6902_v16, 16 }
 0x11c   : > { %v2632_v13 = vpop.f32.mrf.mxu3  ;;  %v1852_v4 = vor.u32 %v1851_v56, %v6918_v41  ;;  %v2467_v9 = vshrl.u32 %v2148_v40, 16  ;;  %630 = vst.msk [vmem:[#allocation2 + $0x104] sm:$0xf] %vm473_vm1, %v597_v61  ;;  %v1930_v16 = vpack.c.b16 %v6916_v11, %v6906_v57  ;;  %v2451_v5 = vsel %vm6499_vm7, %v6911_v46, %v2450_v23  ;;  %v678_v57 = vld [vmem:[#allocation2 + $0xf4] sm:$0xf] }
 0x11d   : > { %v2702_v35 = vadd.f32 %v2632_v13, %v2080_v55  ;;  %5816 = vmatmul.msk.bf16.gmra.mxu1 %vm1118_vm2, %v1304_v39  ;;  %v992_v39 = vshrl.u32 %v674_v29, 16  ;;  %v1855_v55 = vshll.u32 %v1492_v19, 16  ;;  %v2476_v34 = vshrl.u32 %v2149_v51, 16  ;;  %631 = vst.msk [vmem:[#allocation2 + $0x108] sm:$0xf] %vm473_vm1, %v598_v54 }
 0x11e   : > { %v1002_v31 = vor.u32 %v1000_v3, %v999_v43  ;;  %v1004_v42 = vrot.slane %v999_v43, 4  ;;  %v2462_v48 = vshrl.u32 %v2147_v6, 16  ;;  %v2469_v56 = vrot.slane %v2467_v9, 7  ;;  %v679_v19 = vld [vmem:[#allocation2 + $0xf8] sm:$0xf] }
 0x11f   : > { %5833 = vmatmul.msk.bf16.gmra.mxu2 %vm1118_vm2, %v1929_v47  ;;  %v1842_v47 = vor.u32 %v1841_v15, %v1838_v2  ;;  %v6929_v27 = vadd.f32 %v6895_v33, %v2702_v35  ;;  %v5721_v29 = vrot.slane %v992_v39, 11  ;;  %v1493_v33 = vld [vmem:[#allocation2 + $0xf4] sm:$0xf]  ;;  %v1011_v2 = vor.u32 %v1009_v60, %v1008_v20 }
 0x120   : > { %v2889_v30 = vpop.f32.mrf.mxu0  ;;  %v1857_v11 = vrot.slane %v1855_v55, 5  ;;  %v2470_v46 = vshll.u32 %v2148_v40, 16  ;;  %v2478_v22 = vrot.slane %v2476_v34, 7  ;;  %v2479_v23 = vshll.u32 %v2149_v51, 16  ;;  %v677_v51 = vld [vmem:[#allocation2 + $0xf0] sm:$0x8] }
 0x121   : > { %5866 = vmatmul.msk.bf16.gmra.mxu3 %vm1118_vm2, %v2551_v28  ;;  %v2460_v28 = vsel %vm6499_vm7, %v2452_v45, %v2459_v26  ;;  %v1843_v15 = vrot.slane %v1842_v47, 4  ;;  %v1860_v61 = vshrl.u32 %v1493_v33, 16  ;;  %v2533_v39 = vunpack.c.l.b16 %v2451_v5 }
 0x122   : > { %v2013_v10 = vpop.f32.mrf.mxu2  ;;  %v1390_v14 = vpop.f32.mrf.mxu1  ;;  %v2534_v43 = vunpack.c.l.b16 %v2460_v28  ;;  %v1019_v3 = vshrl.u32 %v678_v57, 16  ;;  %v1003_v60 = vsel %vm6499_vm7, %v5721_v29, %v1002_v31  ;;  %v1012_v47 = vsel %vm6499_vm7, %v1004_v42, %v1011_v2 }
 0x123   : > { %5947 = vmatmul.msk.bf16.gmra.mxu0 %vm1118_vm2, %v6134_v12  ;;  %v2081_v58 = vadd.f32 %v2013_v10, %v1389_v52  ;;  %v1853_v12 = vrot.slane %v1852_v4, 4  ;;  %v1863_v52 = vshll.u32 %v1493_v33, 16  ;;  %v1391_v20 = vadd.f32 %v1390_v14, %v6635_v25 }
 0x124   : > { %v2635_v13 = vpop.f32.mrf.mxu3  ;;  %v1848_v40 = vsel %vm6517_vm8, %v1843_v15, %v6918_v41  ;;  %v5851_v4 = vrot.slane %v2462_v48, 11  ;;  %v2472_v55 = vor.u32 %v2470_v46, %v2469_v56  ;;  %v1028_v6 = vshrl.u32 %v679_v19, 16 }
 0x125   : > { %v2703_v35 = vadd.f32 %v2635_v13, %v2081_v58  ;;  %v1858_v10 = vsel %vm6517_vm8, %v1853_v12, %v1857_v11  ;;  %v2474_v14 = vrot.slane %v2469_v56, 4  ;;  %v2481_v9 = vor.u32 %v2479_v23, %v2478_v22  ;;  %v1494_v58 = vld [vmem:[#allocation2 + $0xf8] sm:$0xf]  ;;  %v6135_v11 = vld [vmem:[#allocation2 + $0xe4] sm:$0xff] }
 0x126   : > { %v1862_v5 = vrot.slane %v1860_v61, 4  ;;  %v1014_v13 = vshrl.u32 %v677_v51, 16  ;;  %v1021_v28 = vrot.slane %v1019_v3, 7  ;;  %v1022_v29 = vshll.u32 %v678_v57, 16  ;;  %v1495_v3 = vld [vmem:[#allocation2 + $0xfc] sm:$0x1] }
 0x127   : > { %v6940_v45 = vadd.f32 %v2889_v30, %v2703_v35  ;;  %v1865_v31 = vrot.slane %v1863_v52, 5  ;;  %v2552_v42 = vpack.c.b16 %v2534_v43, %v2533_v39  ;;  %v1288_v33 = vunpack.c.l.b16 %v1003_v60 }
 0x128   : > { %v2891_v26 = vpop.f32.mrf.mxu0  ;;  %v1289_v35 = vunpack.c.l.b16 %v1012_v47  ;;  %v1030_v2 = vrot.slane %v1028_v6, 7  ;;  %v1031_v15 = vshll.u32 %v679_v19, 16  ;;  %v1869_v48 = vshll.u32 %v1494_v58, 16  ;;  %v2982_v6 = vld [vmem:[#allocation2 + $0x18] sm:$0xf] }
 0x129   : > { %v1873_v12 = vshrl.u32 %v1494_v58, 16  ;;  %v6955_v56 = vunpack.c.l.b16 %v1848_v40  ;;  %v6957_v46 = vunpack.c.l.b16 %v1858_v10  ;;  %v2473_v57 = vsel %vm6499_vm7, %v5851_v4, %v2472_v55  ;;  %v2981_v55 = vld [vmem:[#allocation2 + $0x14] sm:$0xf]  ;;  %v2150_v58 = vld [vmem:[#allocation2 + $0x100] sm:$0x8] }
 0x12a   : > { %v2015_v30 = vpop.f32.mrf.mxu2  ;;  %v1393_v54 = vpop.f32.mrf.mxu1  ;;  %v5722_v23 = vrot.slane %v1014_v13, 11  ;;  %v1024_v61 = vor.u32 %v1022_v29, %v1021_v28  ;;  %v1866_v39 = vor.u32 %v1865_v31, %v1862_v5  ;;  %v1026_v60 = vrot.slane %v1021_v28, 4 }
 0x12b   : > { %v2082_v25 = vadd.f32 %v2015_v30, %v1391_v20  ;;  %v1394_v43 = vadd.f32 %v1393_v54, %v6650_v63  ;;  %v1033_v47 = vor.u32 %v1031_v15, %v1030_v2  ;;  %v1871_v40 = vrot.slane %v1869_v48, 5  ;;  %v2151_v30 = vld [vmem:[#allocation2 + $0x104] sm:$0xf]  ;;  %v2152_v54 = vld [vmem:[#allocation2 + $0x108] sm:$0xf] }
 0x12c   : > { %v2637_v34 = vpop.f32.mrf.mxu3  ;;  %v1875_v51 = vrot.slane %v1873_v12, 4  ;;  %v2535_v4 = vunpack.c.l.b16 %v2473_v57  ;;  %v3030_v5 = vshrl.u32 %v2981_v55, 16  ;;  %v2489_v28 = vshrl.u32 %v2151_v30, 16 }
 0x12d   : > { %v2704_v41 = vadd.f32 %v2637_v34, %v2082_v25  ;;  %5817 = vmatmul.msk.bf16.gmra.mxu1 %vm1118_vm2, %v6914_v44  ;;  %v2482_v44 = vsel %vm6499_vm7, %v2474_v14, %v2481_v9  ;;  %v1025_v14 = vsel %vm6499_vm7, %v5722_v23, %v1024_v61  ;;  %v1867_v9 = vrot.slane %v1866_v39, 4  ;;  %v3637_v39 = vld [vmem:[#allocation2 + $0x24] sm:$0xf] }
 0x12e   : > { %v2536_v63 = vunpack.c.l.b16 %v2482_v44  ;;  %v3033_v34 = vshll.u32 %v2981_v55, 16  ;;  %v3039_v29 = vshll.u32 %v2982_v6, 16  ;;  %v3043_v31 = vshrl.u32 %v2982_v6, 16 }
 0x12f   : > { %5834 = vmatmul.msk.bf16.gmra.mxu2 %vm1118_vm2, %v1930_v16  ;;  %v6963_v19 = vadd.f32 %v2891_v26, %v2704_v41  ;;  %v6967_v16 = vpack.c.b16 %v1289_v35, %v1288_v33  ;;  %v1931_v26 = vpack.c.b16 %v6957_v46, %v6955_v56  ;;  %v1034_v41 = vsel %vm6499_vm7, %v1026_v60, %v1033_v47  ;;  %v2983_v47 = vld [vmem:[#allocation2 + $0x1c] sm:$0x1] }
 0x130   : > { %v2894_v22 = vpop.f32.mrf.mxu0  ;;  %v1879_v33 = vshll.u32 %v1495_v3, 16  ;;  %v2498_v35 = vshrl.u32 %v2152_v54, 16  ;;  %v2484_v2 = vshrl.u32 %v2150_v58, 16  ;;  %v3032_v15 = vrot.slane %v3030_v5, 4  ;;  %v3636_v5 = vld [vmem:[#allocation2 + $0x20] sm:$0x8] }
 0x131   : > { %5867 = vmatmul.msk.bf16.gmra.mxu3 %vm1118_vm2, %v2552_v42  ;;  %v1876_v42 = vor.u32 %v1875_v51, %v1871_v40  ;;  %v3035_v48 = vrot.slane %v3033_v34, 5  ;;  %v1290_v57 = vunpack.c.l.b16 %v1025_v14  ;;  %v1872_v44 = vsel %vm6517_vm8, %v1867_v9, %v1871_v40  ;;  %v4512_v14 = vld [vmem:[#allocation2 + $0x24] sm:$0xf] }
 0x132   : > { %v2018_v52 = vpop.f32.mrf.mxu2  ;;  %v1395_v20 = vpop.f32.mrf.mxu1  ;;  %v6980_v23 = vrot.slane %v3039_v29, 5  ;;  %v3045_v61 = vrot.slane %v3043_v31, 4  ;;  %v2491_v60 = vrot.slane %v2489_v28, 7  ;;  %v2492_v3 = vshll.u32 %v2151_v30, 16  ;;  %v3638_v28 = vld [vmem:[#allocation2 + $0x28] sm:$0xf] }
 0x133   : > { %5948 = vmatmul.msk.bf16.gmra.mxu0 %vm1118_vm2, %v6135_v11  ;;  %v2083_v10 = vadd.f32 %v2018_v52, %v1394_v43  ;;  %v1396_v43 = vadd.f32 %v1395_v20, %v6666_v38  ;;  %v1291_v52 = vunpack.c.l.b16 %v1034_v41  ;;  %v2553_v55 = vpack.c.b16 %v2536_v63, %v2535_v4 }
 0x134   : > { %v2640_v25 = vpop.f32.mrf.mxu3  ;;  %v2500_v6 = vrot.slane %v2498_v35, 7  ;;  %v1881_v40 = vrot.slane %v1879_v33, 5  ;;  %v3036_v9 = vor.u32 %v3035_v48, %v3032_v15  ;;  %v3690_v34 = vshrl.u32 %v3637_v39, 16 }
 0x135   : > { %v2705_v13 = vadd.f32 %v2640_v25, %v2083_v10  ;;  %v2501_v25 = vshll.u32 %v2152_v54, 16  ;;  %v6985_v29 = vunpack.c.l.b16 %v1872_v44  ;;  %v5852_v38 = vrot.slane %v2484_v2, 11  ;;  %v4513_v54 = vld [vmem:[#allocation2 + $0x28] sm:$0xf]  ;;  %v6136_v2 = vld [vmem:[#allocation2 + $0xf4] sm:$0xff] }
 0x136   : > { %v3046_v20 = vor.u32 %v3045_v61, %v6980_v23  ;;  %v3049_v30 = vshll.u32 %v2983_v47, 16  ;;  %v6990_v4 = vpack.c.b16 %v1291_v52, %v1290_v57  ;;  %v2494_v63 = vor.u32 %v2492_v3, %v2491_v60 }
 0x137   : > { %v6976_v12 = vadd.f32 %v2894_v22, %v2705_v13  ;;  %v6983_v22 = vrot.slane %v1876_v42, 4  ;;  %v4561_v41 = vshrl.u32 %v4512_v14, 16  ;;  %v2496_v42 = vrot.slane %v2491_v60, 4 }
 0x138   : > { %v2896_v11 = vpop.f32.mrf.mxu0  ;;  %v2503_v33 = vor.u32 %v2501_v25, %v2500_v6  ;;  %v3685_v35 = vshrl.u32 %v3636_v5, 16  ;;  %v4564_v15 = vshll.u32 %v4512_v14, 16  ;;  %v3037_v48 = vrot.slane %v3036_v9, 4  ;;  %v2984_v9 = vld [vmem:[#allocation2 + $0x24] sm:$0xf] }
 0x139   : > { %v6996_v44 = vrot.slane %v3690_v34, 7  ;;  %v3693_v61 = vshll.u32 %v3637_v39, 16  ;;  %v3051_v52 = vrot.slane %v3049_v30, 5  ;;  %v4570_v3 = vshll.u32 %v4513_v54, 16  ;;  %v2985_v5 = vld [vmem:[#allocation2 + $0x28] sm:$0xf] }
 0x13a   : > { %v2020_v51 = vpop.f32.mrf.mxu2  ;;  %v1398_v10 = vpop.f32.mrf.mxu1  ;;  %v4574_v60 = vshrl.u32 %v4513_v54, 16  ;;  %v4566_v56 = vrot.slane %v4564_v15, 5  ;;  %v1882_v39 = vsel %vm6517_vm8, %v6983_v22, %v1881_v40  ;;  %v2495_v25 = vsel %vm6499_vm7, %v5852_v38, %v2494_v63  ;;  %v4514_v30 = vld [vmem:[#allocation2 + $0x2c] sm:$0x1] }
 0x13b   : > { %v2084_v58 = vadd.f32 %v2020_v51, %v1396_v43  ;;  %v3047_v43 = vrot.slane %v3046_v20, 4  ;;  %v1399_v47 = vadd.f32 %v1398_v10, %v6686_v18  ;;  %v4563_v51 = vrot.slane %v4561_v41, 4 }
 0x13c   : > { %v2642_v13 = vpop.f32.mrf.mxu3  ;;  %v2504_v14 = vsel %vm6499_vm7, %v2496_v42, %v2503_v33  ;;  %v3695_v10 = vor.u32 %v3693_v61, %v6996_v44  ;;  %v3702_v34 = vshll.u32 %v3638_v28, 16  ;;  %v4576_v38 = vrot.slane %v4574_v60, 4 }
 0x13d   : > { %v2706_v31 = vadd.f32 %v2642_v13, %v2084_v58  ;;  %5818 = vmatmul.msk.bf16.gmra.mxu1 %vm1118_vm2, %v6967_v16  ;;  %v3699_v16 = vshrl.u32 %v3638_v28, 16  ;;  %v5968_v58 = vrot.slane %v3685_v35, 11  ;;  %v3052_v40 = vsel %vm6517_vm8, %v3047_v43, %v3051_v52  ;;  %v7025_v28 = vld [vmem:[#allocation2 + $0x34] sm:$0xf] }
 0x13e   : > { %v7018_v13 = vrot.slane %v4570_v3, 5  ;;  %v3054_v63 = vshrl.u32 %v2984_v9, 16  ;;  %v3057_v54 = vshll.u32 %v2984_v9, 16  ;;  %v1916_v41 = vunpack.c.l.b16 %v1882_v39  ;;  %v3639_v9 = vld [vmem:[#allocation2 + $0x30] sm:$0x8] }
 0x13f   : > { %5835 = vmatmul.msk.bf16.gmra.mxu2 %vm1118_vm2, %v1931_v26  ;;  %v7002_v46 = vadd.f32 %v2896_v11, %v2706_v31  ;;  %v3042_v11 = vsel %vm6517_vm8, %v3037_v48, %v6980_v23  ;;  %v4567_v31 = vor.u32 %v4566_v56, %v4563_v51  ;;  %v2537_v23 = vunpack.c.l.b16 %v2495_v25 }
 0x140   : > { %v6998_v57 = vpop.f32.mrf.mxu0  ;;  %v3063_v42 = vshll.u32 %v2985_v5, 16  ;;  %v3067_v33 = vshrl.u32 %v2985_v5, 16  ;;  %v2538_v35 = vunpack.c.l.b16 %v2504_v14  ;;  %v7020_v15 = vunpack.c.l.b16 %v3042_v11  ;;  %v2986_v14 = vld [vmem:[#allocation2 + $0x2c] sm:$0x1]  ;;  %v4515_v5 = vld [vmem:[#allocation2 + $0x34] sm:$0xf] }
 0x141   : > { %5868 = vmatmul.msk.bf16.gmra.mxu3 %vm1118_vm2, %v2553_v55  ;;  %v3701_v55 = vrot.slane %v3699_v16, 7  ;;  %v3697_v48 = vrot.slane %v6996_v44, 4  ;;  %v3696_v16 = vsel %vm6499_vm7, %v5968_v58, %v3695_v10  ;;  %v4577_v52 = vor.u32 %v4576_v38, %v7018_v13 }
 0x142   : > { %v2023_v26 = vpop.f32.mrf.mxu2  ;;  %v1400_v6 = vpop.f32.mrf.mxu1  ;;  %v4580_v3 = vshll.u32 %v4514_v30, 16  ;;  %v3056_v51 = vrot.slane %v3054_v63, 4  ;;  %v3059_v56 = vrot.slane %v3057_v54, 5  ;;  %v1932_v44 = vpack.c.b16 %v1916_v41, %v6985_v29  ;;  %v4516_v30 = vld [vmem:[#allocation2 + $0x38] sm:$0xf] }
 0x143   : > { %5949 = vmatmul.msk.bf16.gmra.mxu0 %vm1118_vm2, %v6136_v2  ;;  %v2085_v18 = vadd.f32 %v2023_v26, %v1399_v47  ;;  %v7022_v2 = vunpack.c.l.b16 %v3052_v40  ;;  %v3704_v43 = vor.u32 %v3702_v34, %v3701_v55  ;;  %v1401_v60 = vadd.f32 %v1400_v6, %v6705_v1  ;;  %v3641_v26 = vld [vmem:[#allocation2 + $0x38] sm:$0xf] }
 0x144   : > { %v2645_v22 = vpop.f32.mrf.mxu3  ;;  %v7031_v47 = vrot.slane %v4567_v31, 4  ;;  %v3069_v11 = vrot.slane %v3067_v33, 4  ;;  %v3712_v58 = vshrl.u32 %v7025_v28, 16  ;;  %v2554_v55 = vpack.c.b16 %v2538_v35, %v2537_v23 }
 0x145   : > { %v2707_v20 = vadd.f32 %v2645_v22, %v2085_v18  ;;  %v7034_v18 = vrot.slane %v3063_v42, 5  ;;  %v3447_v1 = vpack.c.b16 %v7022_v2, %v7020_v15  ;;  %v7039_v6 = vunpack.c.l.b16 %v3696_v16  ;;  %v4520_v15 = vld [vmem:[#allocation2 + $0x4c] sm:$0x1] }
 0x146   : > { %v7043_v40 = vsel %vm6499_vm7, %v3697_v48, %v3704_v43  ;;  %v4578_v29 = vrot.slane %v4577_v52, 4  ;;  %v4582_v34 = vrot.slane %v4580_v3, 5  ;;  %v3721_v38 = vshrl.u32 %v3641_v26, 16  ;;  %v6137_v48 = vld [vmem:[#allocation2 + $0x104] sm:$0xff] }
 0x147   : > { %v4573_v63 = vsel %vm6517_vm8, %v7031_v47, %v7018_v13  ;;  %v3060_v54 = vor.u32 %v3059_v56, %v3056_v51  ;;  %v3073_v41 = vshll.u32 %v2986_v14, 16  ;;  %v3070_v23 = vor.u32 %v3069_v11, %v7034_v18  ;;  %v4517_v51 = vld [vmem:[#allocation2 + $0x3c] sm:$0x1] }
 0x148   : > { %v2901_v61 = vpop.f32.mrf.mxu0  ;;  %v3707_v42 = vshrl.u32 %v3639_v9, 16  ;;  %v3714_v33 = vrot.slane %v3712_v58, 7  ;;  %v4585_v35 = vshrl.u32 %v4515_v5, 16  ;;  %v3715_v16 = vshll.u32 %v7025_v28, 16 }
 0x149   : > { %v4588_v43 = vshll.u32 %v4515_v5, 16  ;;  %v4594_v52 = vshll.u32 %v4516_v30, 16  ;;  %v7055_v13 = vadd.f32 %v6998_v57, %v2707_v20  ;;  %v4583_v58 = vsel %vm6517_vm8, %v4578_v29, %v4582_v34 }
 0x14a   : > { %v2025_v39 = vpop.f32.mrf.mxu2  ;;  %v1403_v25 = vpop.f32.mrf.mxu1  ;;  %v3061_v9 = vrot.slane %v3060_v54, 4  ;;  %v5969_v20 = vrot.slane %v3707_v42, 11  ;;  %v7070_v42 = vunpack.c.l.b16 %v4583_v58 }
 0x14b   : > { %v2086_v10 = vadd.f32 %v2025_v39, %v1401_v60  ;;  %v3723_v60 = vrot.slane %v3721_v38, 7  ;;  %v3724_v39 = vshll.u32 %v3641_v26, 16  ;;  %v1404_v47 = vadd.f32 %v1403_v25, %v6722_v50 }
 0x14c   : > { %v2647_v22 = vpop.f32.mrf.mxu3  ;;  %v4590_v56 = vrot.slane %v4588_v43, 5  ;;  %v3075_v26 = vrot.slane %v3073_v41, 5  ;;  %v3071_v50 = vrot.slane %v3070_v23, 4  ;;  %v3717_v25 = vor.u32 %v3715_v16, %v3714_v33  ;;  %v7077_v16 = vld [vmem:[#allocation2 + $0x44] sm:$0xf] }
 0x14d   : > { %v2708_v31 = vadd.f32 %v2647_v22, %v2086_v10  ;;  %5819 = vmatmul.msk.bf16.gmra.mxu1 %vm1118_vm2, %v6990_v4  ;;  %v4598_v4 = vshrl.u32 %v4516_v30, 16  ;;  %v4587_v10 = vrot.slane %v4585_v35, 4  ;;  %v2988_v22 = vld [vmem:[#allocation2 + $0x38] sm:$0xf]  ;;  %v3719_v30 = vrot.slane %v3714_v33, 4 }
 0x14e   : > { %v3726_v35 = vor.u32 %v3724_v39, %v3723_v60  ;;  %v3087_v41 = vshll.u32 %v2988_v22, 16  ;;  %v3091_v23 = vshrl.u32 %v2988_v22, 16  ;;  %v3066_v33 = vsel %vm6517_vm8, %v3061_v9, %v7034_v18  ;;  %v3642_v22 = vld [vmem:[#allocation2 + $0x40] sm:$0x8] }
 0x14f   : > { %5836 = vmatmul.msk.bf16.gmra.mxu2 %vm1118_vm2, %v1932_v44  ;;  %v7059_v44 = vrot.slane %v4594_v52, 5  ;;  %v4600_v14 = vrot.slane %v4598_v4, 4  ;;  %v7063_v5 = vadd.f32 %v2901_v61, %v2708_v31  ;;  %v4591_v43 = vor.u32 %v4590_v56, %v4587_v10 }
 0x150   : > { %v2904_v3 = vpop.f32.mrf.mxu0  ;;  %v4604_v52 = vshll.u32 %v4517_v51, 16  ;;  %v4039_v61 = vunpack.c.l.b16 %v7043_v40  ;;  %v7068_v31 = vunpack.c.l.b16 %v4573_v63  ;;  %v3718_v40 = vsel %vm6499_vm7, %v5969_v20, %v3717_v25 }
 0x151   : > { %5869 = vmatmul.msk.bf16.gmra.mxu3 %vm1118_vm2, %v2554_v55  ;;  %v2987_v55 = vld [vmem:[#allocation2 + $0x34] sm:$0xf]  ;;  %v4601_v29 = vor.u32 %v4600_v14, %v7059_v44  ;;  %v7085_v63 = vsel %vm6499_vm7, %v3719_v30, %v3726_v35  ;;  %v7087_v10 = vrot.slane %v4591_v43, 4  ;;  %v3734_v20 = vshrl.u32 %v7077_v16, 16 }
 0x152   : > { %v2028_v28 = vpop.f32.mrf.mxu2  ;;  %v1405_v11 = vpop.f32.mrf.mxu1  ;;  %v3078_v34 = vshrl.u32 %v2987_v55, 16  ;;  %v3081_v54 = vshll.u32 %v2987_v55, 16  ;;  %v4070_v9 = vpack.c.b16 %v4039_v61, %v7039_v6  ;;  %v7106_v35 = vunpack.c.l.b16 %v3718_v40 }
 0x153   : > { %5950 = vmatmul.msk.bf16.gmra.mxu0 %vm1118_vm2, %v6137_v48  ;;  %v2087_v57 = vadd.f32 %v2028_v28, %v1404_v47  ;;  %v3076_v48 = vsel %vm6517_vm8, %v3071_v50, %v3075_v26  ;;  %v7089_v47 = vrot.slane %v4604_v52, 5  ;;  %v1406_v18 = vadd.f32 %v1405_v11, %v6741_v53  ;;  %v2989_v26 = vld [vmem:[#allocation2 + $0x3c] sm:$0x1] }
 0x154   : > { %v2650_v38 = vpop.f32.mrf.mxu3  ;;  %v7092_v51 = vrot.slane %v4601_v29, 4  ;;  %v3080_v56 = vrot.slane %v3078_v34, 4  ;;  %v3083_v14 = vrot.slane %v3081_v54, 5  ;;  %v3093_v50 = vrot.slane %v3091_v23, 4  ;;  %v6138_v34 = vld [vmem:[#allocation2 + $0x24] sm:$0xff] }
 0x155   : > { %v2709_v4 = vadd.f32 %v2650_v38, %v2087_v57  ;;  %v7097_v57 = vrot.slane %v3087_v41, 5  ;;  %v4978_v53 = vpack.c.b16 %v7070_v42, %v7068_v31  ;;  %v7102_v11 = vunpack.c.l.b16 %v3066_v33  ;;  %v4518_v38 = vld [vmem:[#allocation2 + $0x44] sm:$0xf] }
 0x156   : > { %v7104_v55 = vunpack.c.l.b16 %v3076_v48  ;;  %v4041_v6 = vunpack.c.l.b16 %v7085_v63  ;;  %v4597_v43 = vsel %vm6517_vm8, %v7087_v10, %v7059_v44  ;;  %v4607_v54 = vsel %vm6517_vm8, %v7092_v51, %v7089_v47 }
 0x157   : > { %v7079_v60 = vadd.f32 %v2904_v3, %v2709_v4  ;;  %v7094_v3 = vld [vmem:[#allocation2 + $0x48] sm:$0xf]  ;;  %v3084_v61 = vor.u32 %v3083_v14, %v3080_v56  ;;  %v3097_v31 = vshll.u32 %v2989_v26, 16  ;;  %v3094_v41 = vor.u32 %v3093_v50, %v7097_v57 }
 0x158   : > { %v2906_v39 = vpop.f32.mrf.mxu0  ;;  %v3743_v52 = vshrl.u32 %v7094_v3, 16  ;;  %v4519_v4 = vld [vmem:[#allocation2 + $0x48] sm:$0xf]  ;;  %v3729_v44 = vshrl.u32 %v3642_v22, 16  ;;  %v3736_v23 = vrot.slane %v3734_v20, 7  ;;  %v4609_v42 = vshrl.u32 %v4518_v38, 16 }
 0x159   : > { %v3737_v33 = vshll.u32 %v7077_v16, 16  ;;  %v4612_v2 = vshll.u32 %v4518_v38, 16  ;;  %v4622_v48 = vshrl.u32 %v4519_v4, 16  ;;  %v3746_v47 = vshll.u32 %v7094_v3, 16 }
 0x15a   : > { %v2030_v28 = vpop.f32.mrf.mxu2  ;;  %v1408_v58 = vpop.f32.mrf.mxu1  ;;  %v4611_v51 = vrot.slane %v4609_v42, 4  ;;  %v3085_v50 = vrot.slane %v3084_v61, 4  ;;  %v3095_v20 = vrot.slane %v3094_v41, 4  ;;  %v4628_v22 = vshll.u32 %v4520_v15, 16 }
 0x15b   : > { %v2088_v25 = vadd.f32 %v2030_v28, %v1406_v18  ;;  %v1409_v40 = vadd.f32 %v1408_v58, %v6633_v24  ;;  %v3745_v18 = vrot.slane %v3743_v52, 7  ;;  %v4614_v56 = vrot.slane %v4612_v2, 5  ;;  %v2991_v52 = vld [vmem:[#allocation2 + $0x48] sm:$0xf] }
 0x15c   : > { %v2652_v30 = vpop.f32.mrf.mxu3  ;;  %v4624_v28 = vrot.slane %v4622_v48, 4  ;;  %v5970_v58 = vrot.slane %v3729_v44, 11  ;;  %v3739_v3 = vor.u32 %v3737_v33, %v3736_v23  ;;  %v3111_v61 = vshll.u32 %v2991_v52, 16 }
 0x15d   : > { %v2710_v29 = vadd.f32 %v2652_v30, %v2088_v25  ;;  %5952 = vmatmul.msk.bf16.vlgmr.msra.gmra.mxu1 %vm1118_vm2, %v3447_v1  ;;  %v4618_v1 = vshll.u32 %v4519_v4, 16  ;;  %v3099_v25 = vrot.slane %v3097_v31, 5  ;;  %v4615_v38 = vor.u32 %v4614_v56, %v4611_v51  ;;  %v2990_v30 = vld [vmem:[#allocation2 + $0x44] sm:$0xf] }
 0x15e   : > { %v3115_v41 = vshrl.u32 %v2991_v52, 16  ;;  %v7134_v31 = vunpack.c.l.b16 %v4597_v43  ;;  %v4630_v48 = vrot.slane %v4628_v22, 5  ;;  %v7136_v44 = vunpack.c.l.b16 %v4607_v54  ;;  %v3646_v54 = vld [vmem:[#allocation2 + $0x54] sm:$0xf] }
 0x15f   : > { %5985 = vmatmul.msk.bf16.vlgmr.msra.gmra.mxu2 %vm1118_vm2, %v4070_v9  ;;  %v7128_v14 = vrot.slane %v4618_v1, 5  ;;  %v7130_v9 = vadd.f32 %v2906_v39, %v2710_v29  ;;  %v3102_v39 = vshrl.u32 %v2990_v30, 16  ;;  %v3105_v29 = vshll.u32 %v2990_v30, 16  ;;  %v4521_v52 = vld [vmem:[#allocation2 + $0x54] sm:$0xf] }
 0x160   : > { %v2909_v10 = vpop.f32.mrf.mxu0  ;;  %v3748_v1 = vor.u32 %v3746_v47, %v3745_v18  ;;  %v4616_v15 = vrot.slane %v4615_v38, 4  ;;  %v3090_v33 = vsel %vm6517_vm8, %v3085_v50, %v7097_v57  ;;  %v3448_v18 = vpack.c.b16 %v7104_v55, %v7102_v11  ;;  %v3645_v38 = vld [vmem:[#allocation2 + $0x50] sm:$0x8] }
 0x161   : > { %6066 = vmatmul.msk.bf16.vlgmr.msra.gmra.mxu3 %vm1118_vm2, %v6138_v34  ;;  %v3741_v34 = vrot.slane %v3736_v23, 4  ;;  %v4625_v42 = vor.u32 %v4624_v28, %v7128_v14  ;;  %v3100_v23 = vsel %vm6517_vm8, %v3095_v20, %v3099_v25  ;;  %v3740_v43 = vsel %vm6499_vm7, %v5970_v58, %v3739_v3 }
 0x162   : > { %v2033_v16 = vpop.f32.mrf.mxu2  ;;  %v1410_v26 = vpop.f32.mrf.mxu1  ;;  %v3104_v47 = vrot.slane %v3102_v39, 4  ;;  %v3107_v56 = vrot.slane %v3105_v29, 5  ;;  %v7152_v50 = vrot.slane %v3111_v61, 5  ;;  %v7154_v22 = vunpack.c.l.b16 %v3090_v33  ;;  %v4522_v29 = vld [vmem:[#allocation2 + $0x58] sm:$0xf] }
 0x163   : > { %6083 = vmatmul.msk.bf16.vlgmr.msra.gmra.mxu0 %vm1118_vm2, %v4978_v53  ;;  %v2089_v24 = vadd.f32 %v2033_v16, %v1409_v40  ;;  %v4626_v53 = vrot.slane %v4625_v42, 4  ;;  %v1411_v28 = vadd.f32 %v1410_v26, %v6648_v62  ;;  %v3749_v57 = vsel %vm6499_vm7, %v3741_v34, %v3748_v1  ;;  %v2992_v16 = vld [vmem:[#allocation2 + $0x4c] sm:$0x1]  ;;  %v7163_v26 = vld [vmem:[#allocation2 + $0x58] sm:$0xf] }
 0x164   : > { %v2655_v4 = vpop.f32.mrf.mxu3  ;;  %v7156_v11 = vunpack.c.l.b16 %v3100_v23  ;;  %v4621_v55 = vsel %vm6517_vm8, %v4616_v15, %v7128_v14  ;;  %v4071_v58 = vpack.c.b16 %v4041_v6, %v7106_v35  ;;  %v4979_v3 = vpack.c.b16 %v7136_v44, %v7134_v31  ;;  %v6139_v1 = vld [vmem:[#allocation2 + $0x34] sm:$0xff] }
 0x165   : > { %v2711_v2 = vadd.f32 %v2655_v4, %v2089_v24  ;;  %v4631_v62 = vsel %vm6517_vm8, %v4626_v53, %v4630_v48  ;;  %v3756_v30 = vshrl.u32 %v3646_v54, 16  ;;  %v4042_v34 = vunpack.c.l.b16 %v3740_v43 }
 0x166   : > { %v4043_v42 = vunpack.c.l.b16 %v3749_v57  ;;  %v3108_v14 = vor.u32 %v3107_v56, %v3104_v47  ;;  %v3121_v39 = vshll.u32 %v2992_v16, 16  ;;  %v7171_v61 = vunpack.c.l.b16 %v4621_v55 }
 0x167   : > { %v7143_v40 = vadd.f32 %v2909_v10, %v2711_v2  ;;  %v3117_v10 = vrot.slane %v3115_v41, 4  ;;  %v7173_v63 = vunpack.c.l.b16 %v4631_v62  ;;  %v3449_v6 = vpack.c.b16 %v7156_v11, %v7154_v22 }
 0x168   : > { %v2911_v51 = vpop.f32.mrf.mxu0  ;;  %v3751_v41 = vshrl.u32 %v3645_v38, 16  ;;  %v3765_v31 = vshrl.u32 %v7163_v26, 16  ;;  %v4633_v15 = vshrl.u32 %v4521_v52, 16  ;;  %v7180_v53 = vrot.slane %v3756_v30, 7 }
 0x169   : > { %v3118_v35 = vor.u32 %v3117_v10, %v7152_v50  ;;  %v3759_v48 = vshll.u32 %v3646_v54, 16  ;;  %v4636_v44 = vshll.u32 %v4521_v52, 16  ;;  %v4642_v33 = vshll.u32 %v4522_v29, 16  ;;  %v2993_v52 = vld [vmem:[#allocation2 + $0x54] sm:$0xf] }
 0x16a   : > { %v2035_v20 = vpop.f32.mrf.mxu2  ;;  %v1413_v25 = vpop.f32.mrf.mxu1  ;;  %v3109_v43 = vrot.slane %v3108_v14, 4  ;;  %v3123_v47 = vrot.slane %v3121_v39, 5  ;;  %v4646_v56 = vshrl.u32 %v4522_v29, 16  ;;  %v5971_v55 = vrot.slane %v3751_v41, 11 }
 0x16b   : > { %v2090_v24 = vadd.f32 %v2035_v20, %v1411_v28  ;;  %v1414_v28 = vadd.f32 %v1413_v25, %v6664_v37  ;;  %v3119_v16 = vrot.slane %v3118_v35, 4  ;;  %v3767_v62 = vrot.slane %v3765_v31, 7  ;;  %v3649_v35 = vld [vmem:[#allocation2 + $0x64] sm:$0xf] }
 0x16c   : > { %v2657_v4 = vpop.f32.mrf.mxu3  ;;  %v3761_v37 = vor.u32 %v3759_v48, %v7180_v53  ;;  %v4638_v25 = vrot.slane %v4636_v44, 5  ;;  %v7193_v30 = vrot.slane %v4642_v33, 5  ;;  %v3129_v14 = vshll.u32 %v2993_v52, 16  ;;  %v3650_v44 = vld [vmem:[#allocation2 + $0x68] sm:$0xf] }
 0x16d   : > { %v2712_v2 = vadd.f32 %v2657_v4, %v2090_v24  ;;  %5953 = vmatmul.msk.bf16.gmra.mxu1 %vm1118_vm2, %v3448_v18  ;;  %v7182_v18 = vpack.c.b16 %v4043_v42, %v4042_v34  ;;  %v3768_v24 = vshll.u32 %v7163_v26, 16  ;;  %v2994_v4 = vld [vmem:[#allocation2 + $0x58] sm:$0xf]  ;;  %v3126_v42 = vshrl.u32 %v2993_v52, 16 }
 0x16e   : > { %v3135_v39 = vshll.u32 %v2994_v4, 16  ;;  %v3114_v26 = vsel %vm6517_vm8, %v3109_v43, %v7152_v50  ;;  %v3124_v41 = vsel %vm6517_vm8, %v3119_v16, %v3123_v47  ;;  %v3762_v33 = vsel %vm6499_vm7, %v5971_v55, %v3761_v37 }
 0x16f   : > { %5986 = vmatmul.msk.bf16.gmra.mxu2 %vm1118_vm2, %v4071_v58  ;;  %v7188_v10 = vadd.f32 %v2911_v51, %v2712_v2  ;;  %v4635_v58 = vrot.slane %v4633_v15, 4  ;;  %v4648_v51 = vrot.slane %v4646_v56, 4  ;;  %v4523_v2 = vld [vmem:[#allocation2 + $0x5c] sm:$0x1]  ;;  %v3128_v31 = vrot.slane %v3126_v42, 4 }
 0x170   : > { %v2914_v23 = vpop.f32.mrf.mxu0  ;;  %v3131_v15 = vrot.slane %v3129_v14, 5  ;;  %v7201_v48 = vrot.slane %v3135_v39, 5  ;;  %v2995_v56 = vld [vmem:[#allocation2 + $0x5c] sm:$0x1]  ;;  %v3778_v50 = vshrl.u32 %v3649_v35, 16  ;;  %v4652_v47 = vshll.u32 %v4523_v2, 16 }
 0x171   : > { %6067 = vmatmul.msk.bf16.gmra.mxu3 %vm1118_vm2, %v6139_v1  ;;  %v3139_v1 = vshrl.u32 %v2994_v4, 16  ;;  %v4639_v52 = vor.u32 %v4638_v25, %v4635_v58  ;;  %v4649_v4 = vor.u32 %v4648_v51, %v7193_v30  ;;  %v3145_v14 = vshll.u32 %v2995_v56, 16  ;;  %v4524_v25 = vld [vmem:[#allocation2 + $0x64] sm:$0xf] }
 0x172   : > { %v2038_v20 = vpop.f32.mrf.mxu2  ;;  %v1415_v54 = vpop.f32.mrf.mxu1  ;;  %v3132_v42 = vor.u32 %v3131_v15, %v3128_v31  ;;  %v7211_v37 = vunpack.c.l.b16 %v3124_v41  ;;  %v3781_v58 = vshll.u32 %v3649_v35, 16  ;;  %v4654_v2 = vrot.slane %v4652_v47, 5  ;;  %v4525_v41 = vld [vmem:[#allocation2 + $0x68] sm:$0xf] }
 0x173   : > { %6084 = vmatmul.msk.bf16.gmra.mxu0 %vm1118_vm2, %v4979_v3  ;;  %v2091_v38 = vadd.f32 %v2038_v20, %v1414_v28  ;;  %v3763_v3 = vrot.slane %v7180_v53, 4  ;;  %v3141_v28 = vrot.slane %v3139_v1, 4  ;;  %v3648_v20 = vld [vmem:[#allocation2 + $0x60] sm:$0x8]  ;;  %v1416_v16 = vadd.f32 %v1415_v54, %v6684_v17  ;;  %v6140_v15 = vld [vmem:[#allocation2 + $0x44] sm:$0xff] }
 0x174   : > { %v2660_v34 = vpop.f32.mrf.mxu3  ;;  %v4640_v54 = vrot.slane %v4639_v52, 4  ;;  %v3147_v56 = vrot.slane %v3145_v14, 5  ;;  %v4660_v52 = vshll.u32 %v4524_v25, 16 }
 0x175   : > { %v2713_v29 = vadd.f32 %v2660_v34, %v2091_v38  ;;  %v3770_v38 = vor.u32 %v3768_v24, %v3767_v62  ;;  %v7209_v34 = vunpack.c.l.b16 %v3114_v26  ;;  %v3142_v1 = vor.u32 %v3141_v28, %v7201_v48 }
 0x176   : > { %v7214_v62 = vunpack.c.l.b16 %v3762_v33  ;;  %v3780_v24 = vrot.slane %v3778_v50, 7  ;;  %v4650_v26 = vrot.slane %v4649_v4, 4  ;;  %v3133_v33 = vrot.slane %v3132_v42, 4 }
 0x177   : > { %v7205_v43 = vadd.f32 %v2914_v23, %v2713_v29  ;;  %v3773_v23 = vshrl.u32 %v3648_v20, 16  ;;  %v3787_v29 = vshrl.u32 %v3650_v44, 16  ;;  %v7218_v17 = vsel %vm6499_vm7, %v3763_v3, %v3770_v38  ;;  %v4526_v38 = vld [vmem:[#allocation2 + $0x6c] sm:$0x1] }
 0x178   : > { %v2916_v53 = vpop.f32.mrf.mxu0  ;;  %v3143_v28 = vrot.slane %v3142_v1, 4  ;;  %v3790_v50 = vshll.u32 %v3650_v44, 16  ;;  %v3783_v3 = vor.u32 %v3781_v58, %v3780_v24  ;;  %v4670_v4 = vshrl.u32 %v4525_v41, 16 }
 0x179   : > { %v3789_v35 = vrot.slane %v3787_v29, 7  ;;  %v5972_v20 = vrot.slane %v3773_v23, 11  ;;  %v4645_v22 = vsel %vm6517_vm8, %v4640_v54, %v7193_v30  ;;  %v3785_v11 = vrot.slane %v3780_v24, 4 }
 0x17a   : > { %v2040_v39 = vpop.f32.mrf.mxu2  ;;  %v1418_v55 = vpop.f32.mrf.mxu1  ;;  %v4662_v14 = vrot.slane %v4660_v52, 5  ;;  %v4655_v29 = vsel %vm6517_vm8, %v4650_v26, %v4654_v2  ;;  %v3138_v58 = vsel %vm6517_vm8, %v3133_v33, %v7201_v48  ;;  %v4676_v30 = vshll.u32 %v4526_v38, 16  ;;  %v2996_v26 = vld [vmem:[#allocation2 + $0x64] sm:$0xf]  ;;  %v2997_v2 = vld [vmem:[#allocation2 + $0x68] sm:$0xf] }
 0x17b   : > { %v2092_v57 = vadd.f32 %v2040_v39, %v1416_v16  ;;  %v4657_v16 = vshrl.u32 %v4524_v25, 16  ;;  %v1419_v44 = vadd.f32 %v1418_v55, %v6703_v0  ;;  %v4672_v39 = vrot.slane %v4670_v4, 4 }
 0x17c   : > { %v2662_v51 = vpop.f32.mrf.mxu3  ;;  %v8204_v0 = vpack.c.b16 %v7173_v63, %v7171_v61  ;;  %v3148_v25 = vsel %vm6517_vm8, %v3143_v28, %v3147_v56  ;;  %v3159_v33 = vshll.u32 %v2997_v2, 16  ;;  %v4678_v56 = vrot.slane %v4676_v30, 5 }
 0x17d   : > { %v2714_v31 = vadd.f32 %v2662_v51, %v2092_v57  ;;  %5954 = vmatmul.msk.bf16.gmra.mxu1 %vm1118_vm2, %v3449_v6  ;;  %v4666_v57 = vshll.u32 %v4525_v41, 16  ;;  %v3792_v6 = vor.u32 %v3790_v50, %v3789_v35  ;;  %v4659_v42 = vrot.slane %v4657_v16, 4 }
 0x17e   : > { %v3784_v51 = vsel %vm6499_vm7, %v5972_v20, %v3783_v3  ;;  %v3163_v35 = vshrl.u32 %v2997_v2, 16  ;;  %v3450_v20 = vpack.c.b16 %v7211_v37, %v7209_v34  ;;  %v4045_v3 = vunpack.c.l.b16 %v7218_v17 }
 0x17f   : > { %5987 = vmatmul.msk.bf16.gmra.mxu2 %vm1118_vm2, %v7182_v18  ;;  %v4668_v18 = vrot.slane %v4666_v57, 5  ;;  %v7238_v24 = vadd.f32 %v2916_v53, %v2714_v31  ;;  %v4663_v54 = vor.u32 %v4662_v14, %v4659_v42  ;;  %v3793_v48 = vsel %vm6499_vm7, %v3785_v11, %v3792_v6  ;;  %v7257_v57 = vld [vmem:[#allocation2 + $0x74] sm:$0xf] }
 0x180   : > { %v7226_v47 = vpop.f32.mrf.mxu0  ;;  %v3150_v31 = vshrl.u32 %v2996_v26, 16  ;;  %v7255_v38 = vunpack.c.l.b16 %v4645_v22  ;;  %v4953_v52 = vunpack.c.l.b16 %v4655_v29  ;;  %v7261_v11 = vunpack.c.l.b16 %v3138_v58  ;;  %v7270_v22 = vld [vmem:[#allocation2 + $0x78] sm:$0xf]  ;;  %v2998_v58 = vld [vmem:[#allocation2 + $0x6c] sm:$0x1] }
 0x181   : > { %6068 = vmatmul.msk.bf16.gmra.mxu3 %vm1118_vm2, %v6140_v15  ;;  %v4673_v53 = vor.u32 %v4672_v39, %v4668_v18  ;;  %v3153_v15 = vshll.u32 %v2996_v26, 16  ;;  %v4664_v63 = vrot.slane %v4663_v54, 4  ;;  %v7263_v6 = vunpack.c.l.b16 %v3148_v25  ;;  %v4527_v25 = vld [vmem:[#allocation2 + $0x74] sm:$0xf] }
 0x182   : > { %v2043_v1 = vpop.f32.mrf.mxu2  ;;  %v1420_v23 = vpop.f32.mrf.mxu1  ;;  %v3152_v28 = vrot.slane %v3150_v31, 4  ;;  %v4046_v42 = vunpack.c.l.b16 %v3784_v51  ;;  %v7268_v37 = vrot.slane %v3159_v33, 5  ;;  %v3165_v17 = vrot.slane %v3163_v35, 4 }
 0x183   : > { %6085 = vmatmul.msk.bf16.gmra.mxu0 %vm1118_vm2, %v8204_v0  ;;  %v2093_v55 = vadd.f32 %v2043_v1, %v1419_v44  ;;  %v4674_v50 = vrot.slane %v4673_v53, 4  ;;  %v3155_v16 = vrot.slane %v3153_v15, 5  ;;  %v4047_v44 = vunpack.c.l.b16 %v3793_v48  ;;  %v4528_v48 = vld [vmem:[#allocation2 + $0x78] sm:$0xf] }
 0x184   : > { %v2665_v41 = vpop.f32.mrf.mxu3  ;;  %v1421_v14 = vadd.f32 %v1420_v23, %v6720_v49  ;;  %v4669_v34 = vsel %vm6517_vm8, %v4664_v63, %v4668_v18  ;;  %v3800_v0 = vshrl.u32 %v7257_v57, 16  ;;  %v4073_v49 = vpack.c.b16 %v4045_v3, %v7214_v62  ;;  %v3651_v18 = vld [vmem:[#allocation2 + $0x70] sm:$0x8]  ;;  %v6141_v62 = vld [vmem:[#allocation2 + $0x54] sm:$0xff] }
 0x185   : > { %v7250_v61 = vadd.f32 %v2665_v41, %v2093_v55  ;;  %v4679_v29 = vsel %vm6517_vm8, %v4674_v50, %v4678_v56  ;;  %v3156_v30 = vor.u32 %v3155_v16, %v3152_v28  ;;  %v4981_v23 = vpack.c.b16 %v4953_v52, %v7255_v38 }
 0x186   : > { %v3451_v54 = vpack.c.b16 %v7263_v6, %v7261_v11  ;;  %v7279_v26 = vpack.c.b16 %v4047_v44, %v4046_v42  ;;  %v7281_v2 = vunpack.c.l.b16 %v4669_v34  ;;  %v3809_v41 = vshrl.u32 %v7270_v22, 16 }
 0x187   : > { %v7287_v31 = vunpack.c.l.b16 %v4679_v29  ;;  %v3166_v15 = vor.u32 %v3165_v17, %v7268_v37  ;;  %v3169_v63 = vshll.u32 %v2998_v58, 16  ;;  %v7290_v33 = vrot.slane %v3156_v30, 4 }
 0x188   : > { %v7259_v4 = vpop.f32.mrf.mxu0  ;;  %v3795_v35 = vshrl.u32 %v3651_v18, 16  ;;  %v3802_v50 = vrot.slane %v3800_v0, 7  ;;  %v4681_v56 = vshrl.u32 %v4527_v25, 16  ;;  %v3803_v28 = vshll.u32 %v7257_v57, 16 }
 0x189   : > { %v4684_v16 = vshll.u32 %v4527_v25, 16  ;;  %v4690_v3 = vshll.u32 %v4528_v48, 16  ;;  %v4694_v38 = vshrl.u32 %v4528_v48, 16  ;;  %v3811_v42 = vrot.slane %v3809_v41, 7  ;;  %v3000_v41 = vld [vmem:[#allocation2 + $0x78] sm:$0xf] }
 0x18a   : > { %v2045_v39 = vpop.f32.mrf.mxu2  ;;  %v1423_v1 = vpop.f32.mrf.mxu1  ;;  %v3812_v44 = vshll.u32 %v7270_v22, 16  ;;  %v4683_v34 = vrot.slane %v4681_v56, 4  ;;  %v7303_v57 = vadd.f32 %v7226_v47, %v7250_v61  ;;  %v3171_v0 = vrot.slane %v3169_v63, 5 }
 0x18b   : > { %v2094_v55 = vadd.f32 %v2045_v39, %v1421_v14  ;;  %v4529_v14 = vld [vmem:[#allocation2 + $0x7c] sm:$0x1]  ;;  %v4686_v17 = vrot.slane %v4684_v16, 5  ;;  %v7299_v39 = vrot.slane %v4690_v3, 5  ;;  %v4696_v29 = vrot.slane %v4694_v38, 4 }
 0x18c   : > { %v2667_v51 = vpop.f32.mrf.mxu3  ;;  %v5973_v22 = vrot.slane %v3795_v35, 11  ;;  %v4700_v25 = vshll.u32 %v4529_v14, 16  ;;  %v3183_v56 = vshll.u32 %v3000_v41, 16  ;;  %v3807_v3 = vrot.slane %v3802_v50, 4  ;;  %v3655_v35 = vld [vmem:[#allocation2 + $0x84] sm:$0xf] }
 0x18d   : > { %v7284_v53 = vadd.f32 %v2667_v51, %v2094_v55  ;;  %5955 = vmatmul.msk.bf16.gmra.mxu1 %vm1118_vm2, %v3450_v20  ;;  %v1424_v20 = vadd.f32 %v1423_v1, %v6739_v59  ;;  %v3167_v1 = vrot.slane %v3166_v15, 4  ;;  %v4687_v18 = vor.u32 %v4686_v17, %v4683_v34  ;;  %v2999_v51 = vld [vmem:[#allocation2 + $0x74] sm:$0xf]  ;;  %v3656_v14 = vld [vmem:[#allocation2 + $0x88] sm:$0xf] }
 0x18e   : > { %v4697_v47 = vor.u32 %v4696_v29, %v7299_v39  ;;  %v3174_v61 = vshrl.u32 %v2999_v51, 16  ;;  %v3814_v15 = vor.u32 %v3812_v44, %v3811_v42  ;;  %v3187_v63 = vshrl.u32 %v3000_v41, 16  ;;  %v3654_v44 = vld [vmem:[#allocation2 + $0x80] sm:$0x8] }
 0x18f   : > { %5988 = vmatmul.msk.bf16.gmra.mxu2 %vm1118_vm2, %v4073_v49  ;;  %v3805_v49 = vor.u32 %v3803_v28, %v3802_v50  ;;  %v3172_v34 = vsel %vm6517_vm8, %v3167_v1, %v3171_v0  ;;  %v3001_v50 = vld [vmem:[#allocation2 + $0x7c] sm:$0x1]  ;;  %v3822_v29 = vshrl.u32 %v3655_v35, 16 }
 0x190   : > { %v7295_v52 = vpop.f32.mrf.mxu0  ;;  %v3176_v28 = vrot.slane %v3174_v61, 4  ;;  %v3189_v42 = vrot.slane %v3187_v63, 4  ;;  %v3193_v0 = vshll.u32 %v3001_v50, 16  ;;  %v3817_v61 = vshrl.u32 %v3654_v44, 16  ;;  %v4532_v44 = vld [vmem:[#allocation2 + $0x8c] sm:$0x1] }
 0x191   : > { %6069 = vmatmul.msk.bf16.gmra.mxu3 %vm1118_vm2, %v6141_v62  ;;  %v3177_v62 = vshll.u32 %v2999_v51, 16  ;;  %v3806_v17 = vsel %vm6499_vm7, %v5973_v22, %v3805_v49  ;;  %v4698_v51 = vrot.slane %v4697_v47, 4  ;;  %v3831_v63 = vshrl.u32 %v3656_v14, 16 }
 0x192   : > { %v2048_v58 = vpop.f32.mrf.mxu2  ;;  %v1425_v30 = vpop.f32.mrf.mxu1  ;;  %v7333_v47 = vunpack.c.l.b16 %v3806_v17  ;;  %v3195_v17 = vrot.slane %v3193_v0, 5  ;;  %v4724_v0 = vshll.u32 %v4532_v44, 16  ;;  %v3003_v44 = vld [vmem:[#allocation2 + $0x88] sm:$0xf] }
 0x193   : > { %6086 = vmatmul.msk.bf16.gmra.mxu0 %vm1118_vm2, %v4981_v23  ;;  %v2095_v55 = vadd.f32 %v2048_v58, %v1424_v20  ;;  %v3162_v23 = vsel %vm6517_vm8, %v7290_v33, %v7268_v37  ;;  %v3179_v38 = vrot.slane %v3177_v62, 5  ;;  %v7315_v20 = vrot.slane %v3183_v56, 5 }
 0x194   : > { %v2670_v48 = vpop.f32.mrf.mxu3  ;;  %v4702_v37 = vrot.slane %v4700_v25, 5  ;;  %v1426_v41 = vadd.f32 %v1425_v30, %v6757_v36  ;;  %v3824_v62 = vrot.slane %v3822_v29, 7  ;;  %v3825_v56 = vshll.u32 %v3655_v35, 16  ;;  %v4530_v36 = vld [vmem:[#allocation2 + $0x84] sm:$0xf] }
 0x195   : > { %v7309_v16 = vadd.f32 %v2670_v48, %v2095_v55  ;;  %v4688_v55 = vrot.slane %v4687_v18, 4  ;;  %v3180_v33 = vor.u32 %v3179_v38, %v3176_v28  ;;  %v7326_v48 = vsel %vm6499_vm7, %v3807_v3, %v3814_v15  ;;  %v4531_v38 = vld [vmem:[#allocation2 + $0x88] sm:$0xf] }
 0x196   : > { %v3190_v1 = vor.u32 %v3189_v42, %v7315_v20  ;;  %v7329_v18 = vunpack.c.l.b16 %v3162_v23  ;;  %v7331_v25 = vunpack.c.l.b16 %v3172_v34  ;;  %v4049_v3 = vunpack.c.l.b16 %v7326_v48  ;;  %v6142_v23 = vld [vmem:[#allocation2 + $0x64] sm:$0xff] }
 0x197   : > { %v4693_v15 = vsel %vm6517_vm8, %v4688_v55, %v7299_v39  ;;  %v4703_v28 = vsel %vm6517_vm8, %v4698_v51, %v4702_v37  ;;  %v3181_v35 = vrot.slane %v3180_v33, 4  ;;  %v3833_v42 = vrot.slane %v3831_v63, 7 }
 0x198   : > { %v7321_v58 = vpop.f32.mrf.mxu0  ;;  %v3191_v34 = vrot.slane %v3190_v1, 4  ;;  %v5974_v29 = vrot.slane %v3817_v61, 11  ;;  %v3834_v39 = vshll.u32 %v3656_v14, 16  ;;  %v4705_v55 = vshrl.u32 %v4530_v36, 16 }
 0x199   : > { %v3829_v51 = vrot.slane %v3824_v62, 4  ;;  %v4714_v37 = vshll.u32 %v4531_v38, 16  ;;  %v4718_v33 = vshrl.u32 %v4531_v38, 16  ;;  %v7355_v63 = vadd.f32 %v7259_v4, %v7284_v53 }
 0x19a   : > { %v2050_v22 = vpop.f32.mrf.mxu2  ;;  %v1428_v49 = vpop.f32.mrf.mxu1  ;;  %v4707_v1 = vrot.slane %v4705_v55, 4  ;;  %v3196_v38 = vsel %vm6517_vm8, %v3191_v34, %v3195_v17  ;;  %v3207_v34 = vshll.u32 %v3003_v44, 16 }
 0x19b   : > { %v2096_v59 = vadd.f32 %v2050_v22, %v1426_v41  ;;  %v3827_v41 = vor.u32 %v3825_v56, %v3824_v62  ;;  %v8205_v22 = vld [vmem:[#allocation3_spill] sm:$0xff]  ;;  %v4716_v56 = vrot.slane %v4714_v37, 5  ;;  %v4720_v14 = vrot.slane %v4718_v33, 4 }
 0x19c   : > { %v2672_v30 = vpop.f32.mrf.mxu3  ;;  %v1429_v11 = vadd.f32 %v1428_v49, %v8205_v22  ;;  %8206 = vst [vmem:[#allocation3_spill] sm:$0xff] %v7355_v63  ;;  %v3186_v49 = vsel %vm6517_vm8, %v3181_v35, %v7315_v20  ;;  %v7378_v22 = vld [vmem:[#allocation2 + $0x94] sm:$0xf] }
 0x19d   : > { %v7341_v50 = vadd.f32 %v2672_v30, %v2096_v59  ;;  %5956 = vmatmul.msk.bf16.gmra.mxu1 %vm1118_vm2, %v3451_v54  ;;  %v4708_v59 = vshll.u32 %v4530_v36, 16  ;;  %v3836_v54 = vor.u32 %v3834_v39, %v3833_v42  ;;  %v7357_v36 = vunpack.c.l.b16 %v4693_v15  ;;  %v3002_v42 = vld [vmem:[#allocation2 + $0x84] sm:$0xf] }
 0x19e   : > { %v7359_v30 = vunpack.c.l.b16 %v4703_v28  ;;  %v3828_v53 = vsel %vm6499_vm7, %v5974_v29, %v3827_v41  ;;  %v4721_v20 = vor.u32 %v4720_v14, %v4716_v56  ;;  %v3198_v35 = vshrl.u32 %v3002_v42, 16  ;;  %v8209_v14 = vld [vmem:[#allocation4_spill] sm:$0xff] }
 0x19f   : > { %5989 = vmatmul.msk.bf16.gmra.mxu2 %vm1118_vm2, %v7279_v26  ;;  %v4710_v61 = vrot.slane %v4708_v59, 5  ;;  %v3837_v15 = vsel %vm6499_vm7, %v3829_v51, %v3836_v54  ;;  %v3201_v55 = vshll.u32 %v3002_v42, 16  ;;  %v3211_v59 = vshrl.u32 %v3003_v44, 16  ;;  %v7397_v44 = vld [vmem:[#allocation2 + $0x98] sm:$0xf] }
 0x1a0   : > { %v7350_v6 = vpop.f32.mrf.mxu0  ;;  %v7376_v37 = vunpack.c.l.b16 %v3186_v49  ;;  %v4722_v33 = vrot.slane %v4721_v20, 4  ;;  %v3200_v29 = vrot.slane %v3198_v35, 4  ;;  %v7380_v51 = vunpack.c.l.b16 %v3196_v38  ;;  %v4533_v35 = vld [vmem:[#allocation2 + $0x94] sm:$0xf] }
 0x1a1   : > { %6070 = vmatmul.msk.bf16.gmra.mxu3 %vm1118_vm2, %v6142_v23  ;;  %v8207_v23 = vpack.c.b16 %v7287_v31, %v7281_v2  ;;  %v4711_v28 = vor.u32 %v4710_v61, %v4707_v1  ;;  %v4726_v31 = vrot.slane %v4724_v0, 5  ;;  %v3203_v41 = vrot.slane %v3201_v55, 5 }
 0x1a2   : > { %v2053_v26 = vpop.f32.mrf.mxu2  ;;  %v1430_v62 = vpop.f32.mrf.mxu1  ;;  %v7382_v54 = vrot.slane %v3207_v34, 5  ;;  %v3213_v1 = vrot.slane %v3211_v59, 4  ;;  %v7386_v61 = vadd.f32 %v7295_v52, %v7309_v16  ;;  %v3452_v49 = vpack.c.b16 %v7331_v25, %v7329_v18  ;;  %v3657_v25 = vld [vmem:[#allocation2 + $0x90] sm:$0x8] }
 0x1a3   : > { %6087 = vmatmul.msk.bf16.gmra.mxu0 %vm1118_vm2, %v8207_v23  ;;  %v2097_v4 = vadd.f32 %v2053_v26, %v1429_v11  ;;  %v4712_v2 = vrot.slane %v4711_v28, 4  ;;  %v3004_v11 = vld [vmem:[#allocation2 + $0x8c] sm:$0x1]  ;;  %v1431_v0 = vadd.f32 %v1430_v62, %v8209_v14  ;;  %v4050_v23 = vunpack.c.l.b16 %v3828_v53 }
 0x1a4   : > { %v2675_v39 = vpop.f32.mrf.mxu3  ;;  %8208 = vst [vmem:[#allocation16_spill] sm:$0xff] %v7386_v61  ;;  %v4727_v28 = vsel %vm6517_vm8, %v4722_v33, %v4726_v31  ;;  %v3204_v42 = vor.u32 %v3203_v41, %v3200_v29  ;;  %v3844_v52 = vshrl.u32 %v7378_v22, 16  ;;  %v3217_v18 = vshll.u32 %v3004_v11, 16  ;;  %v8210_v29 = vld [vmem:[#allocation5_spill] sm:$0xff] }
 0x1a5   : > { %v7374_v17 = vadd.f32 %v2675_v39, %v2097_v4  ;;  %v4051_v4 = vunpack.c.l.b16 %v3837_v15  ;;  %v4717_v38 = vsel %vm6517_vm8, %v4712_v2, %v4716_v56  ;;  %v4075_v39 = vpack.c.b16 %v4049_v3, %v7333_v47  ;;  %v4534_v47 = vld [vmem:[#allocation2 + $0x98] sm:$0xf] }
 0x1a6   : > { %v4983_v56 = vpack.c.b16 %v7359_v30, %v7357_v36  ;;  %v3214_v20 = vor.u32 %v3213_v1, %v7382_v54  ;;  %v7410_v2 = vunpack.c.l.b16 %v4717_v38  ;;  %v7412_v31 = vunpack.c.l.b16 %v4727_v28  ;;  %v6143_v36 = vld [vmem:[#allocation2 + $0x74] sm:$0xff] }
 0x1a7   : > { %v7408_v34 = vpack.c.b16 %v4051_v4, %v4050_v23  ;;  %v3853_v48 = vshrl.u32 %v7397_v44, 16  ;;  %v3205_v30 = vrot.slane %v3204_v42, 4  ;;  %v3839_v59 = vshrl.u32 %v3657_v25, 16  ;;  %v4535_v23 = vld [vmem:[#allocation2 + $0x9c] sm:$0x1] }
 0x1a8   : > { %v7389_v26 = vpop.f32.mrf.mxu0  ;;  %v7418_v33 = vrot.slane %v3844_v52, 7  ;;  %v7421_v11 = vrot.slane %v3217_v18, 5  ;;  %v3847_v1 = vshll.u32 %v7378_v22, 16  ;;  %v4729_v14 = vshrl.u32 %v4533_v35, 16  ;;  %v3660_v42 = vld [vmem:[#allocation2 + $0xa0] sm:$0x8] }
 0x1a9   : > { %v4732_v4 = vshll.u32 %v4533_v35, 16  ;;  %v4738_v38 = vshll.u32 %v4534_v47, 16  ;;  %v3855_v52 = vrot.slane %v3853_v48, 7  ;;  %v7437_v25 = vadd.f32 %v7321_v58, %v7341_v50 }
 0x1aa   : > { %v2055_v16 = vpop.f32.mrf.mxu2  ;;  %v1433_v62 = vpop.f32.mrf.mxu1  ;;  %v3210_v35 = vsel %vm6517_vm8, %v3205_v30, %v7382_v54  ;;  %v4748_v48 = vshll.u32 %v4535_v23, 16  ;;  %v3851_v58 = vrot.slane %v7418_v33, 4 }
 0x1ab   : > { %v2098_v53 = vadd.f32 %v2055_v16, %v1431_v0  ;;  %v1434_v41 = vadd.f32 %v1433_v62, %v8210_v29  ;;  %v7425_v0 = vrot.slane %v3214_v20, 4  ;;  %v3856_v16 = vshll.u32 %v7397_v44, 16  ;;  %8211 = vst [vmem:[#allocation4_spill] sm:$0xff] %v7437_v25  ;;  %v3005_v29 = vld [vmem:[#allocation2 + $0x94] sm:$0xf] }
 0x1ac   : > { %v2677_v55 = vpop.f32.mrf.mxu3  ;;  %v4731_v62 = vrot.slane %v4729_v14, 4  ;;  %v4734_v22 = vrot.slane %v4732_v4, 5  ;;  %v7433_v18 = vrot.slane %v4738_v38, 5  ;;  %v3849_v44 = vor.u32 %v3847_v1, %v7418_v33  ;;  %v3006_v14 = vld [vmem:[#allocation2 + $0x98] sm:$0xf] }
 0x1ad   : > { %v7415_v3 = vadd.f32 %v2677_v55, %v2098_v53  ;;  %5957 = vmatmul.msk.bf16.gmra.mxu1 %vm1118_vm2, %v3452_v49  ;;  %v4742_v49 = vshrl.u32 %v4534_v47, 16  ;;  %v5975_v55 = vrot.slane %v3839_v59, 11  ;;  %v3222_v30 = vshrl.u32 %v3005_v29, 16 }
 0x1ae   : > { %v4735_v50 = vor.u32 %v4734_v22, %v4731_v62  ;;  %v3225_v59 = vshll.u32 %v3005_v29, 16  ;;  %v3231_v1 = vshll.u32 %v3006_v14, 16  ;;  %v3235_v38 = vshrl.u32 %v3006_v14, 16  ;;  %v3662_v62 = vld [vmem:[#allocation2 + $0xa8] sm:$0xf] }
 0x1af   : > { %5990 = vmatmul.msk.bf16.gmra.mxu2 %vm1118_vm2, %v4075_v39  ;;  %v4744_v39 = vrot.slane %v4742_v49, 4  ;;  %v3661_v49 = vld [vmem:[#allocation2 + $0xa4] sm:$0xf]  ;;  %v3850_v22 = vsel %vm6499_vm7, %v5975_v55, %v3849_v44  ;;  %v3861_v44 = vshrl.u32 %v3660_v42, 16 }
 0x1b0   : > { %v7427_v28 = vpop.f32.mrf.mxu0  ;;  %v3227_v33 = vrot.slane %v3225_v59, 5  ;;  %v3237_v29 = vrot.slane %v3235_v38, 4 }
 0x1b1   : > { %6071 = vmatmul.msk.bf16.gmra.mxu3 %vm1118_vm2, %v6143_v36  ;;  %v3220_v36 = vsel %vm6517_vm8, %v7425_v0, %v7421_v11  ;;  %v4745_v54 = vor.u32 %v4744_v39, %v7433_v18  ;;  %v3224_v11 = vrot.slane %v3222_v30, 4  ;;  %v7456_v0 = vrot.slane %v3231_v1, 5  ;;  %v3007_v39 = vld [vmem:[#allocation2 + $0x9c] sm:$0x1] }
 0x1b2   : > { %v2058_v53 = vpop.f32.mrf.mxu2  ;;  %v1435_v20 = vpop.f32.mrf.mxu1  ;;  %v8213_v30 = vld [vmem:[#allocation6_spill] sm:$0xff] }
 0x1b3   : > { %6088 = vmatmul.msk.bf16.gmra.mxu0 %vm1118_vm2, %v4983_v56  ;;  %v2099_v47 = vadd.f32 %v2058_v53, %v1434_v41  ;;  %v7452_v56 = vunpack.c.l.b16 %v3210_v35  ;;  %v3858_v41 = vor.u32 %v3856_v16, %v3855_v52  ;;  %v7454_v53 = vrot.slane %v4748_v48, 5 }
 0x1b4   : > { %v2680_v4 = vpop.f32.mrf.mxu3  ;;  %v7462_v35 = vadd.f32 %v7350_v6, %v7374_v17  ;;  %v4736_v16 = vrot.slane %v4735_v50, 4  ;;  %v4746_v48 = vrot.slane %v4745_v54, 4  ;;  %v3228_v14 = vor.u32 %v3227_v33, %v3224_v11  ;;  %v4536_v33 = vld [vmem:[#allocation2 + $0xa4] sm:$0xf] }
 0x1b5   : > { %v7450_v23 = vadd.f32 %v2680_v4, %v2099_v47  ;;  %v3866_v47 = vshrl.u32 %v3661_v49, 16  ;;  %v3241_v4 = vshll.u32 %v3007_v39, 16  ;;  %v1436_v59 = vadd.f32 %v1435_v20, %v8213_v30 }
 0x1b6   : > { %8212 = vst [vmem:[#allocation5_spill] sm:$0xff] %v7462_v35  ;;  %v7469_v1 = vsel %vm6499_vm7, %v3851_v58, %v3858_v41  ;;  %v3238_v55 = vor.u32 %v3237_v29, %v7456_v0  ;;  %v3229_v25 = vrot.slane %v3228_v14, 4  ;;  %v3869_v17 = vshll.u32 %v3661_v49, 16  ;;  %v4537_v49 = vld [vmem:[#allocation2 + $0xa8] sm:$0xf] }
 0x1b7   : > { %v3868_v6 = vrot.slane %v3866_v47, 7  ;;  %v3875_v35 = vshrl.u32 %v3662_v62, 16  ;;  %v7472_v50 = vunpack.c.l.b16 %v3220_v36  ;;  %v3243_v11 = vrot.slane %v3241_v4, 5 }
 0x1b8   : > { %v7464_v52 = vpop.f32.mrf.mxu0  ;;  %v3239_v54 = vrot.slane %v3238_v55, 4  ;;  %v7474_v39 = vunpack.c.l.b16 %v3850_v22  ;;  %v4053_v58 = vunpack.c.l.b16 %v7469_v1  ;;  %v4741_v42 = vsel %vm6517_vm8, %v4736_v16, %v7433_v18  ;;  %v6144_v22 = vld [vmem:[#allocation2 + $0x84] sm:$0xff]  ;;  %v4538_v18 = vld [vmem:[#allocation2 + $0xac] sm:$0x1] }
 0x1b9   : > { %v4751_v41 = vsel %vm6517_vm8, %v4746_v48, %v7454_v53  ;;  %v8214_v36 = vpack.c.b16 %v7380_v51, %v7376_v37  ;;  %v3234_v47 = vsel %vm6517_vm8, %v3229_v25, %v7456_v0  ;;  %v5976_v14 = vrot.slane %v3861_v44, 11  ;;  %v8215_v55 = vld [vmem:[#allocation7_spill] sm:$0xff] }
 0x1ba   : > { %v2060_v38 = vpop.f32.mrf.mxu2  ;;  %v1438_v15 = vpop.f32.mrf.mxu1  ;;  %v3877_v4 = vrot.slane %v3875_v35, 7  ;;  %v3871_v16 = vor.u32 %v3869_v17, %v3868_v6  ;;  %v3873_v30 = vrot.slane %v3868_v6, 4  ;;  %v4753_v53 = vshrl.u32 %v4536_v33, 16 }
 0x1bb   : > { %v2100_v61 = vadd.f32 %v2060_v38, %v1436_v59  ;;  %v3878_v59 = vshll.u32 %v3662_v62, 16  ;;  %v3244_v37 = vsel %vm6517_vm8, %v3239_v54, %v3243_v11  ;;  %v4756_v51 = vshll.u32 %v4536_v33, 16 }
 0x1bc   : > { %v2682_v20 = vpop.f32.mrf.mxu3  ;;  %v4766_v48 = vshrl.u32 %v4537_v49, 16  ;;  %v1439_v38 = vadd.f32 %v1438_v15, %v8215_v55  ;;  %v4755_v0 = vrot.slane %v4753_v53, 4  ;;  %v4772_v35 = vshll.u32 %v4538_v18, 16 }
 0x1bd   : > { %v7483_v29 = vadd.f32 %v2682_v20, %v2100_v61  ;;  %5958 = vmatmul.msk.bf16.gmra.mxu1 %vm1118_vm2, %v8214_v36  ;;  %v4762_v61 = vshll.u32 %v4537_v49, 16  ;;  %v3880_v25 = vor.u32 %v3878_v59, %v3877_v4  ;;  %v4758_v62 = vrot.slane %v4756_v51, 5  ;;  %v3008_v4 = vld [vmem:[#allocation2 + $0xa4] sm:$0xf] }
 0x1be   : > { %v4768_v6 = vrot.slane %v4766_v48, 4  ;;  %v7504_v11 = vunpack.c.l.b16 %v4741_v42  ;;  %v7506_v33 = vunpack.c.l.b16 %v4751_v41  ;;  %v7508_v15 = vunpack.c.l.b16 %v3234_v47  ;;  %v3009_v41 = vld [vmem:[#allocation2 + $0xa8] sm:$0xf] }
 0x1bf   : > { %5991 = vmatmul.msk.bf16.gmra.mxu2 %vm1118_vm2, %v7408_v34  ;;  %v4764_v44 = vrot.slane %v4762_v61, 5  ;;  %v7502_v34 = vadd.f32 %v7389_v26, %v7415_v3  ;;  %v7510_v49 = vunpack.c.l.b16 %v3244_v37  ;;  %v8217_v36 = vpack.c.b16 %v7412_v31, %v7410_v2 }
 0x1c0   : > { %v7497_v20 = vpop.f32.mrf.mxu0  ;;  %v3872_v26 = vsel %vm6499_vm7, %v5976_v14, %v3871_v16  ;;  %v3881_v3 = vsel %vm6499_vm7, %v3873_v30, %v3880_v25  ;;  %v4759_v42 = vor.u32 %v4758_v62, %v4755_v0  ;;  %v3246_v59 = vshrl.u32 %v3008_v4, 16  ;;  %v7522_v16 = vld [vmem:[#allocation2 + $0xb4] sm:$0xf]  ;;  %v3010_v0 = vld [vmem:[#allocation2 + $0xac] sm:$0x1] }
 0x1c1   : > { %6072 = vmatmul.msk.bf16.gmra.mxu3 %vm1118_vm2, %v6144_v22  ;;  %8216 = vst [vmem:[#allocation6_spill] sm:$0xff] %v7502_v34  ;;  %v4769_v47 = vor.u32 %v4768_v6, %v4764_v44  ;;  %v3249_v53 = vshll.u32 %v3008_v4, 16  ;;  %v3255_v37 = vshll.u32 %v3009_v41, 16  ;;  %v4774_v31 = vrot.slane %v4772_v35, 5  ;;  %v8229_v34 = vld [vmem:[#allocation13_spill] sm:$0xff] }
 0x1c2   : > { %v2063_v17 = vpop.f32.mrf.mxu2  ;;  %v1440_v54 = vpop.f32.mrf.mxu1  ;;  %v4760_v2 = vrot.slane %v4759_v42, 4  ;;  %v3259_v61 = vshrl.u32 %v3009_v41, 16  ;;  %v3248_v55 = vrot.slane %v3246_v59, 4  ;;  %v4054_v30 = vunpack.c.l.b16 %v3872_v26 }
 0x1c3   : > { %6089 = vmatmul.msk.bf16.gmra.mxu0 %vm1118_vm2, %v8217_v36  ;;  %v2101_v22 = vadd.f32 %v2063_v17, %v1439_v38  ;;  %v4770_v48 = vrot.slane %v4769_v47, 4  ;;  %v3251_v38 = vrot.slane %v3249_v53, 5  ;;  %v3257_v14 = vrot.slane %v3255_v37, 5  ;;  %v7524_v17 = vld [vmem:[#allocation2 + $0xb8] sm:$0xf]  ;;  %v8219_v36 = vld [vmem:[#allocation8_spill] sm:$0xff] }
 0x1c4   : > { %v2685_v18 = vpop.f32.mrf.mxu3  ;;  %v4055_v25 = vunpack.c.l.b16 %v3881_v3  ;;  %v3261_v62 = vrot.slane %v3259_v61, 4  ;;  %v7528_v6 = vadd.f32 %v7427_v28, %v7450_v23  ;;  %v3454_v42 = vpack.c.b16 %v7472_v50, %v7452_v56  ;;  %v3663_v53 = vld [vmem:[#allocation2 + $0xb0] sm:$0x8] }
 0x1c5   : > { %v7520_v51 = vadd.f32 %v2685_v18, %v2101_v22  ;;  %v1441_v22 = vadd.f32 %v1440_v54, %v8219_v36  ;;  %v3252_v4 = vor.u32 %v3251_v38, %v3248_v55  ;;  %v3265_v41 = vshll.u32 %v3010_v0, 16  ;;  %v6145_v0 = vld [vmem:[#allocation2 + $0x94] sm:$0xff] }
 0x1c6   : > { %8218 = vst [vmem:[#allocation7_spill] sm:$0xff] %v7528_v6  ;;  %v4765_v26 = vsel %vm6517_vm8, %v4760_v2, %v4764_v44  ;;  %v4775_v3 = vsel %vm6517_vm8, %v4770_v48, %v4774_v31  ;;  %v3262_v18 = vor.u32 %v3261_v62, %v3257_v14  ;;  %v3888_v47 = vshrl.u32 %v7522_v16, 16  ;;  %v4539_v31 = vld [vmem:[#allocation2 + $0xb4] sm:$0xf]  ;;  %v8224_v6 = vld [vmem:[#allocation11_spill] sm:$0xff] }
 0x1c7   : > { %v4077_v54 = vpack.c.b16 %v4053_v58, %v7474_v39  ;;  %v3253_v59 = vrot.slane %v3252_v4, 4  ;;  %v3897_v56 = vshrl.u32 %v7524_v17, 16  ;;  %v4985_v44 = vpack.c.b16 %v7506_v33, %v7504_v11  ;;  %v4540_v58 = vld [vmem:[#allocation2 + $0xb8] sm:$0xf] }
 0x1c8   : > { %v7531_v35 = vpop.f32.mrf.mxu0  ;;  %v7548_v2 = vpack.c.b16 %v4055_v25, %v4054_v30  ;;  %v7550_v48 = vunpack.c.l.b16 %v4765_v26  ;;  %v7552_v55 = vunpack.c.l.b16 %v4775_v3  ;;  %v3263_v1 = vrot.slane %v3262_v18, 4  ;;  %v4541_v30 = vld [vmem:[#allocation2 + $0xbc] sm:$0x1]  ;;  %v8220_v25 = vld [vmem:[#allocation9_spill] sm:$0xff] }
 0x1c9   : > { %v3267_v39 = vrot.slane %v3265_v41, 5  ;;  %v3883_v11 = vshrl.u32 %v3663_v53, 16  ;;  %v3890_v33 = vrot.slane %v3888_v47, 7  ;;  %v3891_v62 = vshll.u32 %v7522_v16, 16 }
 0x1ca   : > { %v2065_v28 = vpop.f32.mrf.mxu2  ;;  %v1443_v23 = vpop.f32.mrf.mxu1  ;;  %v3899_v4 = vrot.slane %v3897_v56, 7  ;;  %v4777_v26 = vshrl.u32 %v4539_v31, 16  ;;  %v3900_v41 = vshll.u32 %v7524_v17, 16  ;;  %v4780_v3 = vshll.u32 %v4539_v31, 16 }
 0x1cb   : > { %v2102_v50 = vadd.f32 %v2065_v28, %v1441_v22  ;;  %v1444_v36 = vadd.f32 %v1443_v23, %v8220_v25  ;;  %v3258_v22 = vsel %vm6517_vm8, %v3253_v59, %v3257_v14  ;;  %v4786_v18 = vshll.u32 %v4540_v58, 16 }
 0x1cc   : > { %v2687_v61 = vpop.f32.mrf.mxu3  ;;  %v3268_v47 = vsel %vm6517_vm8, %v3263_v1, %v3267_v39  ;;  %v4779_v23 = vrot.slane %v4777_v26, 4  ;;  %v4796_v53 = vshll.u32 %v4541_v30, 16  ;;  %v4782_v14 = vrot.slane %v4780_v3, 5  ;;  %v3011_v26 = vld [vmem:[#allocation2 + $0xb4] sm:$0xf] }
 0x1cd   : > { %v7554_v38 = vadd.f32 %v2687_v61, %v2102_v50  ;;  %5959 = vmatmul.msk.bf16.gmra.mxu1 %vm1118_vm2, %v3454_v42  ;;  %v4790_v42 = vshrl.u32 %v4540_v58, 16  ;;  %v4788_v59 = vrot.slane %v4786_v18, 5  ;;  %v7572_v17 = vadd.f32 %v7464_v52, %v7483_v29  ;;  %v3012_v3 = vld [vmem:[#allocation2 + $0xb8] sm:$0xf] }
 0x1ce   : > { %v7574_v31 = vunpack.c.l.b16 %v3258_v22  ;;  %v5977_v61 = vrot.slane %v3883_v11, 11  ;;  %v3893_v58 = vor.u32 %v3891_v62, %v3890_v33  ;;  %v3895_v25 = vrot.slane %v3890_v33, 4  ;;  %v3667_v33 = vld [vmem:[#allocation2 + $0xc4] sm:$0xf] }
 0x1cf   : > { %5992 = vmatmul.msk.bf16.gmra.mxu2 %vm1118_vm2, %v4077_v54  ;;  %v4792_v54 = vrot.slane %v4790_v42, 4  ;;  %8221 = vst [vmem:[#allocation8_spill] sm:$0xff] %v7572_v17  ;;  %v7577_v39 = vunpack.c.l.b16 %v3268_v47  ;;  %v4783_v30 = vor.u32 %v4782_v14, %v4779_v23  ;;  %v3270_v52 = vshrl.u32 %v3011_v26, 16  ;;  %v3013_v23 = vld [vmem:[#allocation2 + $0xbc] sm:$0x1] }
 0x1d0   : > { %v7563_v28 = vpop.f32.mrf.mxu0  ;;  %v3273_v29 = vshll.u32 %v3011_v26, 16  ;;  %v3279_v16 = vshll.u32 %v3012_v3, 16  ;;  %v4798_v11 = vrot.slane %v4796_v53, 5  ;;  %v3283_v62 = vshrl.u32 %v3012_v3, 16  ;;  %v8223_v53 = vld [vmem:[#allocation10_spill] sm:$0xff] }
 0x1d1   : > { %6073 = vmatmul.msk.bf16.gmra.mxu3 %vm1118_vm2, %v6145_v0  ;;  %v3902_v0 = vor.u32 %v3900_v41, %v3899_v4  ;;  %v4793_v42 = vor.u32 %v4792_v54, %v4788_v59  ;;  %v4784_v22 = vrot.slane %v4783_v30, 4  ;;  %v3668_v4 = vld [vmem:[#allocation2 + $0xc8] sm:$0xf]  ;;  %v3894_v41 = vsel %vm6499_vm7, %v5977_v61, %v3893_v58  ;;  %v3666_v54 = vld [vmem:[#allocation2 + $0xc0] sm:$0x8] }
 0x1d2   : > { %v2068_v56 = vpop.f32.mrf.mxu2  ;;  %v1445_v50 = vpop.f32.mrf.mxu1  ;;  %v7581_v47 = vrot.slane %v3279_v16, 5  ;;  %v3285_v14 = vrot.slane %v3283_v62, 4  ;;  %v3913_v62 = vshll.u32 %v3667_v33, 16 }
 0x1d3   : > { %6090 = vmatmul.msk.bf16.gmra.mxu0 %vm1118_vm2, %v4985_v44  ;;  %v2103_v1 = vadd.f32 %v2068_v56, %v1444_v36  ;;  %v4794_v17 = vrot.slane %v4793_v42, 4  ;;  %v3272_v44 = vrot.slane %v3270_v52, 4  ;;  %v3275_v36 = vrot.slane %v3273_v29, 5 }
 0x1d4   : > { %v2690_v18 = vpop.f32.mrf.mxu3  ;;  %v3910_v56 = vshrl.u32 %v3667_v33, 16  ;;  %v1446_v30 = vadd.f32 %v1445_v50, %v8223_v53  ;;  %v3903_v16 = vsel %vm6499_vm7, %v3895_v25, %v3902_v0  ;;  %v4789_v61 = vsel %vm6517_vm8, %v4784_v22, %v4788_v59  ;;  %v4542_v59 = vld [vmem:[#allocation2 + $0xc4] sm:$0xf] }
 0x1d5   : > { %v7579_v37 = vadd.f32 %v2690_v18, %v2103_v1  ;;  %v7587_v1 = vadd.f32 %v7497_v20, %v7520_v51  ;;  %v3276_v3 = vor.u32 %v3275_v36, %v3272_v44  ;;  %v3289_v18 = vshll.u32 %v3013_v23, 16 }
 0x1d6   : > { %v4799_v58 = vsel %vm6517_vm8, %v4794_v17, %v4798_v11  ;;  %v3286_v42 = vor.u32 %v3285_v14, %v7581_v47  ;;  %v3905_v52 = vshrl.u32 %v3666_v54, 16  ;;  %v3912_v50 = vrot.slane %v3910_v56, 7  ;;  %v4543_v14 = vld [vmem:[#allocation2 + $0xc8] sm:$0xf] }
 0x1d7   : > { %8222 = vst [vmem:[#allocation9_spill] sm:$0xff] %v7587_v1  ;;  %v3277_v29 = vrot.slane %v3276_v3, 4  ;;  %v3919_v53 = vshrl.u32 %v3668_v4, 16  ;;  %v4056_v44 = vunpack.c.l.b16 %v3894_v41  ;;  %v4057_v36 = vunpack.c.l.b16 %v3903_v16  ;;  %v4544_v16 = vld [vmem:[#allocation2 + $0xcc] sm:$0x1] }
 0x1d8   : > { %v7590_v26 = vpop.f32.mrf.mxu0  ;;  %v7602_v17 = vunpack.c.l.b16 %v4789_v61  ;;  %v7604_v11 = vunpack.c.l.b16 %v4799_v58  ;;  %v3291_v23 = vrot.slane %v3289_v18, 5  ;;  %v8225_v33 = vpack.c.b16 %v7510_v49, %v7508_v15 }
 0x1d9   : > { %v3282_v41 = vsel %vm6517_vm8, %v3277_v29, %v7581_v47  ;;  %v3287_v56 = vrot.slane %v3286_v42, 4  ;;  %v5978_v3 = vrot.slane %v3905_v52, 11  ;;  %v3915_v61 = vor.u32 %v3913_v62, %v3912_v50 }
 0x1da   : > { %v2070_v20 = vpop.f32.mrf.mxu2  ;;  %v3523_v51 = vpop.f32.mrf.mxu1  ;;  %v3922_v58 = vshll.u32 %v3668_v4, 16  ;;  %v4801_v18 = vshrl.u32 %v4542_v59, 16  ;;  %v4810_v15 = vshll.u32 %v4543_v14, 16  ;;  %v4814_v49 = vshrl.u32 %v4543_v14, 16 }
 0x1db   : > { %v2104_v1 = vadd.f32 %v2070_v20, %v1446_v30  ;;  %v3603_v25 = vadd.f32 %v3523_v51, %v8224_v6  ;;  %v6146_v6 = vld [vmem:[#allocation2 + $0xa4] sm:$0xff]  ;;  %v3921_v30 = vrot.slane %v3919_v53, 7  ;;  %v4804_v20 = vshll.u32 %v4542_v59, 16 }
 0x1dc   : > { %v2692_v22 = vpop.f32.mrf.mxu3  ;;  %v4803_v0 = vrot.slane %v4801_v18, 4  ;;  %v4820_v47 = vshll.u32 %v4544_v16, 16  ;;  %v7620_v52 = vrot.slane %v4810_v15, 5  ;;  %v4816_v4 = vrot.slane %v4814_v49, 4  ;;  %v3014_v16 = vld [vmem:[#allocation2 + $0xc4] sm:$0xf] }
 0x1dd   : > { %v7606_v54 = vadd.f32 %v2692_v22, %v2104_v1  ;;  %5960 = vmatmul.msk.bf16.gmra.mxu1 %vm1118_vm2, %v8225_v33  ;;  %v3917_v1 = vrot.slane %v3912_v50, 4  ;;  %v7617_v22 = vpack.c.b16 %v4057_v36, %v4056_v44  ;;  %v3924_v33 = vor.u32 %v3922_v58, %v3921_v30  ;;  %v3015_v58 = vld [vmem:[#allocation2 + $0xc8] sm:$0xf]  ;;  %v3670_v15 = vld [vmem:[#allocation2 + $0xd4] sm:$0xf] }
 0x1de   : > { %v4806_v42 = vrot.slane %v4804_v20, 5  ;;  %v7624_v29 = vadd.f32 %v7531_v35, %v7554_v38  ;;  %v3292_v53 = vsel %vm6517_vm8, %v3287_v56, %v3291_v23  ;;  %v7630_v44 = vunpack.c.l.b16 %v3282_v41  ;;  %v8228_v38 = vld [vmem:[#allocation12_spill] sm:$0xff] }
 0x1df   : > { %5993 = vmatmul.msk.bf16.gmra.mxu2 %vm1118_vm2, %v7548_v2  ;;  %v3916_v59 = vsel %vm6499_vm7, %v5978_v3, %v3915_v61  ;;  %v8227_v36 = vpack.c.b16 %v7552_v55, %v7550_v48  ;;  %v4817_v41 = vor.u32 %v4816_v4, %v7620_v52  ;;  %v3294_v56 = vshrl.u32 %v3014_v16, 16  ;;  %v3669_v4 = vld [vmem:[#allocation2 + $0xd0] sm:$0x8] }
 0x1e0   : > { %v5054_v51 = vpop.f32.mrf.mxu0  ;;  %8226 = vst [vmem:[#allocation10_spill] sm:$0xff] %v7624_v29  ;;  %v4807_v30 = vor.u32 %v4806_v42, %v4803_v0  ;;  %v3297_v18 = vshll.u32 %v3014_v16, 16  ;;  %v3303_v3 = vshll.u32 %v3015_v58, 16  ;;  %v4822_v48 = vrot.slane %v4820_v47, 5 }
 0x1e1   : > { %6074 = vmatmul.msk.bf16.gmra.mxu3 %vm1118_vm2, %v6146_v6  ;;  %v3925_v6 = vsel %vm6499_vm7, %v3917_v1, %v3924_v33  ;;  %v3307_v55 = vshrl.u32 %v3015_v58, 16  ;;  %v3296_v49 = vrot.slane %v3294_v56, 4  ;;  %v7644_v0 = vunpack.c.l.b16 %v3292_v53  ;;  %v3016_v33 = vld [vmem:[#allocation2 + $0xcc] sm:$0x1] }
 0x1e2   : > { %v4146_v2 = vpop.f32.mrf.mxu2  ;;  %v3525_v50 = vpop.f32.mrf.mxu1  ;;  %v4808_v20 = vrot.slane %v4807_v30, 4  ;;  %v4058_v62 = vunpack.c.l.b16 %v3916_v59  ;;  %v3313_v47 = vshll.u32 %v3016_v33, 16 }
 0x1e3   : > { %6091 = vmatmul.msk.bf16.gmra.mxu0 %vm1118_vm2, %v8227_v36  ;;  %v4226_v35 = vadd.f32 %v4146_v2, %v3603_v25  ;;  %v3604_v14 = vadd.f32 %v3525_v50, %v8228_v38  ;;  %v4818_v25 = vrot.slane %v4817_v41, 4  ;;  %v3299_v2 = vrot.slane %v3297_v18, 5  ;;  %v3671_v36 = vld [vmem:[#allocation2 + $0xd8] sm:$0xf] }
 0x1e4   : > { %v4400_v23 = vpop.f32.mrf.mxu3  ;;  %v3305_v50 = vrot.slane %v3303_v3, 5  ;;  %v3309_v42 = vrot.slane %v3307_v55, 4  ;;  %v3932_v38 = vshrl.u32 %v3670_v15, 16  ;;  %v4813_v58 = vsel %vm6517_vm8, %v4808_v20, %v7620_v52 }
 0x1e5   : > { %v4480_v61 = vadd.f32 %v4400_v23, %v4226_v35  ;;  %v4059_v35 = vunpack.c.l.b16 %v3925_v6  ;;  %v3300_v30 = vor.u32 %v3299_v2, %v3296_v49  ;;  %v3927_v41 = vshrl.u32 %v3669_v4, 16  ;;  %v4545_v2 = vld [vmem:[#allocation2 + $0xd4] sm:$0xf] }
 0x1e6   : > { %v3310_v23 = vor.u32 %v3309_v42, %v3305_v50  ;;  %v7649_v56 = vrot.slane %v3932_v38, 7  ;;  %v3315_v3 = vrot.slane %v3313_v47, 5  ;;  %v3941_v55 = vshrl.u32 %v3671_v36, 16 }
 0x1e7   : > { %v7642_v1 = vadd.f32 %v5054_v51, %v4480_v61  ;;  %v3301_v18 = vrot.slane %v3300_v30, 4  ;;  %v3935_v61 = vshll.u32 %v3670_v15, 16  ;;  %v4823_v6 = vsel %vm6517_vm8, %v4818_v25, %v4822_v48  ;;  %v4546_v15 = vld [vmem:[#allocation2 + $0xd8] sm:$0xf] }
 0x1e8   : > { %v5056_v16 = vpop.f32.mrf.mxu0  ;;  %v3311_v49 = vrot.slane %v3310_v23, 4  ;;  %v7656_v20 = vpack.c.b16 %v4059_v35, %v4058_v62  ;;  %v5979_v4 = vrot.slane %v3927_v41, 11  ;;  %v3943_v30 = vrot.slane %v3941_v55, 7 }
 0x1e9   : > { %v3306_v42 = vsel %vm6517_vm8, %v3301_v18, %v3305_v50  ;;  %v3937_v25 = vor.u32 %v3935_v61, %v7649_v56  ;;  %v7667_v62 = vunpack.c.l.b16 %v4813_v58  ;;  %v7669_v35 = vunpack.c.l.b16 %v4823_v6 }
 0x1ea   : > { %v4148_v51 = vpop.f32.mrf.mxu2  ;;  %v3528_v53 = vpop.f32.mrf.mxu1  ;;  %v3316_v48 = vsel %vm6517_vm8, %v3311_v49, %v3315_v3  ;;  %v3944_v50 = vshll.u32 %v3671_v36, 16  ;;  %v4825_v47 = vshrl.u32 %v4545_v2, 16  ;;  %v4834_v41 = vshll.u32 %v4546_v15, 16  ;;  %v7683_v36 = vld [vmem:[%s8183_s4] ss:$0 sm:$0xff] }
 0x1eb   : > { %v4227_v29 = vadd.f32 %v4148_v51, %v3604_v14  ;;  %v3605_v59 = vadd.f32 %v3528_v53, %v8229_v34  ;;  %v8230_v34 = vpack.c.b16 %v7577_v39, %v7574_v31  ;;  %v6147_v14 = vld [vmem:[#allocation2 + $0xb4] sm:$0xff]  ;;  %v3939_v31 = vrot.slane %v7649_v56, 4  ;;  %v4547_v39 = vld [vmem:[#allocation2 + $0xdc] sm:$0x1] }
 0x1ec   : > { %v4402_v33 = vpop.f32.mrf.mxu3  ;;  %v7676_v53 = vunpack.c.l.b16 %v3306_v42  ;;  %v7678_v18 = vunpack.c.l.b16 %v3316_v48  ;;  %v4827_v58 = vrot.slane %v4825_v47, 4  ;;  %v4838_v3 = vshrl.u32 %v4546_v15, 16 }
 0x1ed   : > { %v4481_v38 = vadd.f32 %v4402_v33, %v4227_v29  ;;  %5961 = vmatmul.msk.bf16.gmra.mxu1 %vm1118_vm2, %v8230_v34  ;;  %v4828_v29 = vshll.u32 %v4545_v2, 16  ;;  %v7688_v61 = vrot.slane %v4834_v41, 5  ;;  %v4844_v2 = vshll.u32 %v4547_v39, 16 }
 0x1ee   : > { %v4840_v49 = vrot.slane %v4838_v3, 4  ;;  %v7692_v33 = vadd.f32 %v7563_v28, %v7579_v37  ;;  %v7696_v42 = vadd.f32 %v7590_v26, %v7606_v54  ;;  %v8233_v15 = vpack.c.b16 %v7604_v11, %v7602_v17  ;;  %v3017_v54 = vld [vmem:[#allocation2 + $0xd4] sm:$0xf]  ;;  %v3673_v3 = vld [vmem:[#allocation2 + $0xe4] sm:$0xf] }
 0x1ef   : > { %v7671_v23 = vadd.f32 %v5056_v16, %v4481_v38  ;;  %5994 = vmatmul.msk.bf16.gmra.mxu2 %vm1118_vm2, %v7617_v22  ;;  %v3938_v22 = vsel %vm6499_vm7, %v5979_v4, %v3937_v25  ;;  %v3946_v16 = vor.u32 %v3944_v50, %v3943_v30  ;;  %v4830_v56 = vrot.slane %v4828_v29, 5  ;;  %v8234_v38 = vld [vmem:[#allocation14_spill] sm:$0xff] }
 0x1f0   : > { %v5059_v51 = vpop.f32.mrf.mxu0  ;;  %8231 = vst [vmem:[#allocation11_spill] sm:$0xff] %v7692_v33  ;;  %v7707_v28 = vunpack.c.l.b16 %v3938_v22  ;;  %v4841_v26 = vor.u32 %v4840_v49, %v7688_v61  ;;  %v3018_v30 = vld [vmem:[#allocation2 + $0xd8] sm:$0xf]  ;;  %v7712_v17 = vadd.f32 %v7683_v36, %v7642_v1  ;;  %v3318_v47 = vshrl.u32 %v3017_v54, 16 }
 0x1f1   : > { %6075 = vmatmul.msk.bf16.gmra.mxu3 %vm1118_vm2, %v6147_v14  ;;  %8232 = vst [vmem:[#allocation12_spill] sm:$0xff] %v7696_v42  ;;  %v4831_v48 = vor.u32 %v4830_v56, %v4827_v58  ;;  %v4846_v39 = vrot.slane %v4844_v2, 5  ;;  %v3321_v29 = vshll.u32 %v3017_v54, 16  ;;  %v3327_v41 = vshll.u32 %v3018_v30, 16  ;;  %v4548_v42 = vld [vmem:[#allocation2 + $0xe4] sm:$0xf] }
 0x1f2   : > { %v4151_v55 = vpop.f32.mrf.mxu2  ;;  %v3530_v6 = vpop.f32.mrf.mxu1  ;;  %v3331_v58 = vshrl.u32 %v3018_v30, 16  ;;  %v4842_v56 = vrot.slane %v4841_v26, 4  ;;  %v3954_v49 = vshrl.u32 %v3673_v3, 16  ;;  %v3957_v37 = vshll.u32 %v3673_v3, 16  ;;  %v6148_v3 = vld [vmem:[#allocation2 + $0xc4] sm:$0xff] }
 0x1f3   : > { %6092 = vmatmul.msk.bf16.gmra.mxu0 %vm1118_vm2, %v8233_v15  ;;  %v4228_v4 = vadd.f32 %v4151_v55, %v3605_v59  ;;  %v3606_v34 = vadd.f32 %v3530_v6, %v8234_v38  ;;  %v7716_v59 = vsel %vm6499_vm7, %v3939_v31, %v3946_v16  ;;  %v4832_v50 = vrot.slane %v4831_v48, 4  ;;  %v3674_v6 = vld [vmem:[#allocation2 + $0xe8] sm:$0xf]  ;;  %v3672_v16 = vld [vmem:[#allocation2 + $0xe0] sm:$0x8] }
 0x1f4   : > { %v4405_v25 = vpop.f32.mrf.mxu3  ;;  %v3320_v55 = vrot.slane %v3318_v47, 4  ;;  %v4061_v15 = vunpack.c.l.b16 %v7716_v59  ;;  %v3323_v38 = vrot.slane %v3321_v29, 5  ;;  %v3329_v31 = vrot.slane %v3327_v41, 5  ;;  %v8235_v29 = vld [vmem:[#allocation15_spill] sm:$0xff] }
 0x1f5   : > { %v4482_v11 = vadd.f32 %v4405_v25, %v4228_v4  ;;  %v3019_v4 = vld [vmem:[#allocation2 + $0xdc] sm:$0x1]  ;;  %v4837_v48 = vsel %vm6517_vm8, %v4832_v50, %v7688_v61  ;;  %v3949_v26 = vshrl.u32 %v3672_v16, 16  ;;  %v3956_v47 = vrot.slane %v3954_v49, 7 }
 0x1f6   : > { %v3337_v25 = vshll.u32 %v3019_v4, 16  ;;  %v3963_v59 = vshrl.u32 %v3674_v6, 16  ;;  %v4847_v52 = vsel %vm6517_vm8, %v4842_v56, %v4846_v39  ;;  %v7737_v39 = vunpack.c.l.b16 %v4837_v48 }
 0x1f7   : > { %v7718_v22 = vadd.f32 %v5059_v51, %v4482_v11  ;;  %v3333_v51 = vrot.slane %v3331_v58, 4  ;;  %v3324_v11 = vor.u32 %v3323_v38, %v3320_v55  ;;  %v5980_v50 = vrot.slane %v3949_v26, 11 }
 0x1f8   : > { %v5061_v1 = vpop.f32.mrf.mxu0  ;;  %v3339_v61 = vrot.slane %v3337_v25, 5  ;;  %v3959_v58 = vor.u32 %v3957_v37, %v3956_v47  ;;  %v8236_v55 = vpack.c.b16 %v7644_v0, %v7630_v44  ;;  %v3965_v49 = vrot.slane %v3963_v59, 7  ;;  %v4550_v37 = vld [vmem:[#allocation2 + $0xec] sm:$0x1] }
 0x1f9   : > { %v3334_v2 = vor.u32 %v3333_v51, %v3329_v31  ;;  %v3325_v63 = vrot.slane %v3324_v11, 4  ;;  %v7735_v38 = vadd.f32 %v7683_v36, %v7671_v23  ;;  %v7739_v56 = vunpack.c.l.b16 %v4847_v52  ;;  %v4549_v51 = vld [vmem:[#allocation2 + $0xe8] sm:$0xf] }
 0x1fa   : > { %v4153_v54 = vpop.f32.mrf.mxu2  ;;  %v3533_v30 = vpop.f32.mrf.mxu1  ;;  %v3966_v16 = vshll.u32 %v3674_v6, 16  ;;  %v3960_v0 = vsel %vm6499_vm7, %v5980_v50, %v3959_v58  ;;  %v3961_v23 = vrot.slane %v3956_v47, 4  ;;  %v4852_v25 = vshll.u32 %v4548_v42, 16 }
 0x1fb   : > { %v4229_v14 = vadd.f32 %v4153_v54, %v3606_v34  ;;  %v3607_v41 = vadd.f32 %v3533_v30, %v8235_v29  ;;  %v3335_v34 = vrot.slane %v3334_v2, 4  ;;  %v3330_v44 = vsel %vm6517_vm8, %v3325_v63, %v3329_v31 }
 0x1fc   : > { %v4407_v33 = vpop.f32.mrf.mxu3  ;;  %v3968_v6 = vor.u32 %v3966_v16, %v3965_v49  ;;  %v4862_v26 = vshrl.u32 %v4549_v51, 16  ;;  %v4868_v54 = vshll.u32 %v4550_v37, 16  ;;  %v4989_v30 = vpack.c.b16 %v7739_v56, %v7737_v39 }
 0x1fd   : > { %v4483_v4 = vadd.f32 %v4407_v33, %v4229_v14  ;;  %5962 = vmatmul.msk.bf16.gmra.mxu1 %vm1118_vm2, %v8236_v55  ;;  %v4849_v33 = vshrl.u32 %v4548_v42, 16  ;;  %v3340_v52 = vsel %vm6517_vm8, %v3335_v34, %v3339_v61  ;;  %v7757_v11 = vunpack.c.l.b16 %v3330_v44  ;;  %v3021_v34 = vld [vmem:[#allocation2 + $0xe8] sm:$0xf] }
 0x1fe   : > { %v7759_v47 = vunpack.c.l.b16 %v3960_v0  ;;  %v4854_v59 = vrot.slane %v4852_v25, 5  ;;  %v8237_v42 = vpack.c.b16 %v7669_v35, %v7667_v62  ;;  %v7766_v29 = vunpack.c.l.b16 %v3340_v52  ;;  %v3676_v0 = vld [vmem:[#allocation2 + $0xf4] sm:$0xf] }
 0x1ff   : > { %v7741_v14 = vadd.f32 %v5061_v1, %v4483_v4  ;;  %5995 = vmatmul.msk.bf16.gmra.mxu2 %vm1118_vm2, %v7656_v20  ;;  %v4851_v48 = vrot.slane %v4849_v33, 4  ;;  %v7753_v1 = vpack.c.b16 %v4061_v15, %v7707_v28  ;;  %v4858_v20 = vshll.u32 %v4549_v51, 16 }
 0x200   : > { %v5064_v2 = vpop.f32.mrf.mxu0  ;;  %v7770_v58 = vsel %vm6499_vm7, %v3961_v23, %v3968_v6  ;;  %v4864_v55 = vrot.slane %v4862_v26, 4  ;;  %v8238_v62 = vpack.c.bf16 %v7712_v17, %v7712_v17  ;;  %v4870_v49 = vrot.slane %v4868_v54, 5  ;;  %v3022_v26 = vld [vmem:[#allocation2 + $0xec] sm:$0x1] }
 0x201   : > { %6076 = vmatmul.msk.bf16.gmra.mxu3 %vm1118_vm2, %v6148_v3  ;;  %v4860_v61 = vrot.slane %v4858_v20, 5  ;;  %v4855_v4 = vor.u32 %v4854_v59, %v4851_v48  ;;  %v3020_v3 = vld [vmem:[#allocation2 + $0xe4] sm:$0xf]  ;;  %v3351_v33 = vshll.u32 %v3021_v34, 16  ;;  %v3355_v44 = vshrl.u32 %v3021_v34, 16 }
 0x202   : > { %v4156_v63 = vpop.f32.mrf.mxu2  ;;  %v3535_v31 = vpop.f32.mrf.mxu1  ;;  %v7775_v35 = vunpack.c.l.bf16 %v8238_v62  ;;  %v3345_v16 = vshll.u32 %v3020_v3, 16  ;;  %v3976_v48 = vshrl.u32 %v3676_v0, 16 }
 0x203   : > { %6093 = vmatmul.msk.bf16.gmra.mxu0 %vm1118_vm2, %v8237_v42  ;;  %v4230_v28 = vadd.f32 %v4156_v63, %v3607_v41  ;;  %v3608_v15 = vadd.f32 %v3535_v31, %v6879_v32  ;;  %v3342_v32 = vshrl.u32 %v3020_v3, 16  ;;  %v4856_v51 = vrot.slane %v4855_v4, 4 }
 0x204   : > { %v4410_v50 = vpop.f32.mrf.mxu3  ;;  %v4865_v37 = vor.u32 %v4864_v55, %v4860_v61  ;;  %v3347_v6 = vrot.slane %v3345_v16, 5  ;;  %v3353_v63 = vrot.slane %v3351_v33, 5  ;;  %v3357_v31 = vrot.slane %v3355_v44, 4  ;;  %v3677_v44 = vld [vmem:[#allocation2 + $0xf8] sm:$0xf] }
 0x205   : > { %v4484_v41 = vadd.f32 %v4410_v50, %v4230_v28  ;;  %v3344_v52 = vrot.slane %v3342_v32, 4  ;;  %v3361_v28 = vshll.u32 %v3022_v26, 16  ;;  %v3675_v50 = vld [vmem:[#allocation2 + $0xf0] sm:$0x8]  ;;  %v3978_v4 = vrot.slane %v3976_v48, 7 }
 0x206   : > { %v4866_v20 = vrot.slane %v4865_v37, 4  ;;  %v4861_v3 = vsel %vm6517_vm8, %v4856_v51, %v4860_v61  ;;  %v3358_v34 = vor.u32 %v3357_v31, %v3353_v63  ;;  %v3971_v62 = vshrl.u32 %v3675_v50, 16  ;;  %v6149_v51 = vld [vmem:[#allocation2 + $0xd4] sm:$0xff] }
 0x207   : > { %v7777_v23 = vadd.f32 %v5064_v2, %v4484_v41  ;;  %v3348_v42 = vor.u32 %v3347_v6, %v3344_v52  ;;  %v3979_v41 = vshll.u32 %v3676_v0, 16  ;;  %v3363_v26 = vrot.slane %v3361_v28, 5  ;;  %v4552_v0 = vld [vmem:[#allocation2 + $0xf8] sm:$0xf]  ;;  %v4553_v28 = vld [vmem:[#allocation2 + $0xfc] sm:$0x1] }
 0x208   : > { %v5066_v25 = vpop.f32.mrf.mxu0  ;;  %v4871_v37 = vsel %vm6517_vm8, %v4866_v20, %v4870_v49  ;;  %v3359_v6 = vrot.slane %v3358_v34, 4  ;;  %v5981_v48 = vrot.slane %v3971_v62, 11  ;;  %v8239_v61 = vpack.c.b16 %v7678_v18, %v7676_v53  ;;  %v4551_v49 = vld [vmem:[#allocation2 + $0xf4] sm:$0xf] }
 0x209   : > { %v3349_v33 = vrot.slane %v3348_v42, 4  ;;  %v3981_v59 = vor.u32 %v3979_v41, %v3978_v4  ;;  %v5338_v20 = vmul.f32 %v7775_v35, %v7775_v35  ;;  %v7797_v31 = vunpack.c.l.b16 %v4871_v37 }
 0x20a   : > { %v4158_v2 = vpop.f32.mrf.mxu2  ;;  %v3538_v55 = vpop.f32.mrf.mxu1  ;;  %v3364_v42 = vsel %vm6517_vm8, %v3359_v6, %v3363_v26  ;;  %v3985_v18 = vshrl.u32 %v3677_v44, 16  ;;  %v4873_v62 = vshrl.u32 %v4551_v49, 16  ;;  %v4876_v41 = vshll.u32 %v4551_v49, 16 }
 0x20b   : > { %v4231_v32 = vadd.f32 %v4158_v2, %v3608_v15  ;;  %v3609_v16 = vadd.f32 %v3538_v55, %v6893_v8  ;;  %v7791_v15 = vunpack.c.l.b16 %v4861_v3  ;;  %v3354_v8 = vsel %vm6517_vm8, %v3349_v33, %v3353_v63 }
 0x20c   : > { %v4412_v52 = vpop.f32.mrf.mxu3  ;;  %v3982_v53 = vsel %vm6499_vm7, %v5981_v48, %v3981_v59  ;;  %v7807_v63 = vunpack.c.l.b16 %v3354_v8  ;;  %v3983_v2 = vrot.slane %v3978_v4, 4  ;;  %v3988_v55 = vshll.u32 %v3677_v44, 16 }
 0x20d   : > { %v4485_v54 = vadd.f32 %v4412_v52, %v4231_v32  ;;  %5963 = vmatmul.msk.bf16.gmra.mxu1 %vm1118_vm2, %v8239_v61  ;;  %v3987_v34 = vrot.slane %v3985_v18, 7  ;;  %v4882_v32 = vshll.u32 %v4552_v0, 16  ;;  %v7810_v37 = vunpack.c.l.b16 %v3364_v42 }
 0x20e   : > { %v4064_v59 = vunpack.c.l.b16 %v3982_v53  ;;  %v4886_v33 = vshrl.u32 %v4552_v0, 16  ;;  %v4878_v26 = vrot.slane %v4876_v41, 5  ;;  %v8240_v53 = vpack.c.bf16 %v7735_v38, %v7735_v38 }
 0x20f   : > { %v7803_v50 = vadd.f32 %v5066_v25, %v4485_v54  ;;  %5996 = vmatmul.msk.bf16.gmra.mxu2 %vm1118_vm2, %v7753_v1  ;;  %v4892_v25 = vshll.u32 %v4553_v28, 16  ;;  %v3990_v6 = vor.u32 %v3988_v55, %v3987_v34  ;;  %v4875_v1 = vrot.slane %v4873_v62, 4 }
 0x210   : > { %v5069_v3 = vpop.f32.mrf.mxu0  ;;  %v4884_v48 = vrot.slane %v4882_v32, 5  ;;  %v4888_v61 = vrot.slane %v4886_v33, 4  ;;  %v5235_v18 = vunpack.c.l.bf16 %v8240_v53  ;;  %v3459_v32 = vpack.c.b16 %v7766_v29, %v7757_v11 }
 0x211   : > { %6077 = vmatmul.msk.bf16.gmra.mxu3 %vm1118_vm2, %v6149_v51  ;;  %v5267_v51 = vsel %vm5266_vm9, %v7775_v35, 0.0  ;;  %v3991_v49 = vsel %vm6499_vm7, %v3983_v2, %v3990_v6  ;;  %v4879_v0 = vor.u32 %v4878_v26, %v4875_v1  ;;  %v4894_v42 = vrot.slane %v4892_v25, 5 }
 0x212   : > { %v4161_v54 = vpop.f32.mrf.mxu2  ;;  %v3540_v52 = vpop.f32.mrf.mxu1  ;;  %v4065_v56 = vunpack.c.l.b16 %v3991_v49  ;;  %v5268_v35 = vsel %vm5266_vm9, %v5235_v18, 0.0  ;;  %v5339_v28 = vmul.f32 %v5235_v18, %v5235_v18  ;;  %v7831_v2 = vadd.f32 %v7683_v36, %v7741_v14  ;;  %v6150_v18 = vld [vmem:[#allocation2 + $0xe4] sm:$0xff] }
 0x213   : > { %6094 = vmatmul.msk.bf16.gmra.mxu0 %vm1118_vm2, %v4989_v30  ;;  %v4232_v4 = vadd.f32 %v4161_v54, %v3609_v16  ;;  %v3610_v44 = vadd.f32 %v3540_v52, %v6929_v27  ;;  %v4889_v30 = vor.u32 %v4888_v61, %v4884_v48  ;;  %v7826_v27 = vadd.f32 %v7683_v36, %v7718_v22 }
 0x214   : > { %v4415_v8 = vpop.f32.mrf.mxu3  ;;  %v4880_v16 = vrot.slane %v4879_v0, 4  ;;  %v7835_v62 = vadd.f32 %v5268_v35, %v5267_v51  ;;  %v8241_v22 = vunpack.c.l.b16 %v7770_v58  ;;  %v5370_v25 = vsel %vm5266_vm9, %v5338_v20, 0.0  ;;  %v3023_v58 = vld [vmem:[#allocation2 + $0xf4] sm:$0xf]  ;;  %v3024_v20 = vld [vmem:[#allocation2 + $0xf8] sm:$0xf] }
 0x215   : > { %v4486_v39 = vadd.f32 %v4415_v8, %v4232_v4  ;;  %v4890_v34 = vrot.slane %v4889_v30, 4  ;;  %v5371_v54 = vsel %vm5266_vm9, %v5339_v28, 0.0  ;;  %v4990_v14 = vpack.c.b16 %v7797_v31, %v7791_v15  ;;  %v3679_v0 = vld [vmem:[#allocation2 + $0x104] sm:$0xf] }
 0x216   : > { %v4082_v33 = vpack.c.b16 %v8241_v22, %v7759_v47  ;;  %v4885_v52 = vsel %vm6517_vm8, %v4880_v16, %v4884_v48  ;;  %v7850_v6 = vadd.f32 %v5371_v54, %v5370_v25  ;;  %v7852_v1 = vpack.c.b16 %v4065_v56, %v4064_v59  ;;  %v3025_v16 = vld [vmem:[#allocation2 + $0xfc] sm:$0x1] }
 0x217   : > { %v7833_v55 = vadd.f32 %v5069_v3, %v4486_v39  ;;  %v3460_v3 = vpack.c.b16 %v7810_v37, %v7807_v63  ;;  %v4895_v47 = vsel %vm6517_vm8, %v4890_v34, %v4894_v42  ;;  %v5204_v15 = vpack.c.bf16 %v7826_v27, %v7826_v27  ;;  %v3678_v34 = vld [vmem:[#allocation2 + $0x100] sm:$0x8] }
 0x218   : > { %v5071_v41 = vpop.f32.mrf.mxu0  ;;  %v5205_v31 = vpack.c.bf16 %v7831_v2, %v7831_v2  ;;  %v3366_v4 = vshrl.u32 %v3023_v58, 16  ;;  %v3369_v61 = vshll.u32 %v3023_v58, 16  ;;  %v7861_v8 = vunpack.c.l.b16 %v4885_v52 }
 0x219   : > { %v3375_v59 = vshll.u32 %v3024_v20, 16  ;;  %v3379_v49 = vshrl.u32 %v3024_v20, 16  ;;  %v7865_v42 = vadd.f32 %v7683_v36, %v7777_v23  ;;  %v3998_v56 = vshrl.u32 %v3679_v0, 16 }
 0x21a   : > { %v4163_v11 = vpop.f32.mrf.mxu2  ;;  %v3543_v29 = vpop.f32.mrf.mxu1  ;;  %v3371_v39 = vrot.slane %v3369_v61, 5  ;;  %v7868_v30 = vunpack.c.l.b16 %v4895_v47  ;;  %v5236_v22 = vunpack.c.l.bf16 %v5204_v15  ;;  %v3385_v54 = vshll.u32 %v3025_v16, 16  ;;  %v4554_v47 = vld [vmem:[#allocation2 + $0x104] sm:$0xf] }
 0x21b   : > { %v4233_v26 = vadd.f32 %v4163_v11, %v3610_v44  ;;  %v3611_v48 = vadd.f32 %v3543_v29, %v6940_v45  ;;  %v3368_v44 = vrot.slane %v3366_v4, 4  ;;  %v3680_v45 = vld [vmem:[#allocation2 + $0x108] sm:$0xf]  ;;  %v3377_v35 = vrot.slane %v3375_v59, 5 }
 0x21c   : > { %v4417_v51 = vpop.f32.mrf.mxu3  ;;  %v3381_v28 = vrot.slane %v3379_v49, 4  ;;  %v4000_v29 = vrot.slane %v3998_v56, 7  ;;  %v4001_v58 = vshll.u32 %v3679_v0, 16  ;;  %v4007_v20 = vshrl.u32 %v3680_v45, 16 }
 0x21d   : > { %v4487_v53 = vadd.f32 %v4417_v51, %v4233_v26  ;;  %5964 = vmatmul.msk.bf16.gmra.mxu1 %vm1118_vm2, %v3459_v32  ;;  %v3372_v23 = vor.u32 %v3371_v39, %v3368_v44  ;;  %v3993_v32 = vshrl.u32 %v3678_v34, 16  ;;  %v3387_v4 = vrot.slane %v3385_v54, 5  ;;  %v4555_v39 = vld [vmem:[#allocation2 + $0x108] sm:$0xf] }
 0x21e   : > { %v3382_v11 = vor.u32 %v3381_v28, %v3377_v35  ;;  %v4010_v15 = vshll.u32 %v3680_v45, 16  ;;  %v4005_v49 = vrot.slane %v4000_v29, 4  ;;  %v4897_v45 = vshrl.u32 %v4554_v47, 16 }
 0x21f   : > { %v7870_v25 = vadd.f32 %v5071_v41, %v4487_v53  ;;  %5997 = vmatmul.msk.bf16.gmra.mxu2 %vm1118_vm2, %v4082_v33  ;;  %v3373_v26 = vrot.slane %v3372_v23, 4  ;;  %v5982_v61 = vrot.slane %v3993_v32, 11  ;;  %v4003_v33 = vor.u32 %v4001_v58, %v4000_v29  ;;  %v4556_v23 = vld [vmem:[#allocation2 + $0x10c] sm:$0x1]  ;;  %v518_v32 = vld [vmem:[%s447_s16] sm:$0xff] }
 0x220   : > { %v5074_v52 = vpop.f32.mrf.mxu0  ;;  %v3383_v59 = vrot.slane %v3382_v11, 4  ;;  %v4009_v53 = vrot.slane %v4007_v20, 7  ;;  %v7886_v54 = vunpack.c.l.bf16 %v5205_v31  ;;  %v5340_v11 = vmul.f32 %v5236_v22, %v5236_v22 }
 0x221   : > { %6078 = vmatmul.msk.bf16.gmra.mxu3 %vm1118_vm2, %v6150_v18  ;;  %v3378_v18 = vsel %vm6517_vm8, %v3373_v26, %v3377_v35  ;;  %v4004_v28 = vsel %vm6499_vm7, %v5982_v61, %v4003_v33  ;;  %v4900_v29 = vshll.u32 %v4554_v47, 16  ;;  %v4906_v58 = vshll.u32 %v4555_v39, 16  ;;  %v519_v26 = vld [vmem:[%s447_s16 + $0x8] sm:$0xff] }
 0x222   : > { %v4166_v41 = vpop.f32.mrf.mxu2  ;;  %v3545_v51 = vpop.f32.mrf.mxu1  ;;  %v3388_v16 = vsel %vm6517_vm8, %v3383_v59, %v3387_v4  ;;  %v4012_v34 = vor.u32 %v4010_v15, %v4009_v53  ;;  %v4910_v20 = vshrl.u32 %v4555_v39, 16  ;;  %v4066_v31 = vunpack.c.l.b16 %v4004_v28 }
 0x223   : > { %6095 = vmatmul.msk.bf16.gmra.mxu0 %vm1118_vm2, %v4990_v14  ;;  %v4234_v0 = vadd.f32 %v4166_v41, %v3611_v48  ;;  %v3612_v44 = vadd.f32 %v3545_v51, %v6963_v19  ;;  %v7888_v48 = vunpack.c.l.b16 %v3378_v18  ;;  %v4899_v19 = vrot.slane %v4897_v45, 4 }
 0x224   : > { %v4420_v56 = vpop.f32.mrf.mxu3  ;;  %v7892_v35 = vsel %vm6499_vm7, %v4005_v49, %v4012_v34  ;;  %v7896_v61 = vunpack.c.l.b16 %v3388_v16  ;;  %v4916_v15 = vshll.u32 %v4556_v23, 16  ;;  %v4902_v51 = vrot.slane %v4900_v29, 5  ;;  %v3026_v34 = vld [vmem:[#allocation2 + $0x104] sm:$0xf]  ;;  %v3027_v16 = vld [vmem:[#allocation2 + $0x108] sm:$0xf] }
 0x225   : > { %v4488_v14 = vadd.f32 %v4420_v56, %v4234_v0  ;;  %v4908_v59 = vrot.slane %v4906_v58, 5  ;;  %v4912_v33 = vrot.slane %v4910_v20, 4  ;;  %v524_v53 = vmul.f32 0.0, %v518_v32 }
 0x226   : > { %v4067_v0 = vunpack.c.l.b16 %v7892_v35  ;;  %v4918_v18 = vrot.slane %v4916_v15, 5  ;;  %v525_v49 = vmul.f32 0.0, %v519_v26  ;;  %v5270_v47 = vsel %vm5266_vm9, %v5236_v22, 0.0 }
 0x227   : > { %v7894_v4 = vadd.f32 %v5074_v52, %v4488_v14  ;;  %v4903_v56 = vor.u32 %v4902_v51, %v4899_v19  ;;  %v4913_v52 = vor.u32 %v4912_v33, %v4908_v59  ;;  %v530_v14 = vpack.c.bf16 %v524_v53, %v524_v53 }
 0x228   : > { %v5076_v41 = vpop.f32.mrf.mxu0  ;;  %v7901_v28 = vadd.f32 %v5270_v47, %v7835_v62  ;;  %v3390_v32 = vshrl.u32 %v3026_v34, 16  ;;  %v3393_v58 = vshll.u32 %v3026_v34, 16  ;;  %v3399_v15 = vshll.u32 %v3027_v16, 16  ;;  %v6151_v62 = vld [vmem:[#allocation2 + $0xf4] sm:$0xff]  ;;  %v3028_v47 = vld [vmem:[#allocation2 + $0x10c] sm:$0x1] }
 0x229   : > { %v4904_v20 = vrot.slane %v4903_v56, 4  ;;  %v4914_v26 = vrot.slane %v4913_v52, 4  ;;  %v3403_v22 = vshrl.u32 %v3027_v16, 16  ;;  %533 = vst.msk [vmem:[#allocation2 + $0x114] sm:$0xf] %vm473_vm1, %v530_v14  ;;  %v531_v33 = vpack.c.bf16 %v525_v49, %v525_v49 }
 0x22a   : > { %v4168_v45 = vpop.f32.mrf.mxu2  ;;  %v3548_v39 = vpop.f32.mrf.mxu1  ;;  %v3392_v51 = vrot.slane %v3390_v32, 4  ;;  %v3681_v56 = vld [vmem:[#allocation2 + $0x110] sm:$0x8]  ;;  %v4991_v63 = vpack.c.b16 %v7868_v30, %v7861_v8  ;;  %v3409_v34 = vshll.u32 %v3028_v47, 16  ;;  %v5373_v16 = vsel %vm5266_vm9, %v5340_v11, 0.0 }
 0x22b   : > { %v4235_v23 = vadd.f32 %v4168_v45, %v3612_v44  ;;  %v3613_v29 = vadd.f32 %v3548_v39, %v6976_v12  ;;  %v3395_v44 = vrot.slane %v3393_v58, 5  ;;  %v4909_v12 = vsel %vm6517_vm8, %v4904_v20, %v4908_v59  ;;  %534 = vst.msk [vmem:[#allocation2 + $0x118] sm:$0xf] %vm473_vm1, %v531_v33 }
 0x22c   : > { %v4422_v35 = vpop.f32.mrf.mxu3  ;;  %v4919_v53 = vsel %vm6517_vm8, %v4914_v26, %v4918_v18  ;;  %v3401_v45 = vrot.slane %v3399_v15, 5  ;;  %v3405_v39 = vrot.slane %v3403_v22, 4  ;;  %v7919_v37 = vunpack.c.l.b16 %v4909_v12 }
 0x22d   : > { %v4489_v19 = vadd.f32 %v4422_v35, %v4235_v23  ;;  %5965 = vmatmul.msk.bf16.gmra.mxu1 %vm1118_vm2, %v3460_v3  ;;  %v3396_v3 = vor.u32 %v3395_v44, %v3392_v51  ;;  %v7922_v49 = vunpack.c.l.b16 %v4919_v53  ;;  %v4015_v14 = vshrl.u32 %v3681_v56, 16 }
 0x22e   : > { %v3406_v18 = vor.u32 %v3405_v39, %v3401_v45  ;;  %v5374_v23 = vadd.f32 %v5373_v16, %v7850_v6  ;;  %v5341_v8 = vmul.f32 %v7886_v54, %v7886_v54  ;;  %v3461_v58 = vpack.c.b16 %v7896_v61, %v7888_v48 }
 0x22f   : > { %v7913_v52 = vadd.f32 %v5076_v41, %v4489_v19  ;;  %5998 = vmatmul.msk.bf16.gmra.mxu2 %vm1118_vm2, %v7852_v1  ;;  %v3397_v41 = vrot.slane %v3396_v3, 4  ;;  %v4559_v1 = vld [vmem:[#allocation2 + $0x11c] sm:$0x1]  ;;  %v7931_v35 = vpack.c.b16 %v4067_v0, %v4066_v31  ;;  %v5206_v11 = vpack.c.bf16 %v7865_v42, %v7865_v42 }
 0x230   : > { %v5079_v59 = vpop.f32.mrf.mxu0  ;;  %v3407_v20 = vrot.slane %v3406_v18, 4  ;;  %v3411_v6 = vrot.slane %v3409_v34, 5  ;;  %v3682_v22 = vld [vmem:[#allocation2 + $0x114] sm:$0xf]  ;;  %v4992_v48 = vpack.c.b16 %v7922_v49, %v7919_v37  ;;  %v4940_v0 = vshll.u32 %v4559_v1, 16 }
 0x231   : > { %6079 = vmatmul.msk.bf16.gmra.mxu3 %vm1118_vm2, %v6151_v62  ;;  %v4557_v19 = vld [vmem:[#allocation2 + $0x114] sm:$0xf]  ;;  %v5272_v62 = vsel %vm5266_vm9, %v7886_v54, 0.0  ;;  %v3402_v61 = vsel %vm6517_vm8, %v3397_v41, %v3401_v45  ;;  %v4020_v31 = vshrl.u32 %v3682_v22, 16  ;;  %v7943_v33 = vrot.slane %v4015_v14, 11 }
 0x232   : > { %v4171_v30 = vpop.f32.mrf.mxu2  ;;  %v3550_v32 = vpop.f32.mrf.mxu1  ;;  %v3683_v12 = vld [vmem:[#allocation2 + $0x118] sm:$0xf]  ;;  %v4023_v47 = vshll.u32 %v3682_v22, 16  ;;  %v5273_v54 = vadd.f32 %v5272_v62, %v7901_v28  ;;  %v5238_v56 = vunpack.c.l.bf16 %v5206_v11  ;;  %v3412_v3 = vsel %vm6517_vm8, %v3407_v20, %v3411_v6 }
 0x233   : > { %6096 = vmatmul.msk.bf16.gmra.mxu0 %vm1118_vm2, %v4991_v63  ;;  %v4236_v26 = vadd.f32 %v4171_v30, %v3613_v29  ;;  %v3614_v15 = vadd.f32 %v3550_v32, %v7002_v46  ;;  %v4921_v29 = vshrl.u32 %v4557_v19, 16  ;;  %v4924_v46 = vshll.u32 %v4557_v19, 16  ;;  %v4558_v39 = vld [vmem:[#allocation2 + $0x118] sm:$0xf] }
 0x234   : > { %v4425_v51 = vpop.f32.mrf.mxu3  ;;  %v4022_v53 = vrot.slane %v4020_v31, 7  ;;  %v7950_v45 = vunpack.c.l.b16 %v3402_v61  ;;  %v4029_v18 = vshrl.u32 %v3683_v12, 16  ;;  %v4032_v16 = vshll.u32 %v3683_v12, 16 }
 0x235   : > { %v4490_v44 = vadd.f32 %v4425_v51, %v4236_v26  ;;  %v4923_v41 = vrot.slane %v4921_v29, 4  ;;  %v4926_v14 = vrot.slane %v4924_v46, 5  ;;  %v7954_v1 = vadd.f32 %v7683_v36, %v7803_v50 }
 0x236   : > { %v4031_v30 = vrot.slane %v4029_v18, 7  ;;  %v4930_v32 = vshll.u32 %v4558_v39, 16  ;;  %v4934_v28 = vshrl.u32 %v4558_v39, 16  ;;  %v7957_v22 = vunpack.c.l.b16 %v3412_v3 }
 0x237   : > { %v7946_v63 = vadd.f32 %v5079_v59, %v4490_v44  ;;  %v5375_v59 = vsel %vm5266_vm9, %v5341_v8, 0.0  ;;  %v4025_v20 = vor.u32 %v4023_v47, %v4022_v53  ;;  %v5274_v19 = vsel %vm5266_vm9, %v5238_v56, 0.0  ;;  %v6152_v8 = vld [vmem:[#allocation2 + $0x104] sm:$0xff] }
 0x238   : > { %v5081_v34 = vpop.f32.mrf.mxu0  ;;  %v5376_v6 = vadd.f32 %v5375_v59, %v5374_v23  ;;  %v4027_v61 = vrot.slane %v4022_v53, 4  ;;  %v4927_v31 = vor.u32 %v4926_v14, %v4923_v41  ;;  %v4034_v44 = vor.u32 %v4032_v16, %v4031_v30 }
 0x239   : > { %v4932_v29 = vrot.slane %v4930_v32, 5  ;;  %v4936_v46 = vrot.slane %v4934_v28, 4  ;;  %v5342_v12 = vmul.f32 %v5238_v56, %v5238_v56  ;;  %v4942_v3 = vrot.slane %v4940_v0, 5 }
 0x23a   : > { %v4173_v11 = vpop.f32.mrf.mxu2  ;;  %v3553_v26 = vpop.f32.mrf.mxu1  ;;  %v5275_v18 = vadd.f32 %v5274_v19, %v5273_v54  ;;  %v5207_v23 = vpack.c.bf16 %v7954_v1, %v7954_v1  ;;  %v4035_v41 = vsel %vm6499_vm7, %v4027_v61, %v4034_v44  ;;  %v7978_v30 = vadd.f32 %v7683_v36, %v7833_v55 }
 0x23b   : > { %v4237_v62 = vadd.f32 %v4173_v11, %v3614_v15  ;;  %v3615_v51 = vadd.f32 %v3553_v26, %v7055_v13  ;;  %v3462_v15 = vpack.c.b16 %v7957_v22, %v7950_v45  ;;  %v4026_v13 = vsel %vm6499_vm7, %v7943_v33, %v4025_v20 }
 0x23c   : > { %v4427_v50 = vpop.f32.mrf.mxu3  ;;  %v4937_v53 = vor.u32 %v4936_v46, %v4932_v29  ;;  %v5377_v47 = vsel %vm5266_vm9, %v5342_v12, 0.0  ;;  %v5239_v54 = vunpack.c.l.bf16 %v5207_v23  ;;  %v7982_v33 = vadd.f32 %v7683_v36, %v7870_v25 }
 0x23d   : > { %v4491_v39 = vadd.f32 %v4427_v50, %v4237_v62  ;;  %5966 = vmatmul.msk.bf16.gmra.mxu1 %vm1118_vm2, %v3461_v58  ;;  %v4928_v58 = vrot.slane %v4927_v31, 4  ;;  %v5378_v0 = vadd.f32 %v5377_v47, %v5376_v6  ;;  %v7988_v32 = vadd.f32 %v7683_v36, %v7894_v4 }
 0x23e   : > { %v4938_v14 = vrot.slane %v4937_v53, 4  ;;  %v7992_v7 = vadd.f32 %v7683_v36, %v7913_v52  ;;  %v4068_v59 = vunpack.c.l.b16 %v4026_v13  ;;  %v5208_v25 = vpack.c.bf16 %v7978_v30, %v7978_v30 }
 0x23f   : > { %v7970_v56 = vadd.f32 %v5081_v34, %v4491_v39  ;;  %5999 = vmatmul.msk.bf16.gmra.mxu2 %vm1118_vm2, %v7931_v35  ;;  %v5276_v35 = vsel %vm5266_vm9, %v5239_v54, 0.0  ;;  %v5343_v34 = vmul.f32 %v5239_v54, %v5239_v54  ;;  %v5209_v26 = vpack.c.bf16 %v7982_v33, %v7982_v33 }
 0x240   : > { %v5084_v16 = vpop.f32.mrf.mxu0  ;;  %v5277_v11 = vadd.f32 %v5276_v35, %v5275_v18  ;;  %v4069_v52 = vunpack.c.l.b16 %v4035_v41  ;;  %v5240_v61 = vunpack.c.l.bf16 %v5208_v25  ;;  %v5210_v50 = vpack.c.bf16 %v7988_v32, %v7988_v32 }
 0x241   : > { %6080 = vmatmul.msk.bf16.gmra.mxu3 %vm1118_vm2, %v6152_v8  ;;  %v5379_v6 = vsel %vm5266_vm9, %v5343_v34, 0.0  ;;  %v5241_v31 = vunpack.c.l.bf16 %v5209_v26  ;;  %v4933_v46 = vsel %vm6517_vm8, %v4928_v58, %v4932_v29  ;;  %v4943_v37 = vsel %vm6517_vm8, %v4938_v14, %v4942_v3 }
 0x242   : > { %v4176_v28 = vpop.f32.mrf.mxu2  ;;  %v3555_v55 = vpop.f32.mrf.mxu1  ;;  %v5380_v62 = vadd.f32 %v5379_v6, %v5378_v0  ;;  %v5278_v49 = vsel %vm5266_vm9, %v5240_v61, 0.0  ;;  %v5242_v18 = vunpack.c.l.bf16 %v5210_v50  ;;  %v4085_v53 = vpack.c.b16 %v4069_v52, %v4068_v59 }
 0x243   : > { %6097 = vmatmul.msk.bf16.gmra.mxu0 %vm1118_vm2, %v4992_v48  ;;  %v4238_v4 = vadd.f32 %v4176_v28, %v3615_v51  ;;  %v3616_v20 = vadd.f32 %v3555_v55, %v7063_v5  ;;  %v5211_v5 = vpack.c.bf16 %v7992_v7, %v7992_v7  ;;  %v5344_v48 = vmul.f32 %v5240_v61, %v5240_v61 }
 0x244   : > { %v4430_v19 = vpop.f32.mrf.mxu3  ;;  %v5280_v51 = vsel %vm5266_vm9, %v5241_v31, 0.0  ;;  %v5345_v12 = vmul.f32 %v5241_v31, %v5241_v31  ;;  %v5279_v8 = vadd.f32 %v5278_v49, %v5277_v11  ;;  %v4976_v47 = vunpack.c.l.b16 %v4933_v46 }
 0x245   : > { %v4492_v44 = vadd.f32 %v4430_v19, %v4238_v4  ;;  %v5243_v23 = vunpack.c.l.bf16 %v5211_v5  ;;  %v5381_v29 = vsel %vm5266_vm9, %v5344_v48, 0.0  ;;  %v5282_v0 = vsel %vm5266_vm9, %v5242_v18, 0.0 }
 0x246   : > { %v5383_v21 = vsel %vm5266_vm9, %v5345_v12, 0.0  ;;  %v5382_v3 = vadd.f32 %v5381_v29, %v5380_v62  ;;  %v5281_v58 = vadd.f32 %v5280_v51, %v5279_v8  ;;  %v5346_v54 = vmul.f32 %v5242_v18, %v5242_v18 }
 0x247   : > { %v5146_v39 = vadd.f32 %v5084_v16, %v4492_v44  ;;  %v4977_v35 = vunpack.c.l.b16 %v4943_v37  ;;  %v5284_v16 = vsel %vm5266_vm9, %v5243_v23, 0.0  ;;  %v5347_v34 = vmul.f32 %v5243_v23, %v5243_v23 }
 0x248   : > { %v5086_v13 = vpop.f32.mrf.mxu0  ;;  %v8020_v28 = vadd.f32 %v7683_v36, %v7946_v63  ;;  %v5384_v11 = vadd.f32 %v5383_v21, %v5382_v3  ;;  %v5385_v25 = vsel %vm5266_vm9, %v5346_v54, 0.0  ;;  %v5283_v4 = vadd.f32 %v5282_v0, %v5281_v58  ;;  %v6153_v63 = vld [vmem:[#allocation2 + $0x114] sm:$0xff]  ;;  %v8048_v3 = vld [vmem:[%s8183_s4] ss:$0 sm:$0xff] }
 0x249   : > { %v5387_v52 = vsel %vm5266_vm9, %v5347_v34, 0.0  ;;  %v4993_v31 = vpack.c.b16 %v4977_v35, %v4976_v47  ;;  %v8036_v45 = vadd.f32 %v7683_v36, %v7970_v56 }
 0x24a   : > { %v4178_v41 = vpop.f32.mrf.mxu2  ;;  %v3558_v14 = vpop.f32.mrf.mxu1  ;;  %v5212_v6 = vpack.c.bf16 %v8020_v28, %v8020_v28  ;;  %v5285_v62 = vadd.f32 %v5284_v16, %v5283_v4 }
 0x24b   : > { %v4239_v55 = vadd.f32 %v4178_v41, %v3616_v20  ;;  %v3617_v59 = vadd.f32 %v3558_v14, %v7079_v60  ;;  %v5386_v20 = vadd.f32 %v5385_v25, %v5384_v11  ;;  %v5213_v8 = vpack.c.bf16 %v8036_v45, %v8036_v45 }
 0x24c   : > { %v4432_v26 = vpop.f32.mrf.mxu3  ;;  %v5244_v60 = vunpack.c.l.bf16 %v5212_v6 }
 0x24d   : > { %v4493_v19 = vadd.f32 %v4432_v26, %v4239_v55  ;;  %5967 = vmatmul.msk.bf16.gmra.mxu1 %vm1118_vm2, %v3462_v15  ;;  %v5388_v50 = vadd.f32 %v5387_v52, %v5386_v20 }
 0x24e   : > { %v5286_v46 = vsel %vm5266_vm9, %v5244_v60, 0.0  ;;  %v5348_v37 = vmul.f32 %v5244_v60, %v5244_v60 }
 0x24f   : > { %v5147_v61 = vadd.f32 %v5086_v13, %v4493_v19  ;;  %6000 = vmatmul.msk.bf16.gmra.mxu2 %vm1118_vm2, %v4085_v53  ;;  %v5287_v5 = vadd.f32 %v5286_v46, %v5285_v62  ;;  %v5245_v13 = vunpack.c.l.bf16 %v5213_v8 }
 0x250   : > { %v5089_v44 = vpop.f32.mrf.mxu0  ;;  %v5389_v49 = vsel %vm5266_vm9, %v5348_v37, 0.0 }
 0x251   : > { %6081 = vmatmul.msk.bf16.gmra.mxu3 %vm1118_vm2, %v6153_v63  ;;  %v5390_v12 = vadd.f32 %v5389_v49, %v5388_v50  ;;  %v5288_v36 = vsel %vm5266_vm9, %v5245_v13, 0.0  ;;  %v5349_v56 = vmul.f32 %v5245_v13, %v5245_v13  ;;  %v8059_v52 = vadd.f32 %v8048_v3, %v5147_v61 }
 0x252   : > { %v4181_v22 = vpop.f32.mrf.mxu2  ;;  %v3560_v15 = vpop.f32.mrf.mxu1  ;;  %v5289_v29 = vadd.f32 %v5288_v36, %v5287_v5 }
 0x253   : > { %6098 = vmatmul.msk.bf16.gmra.mxu0 %vm1118_vm2, %v4993_v31  ;;  %v4240_v48 = vadd.f32 %v4181_v22, %v3617_v59  ;;  %v3618_v51 = vadd.f32 %v3560_v15, %v7130_v9  ;;  %v5391_v21 = vsel %vm5266_vm9, %v5349_v56, 0.0  ;;  %v8051_v9 = vadd.f32 %v8048_v3, %v5146_v39 }
 0x254   : > { %v4435_v18 = vpop.f32.mrf.mxu3  ;;  %v5392_v54 = vadd.f32 %v5391_v21, %v5390_v12  ;;  %v5215_v62 = vpack.c.bf16 %v8059_v52, %v8059_v52 }
 0x255   : > { %v4494_v23 = vadd.f32 %v4435_v18, %v4240_v48  ;;  %v5214_v14 = vpack.c.bf16 %v8051_v9, %v8051_v9 }
 0x256   : > { %v5247_v50 = vunpack.c.l.bf16 %v5215_v62 }
 0x257   : > { %v5148_v53 = vadd.f32 %v5089_v44, %v4494_v23  ;;  %v5246_v34 = vunpack.c.l.bf16 %v5214_v14 }
 0x258   : > { %v5091_v47 = vpop.f32.mrf.mxu0  ;;  %v5292_v46 = vsel %vm5266_vm9, %v5247_v50, 0.0  ;;  %v5351_v37 = vmul.f32 %v5247_v50, %v5247_v50 }
 0x259   : > { %v5290_v59 = vsel %vm5266_vm9, %v5246_v34, 0.0  ;;  %v5350_v11 = vmul.f32 %v5246_v34, %v5246_v34  ;;  %v8068_v49 = vadd.f32 %v8048_v3, %v5148_v53 }
 0x25a   : > { %v4183_v58 = vpop.f32.mrf.mxu2  ;;  %v3563_v0 = vpop.f32.mrf.mxu1  ;;  %v5291_v26 = vadd.f32 %v5290_v59, %v5289_v29  ;;  %v5395_v15 = vsel %vm5266_vm9, %v5351_v37, 0.0 }
 0x25b   : > { %v4241_v41 = vadd.f32 %v4183_v58, %v3618_v51  ;;  %v3619_v4 = vadd.f32 %v3563_v0, %v7143_v40  ;;  %v5393_v39 = vsel %vm5266_vm9, %v5350_v11, 0.0  ;;  %v5216_v13 = vpack.c.bf16 %v8068_v49, %v8068_v49 }
 0x25c   : > { %v4437_v35 = vpop.f32.mrf.mxu3  ;;  %v5394_v63 = vadd.f32 %v5393_v39, %v5392_v54  ;;  %v5293_v5 = vadd.f32 %v5292_v46, %v5291_v26 }
 0x25d   : > { %v4495_v16 = vadd.f32 %v4437_v35, %v4241_v41 }
 0x25e   : > { %v5396_v12 = vadd.f32 %v5395_v15, %v5394_v63 }
 0x25f   : > { %v5149_v55 = vadd.f32 %v5091_v47, %v4495_v16 }
 0x260   : > { %v5094_v25 = vpop.f32.mrf.mxu0 }
 0x261   : > { %v8077_v54 = vadd.f32 %v8048_v3, %v5149_v55 }
 0x262   : > { %v4186_v6 = vpop.f32.mrf.mxu2  ;;  %v3565_v19 = vpop.f32.mrf.mxu1 }
 0x263   : > { %v4242_v20 = vadd.f32 %v4186_v6, %v3619_v4  ;;  %v3620_v22 = vadd.f32 %v3565_v19, %v7188_v10  ;;  %v5248_v10 = vunpack.c.l.bf16 %v5216_v13 }
 0x264   : > { %v4440_v60 = vpop.f32.mrf.mxu3 }
 0x265   : > { %v4496_v31 = vadd.f32 %v4440_v60, %v4242_v20  ;;  %v5294_v29 = vsel %vm5266_vm9, %v5248_v10, 0.0  ;;  %v5352_v21 = vmul.f32 %v5248_v10, %v5248_v10 }
 0x266   : > { %v5295_v0 = vadd.f32 %v5294_v29, %v5293_v5 }
 0x267   : > { %v5150_v44 = vadd.f32 %v5094_v25, %v4496_v31  ;;  %v5397_v14 = vsel %vm5266_vm9, %v5352_v21, 0.0  ;;  %v5217_v25 = vpack.c.bf16 %v8077_v54, %v8077_v54 }
 0x268   : > { %v5096_v40 = vpop.f32.mrf.mxu0  ;;  %v5398_v11 = vadd.f32 %v5397_v14, %v5396_v12  ;;  %v8242_v14 = vld [vmem:[#allocation3_spill] sm:$0xff] }
 0x269   : > { %v5186_v61 = vadd.f32 %v8048_v3, %v5150_v44  ;;  %v5249_v26 = vunpack.c.l.bf16 %v5217_v25 }
 0x26a   : > { %v4188_v48 = vpop.f32.mrf.mxu2  ;;  %v3568_v51 = vpop.f32.mrf.mxu1 }
 0x26b   : > { %v4243_v8 = vadd.f32 %v4188_v48, %v3620_v22  ;;  %v6183_v18 = vpack.i.bf16 %v5186_v61, %v7712_v17  ;;  %v3621_v53 = vadd.f32 %v3568_v51, %v7205_v43  ;;  %v5218_v35 = vpack.c.bf16 %v5186_v61, %v5186_v61 }
 0x26c   : > { %v4442_v23 = vpop.f32.mrf.mxu3  ;;  %v5296_v6 = vsel %vm5266_vm9, %v5249_v26, 0.0  ;;  %v5353_v19 = vmul.f32 %v5249_v26, %v5249_v26 }
 0x26d   : > { %v4497_v36 = vadd.f32 %v4442_v23, %v4243_v8  ;;  %6184 = vxpose.xlu0.b32.start [1/16] (narrow) %v6183_v18, 8  ;;  %v5250_v4 = vunpack.c.l.bf16 %v5218_v35  ;;  %v5297_v62 = vadd.f32 %v5296_v6, %v5295_v0 }
 0x26e   : > { %v5399_v31 = vsel %vm5266_vm9, %v5353_v19, 0.0 }
 0x26f   : > { %v5151_v56 = vadd.f32 %v5096_v40, %v4497_v36  ;;  %v5354_v50 = vmul.f32 %v5250_v4, %v5250_v4  ;;  %v5400_v5 = vadd.f32 %v5399_v31, %v5398_v11  ;;  %v5298_v22 = vsel %vm5266_vm9, %v5250_v4, 0.0 }
 0x270   : > { %v5099_v47 = vpop.f32.mrf.mxu0  ;;  %v5299_v12 = vadd.f32 %v5298_v22, %v5297_v62 }
 0x271   : > { %v5187_v58 = vadd.f32 %v8048_v3, %v5151_v56 }
 0x272   : > { %v4191_v17 = vpop.f32.mrf.mxu2  ;;  %v3570_v41 = vpop.f32.mrf.mxu1 }
 0x273   : > { %v4244_v16 = vadd.f32 %v4191_v17, %v3621_v53  ;;  %v6185_v34 = vpack.i.bf16 %v5187_v58, %v7735_v38  ;;  %v3622_v63 = vadd.f32 %v3570_v41, %v7238_v24  ;;  %v5219_v44 = vpack.c.bf16 %v5187_v58, %v5187_v58 }
 0x274   : > { %v4445_v59 = vpop.f32.mrf.mxu3  ;;  %v5401_v24 = vsel %vm5266_vm9, %v5354_v50, 0.0 }
 0x275   : > { %v4498_v43 = vadd.f32 %v4445_v59, %v4244_v16  ;;  %6186 = vxpose.xlu0.b32.cont [2/16] (narrow) %v6185_v34, 8  ;;  %v5251_v15 = vunpack.c.l.bf16 %v5219_v44  ;;  %v5402_v36 = vadd.f32 %v5401_v24, %v5400_v5 }
 0x277   : > { %v5152_v39 = vadd.f32 %v5099_v47, %v4498_v43  ;;  %v5300_v21 = vsel %vm5266_vm9, %v5251_v15, 0.0 }
 0x278   : > { %v5101_v55 = vpop.f32.mrf.mxu0  ;;  %v5301_v41 = vadd.f32 %v5300_v21, %v5299_v12 }
 0x279   : > { %v5188_v20 = vadd.f32 %v8048_v3, %v5152_v39 }
 0x27a   : > { %v4193_v38 = vpop.f32.mrf.mxu2  ;;  %v3573_v60 = vpop.f32.mrf.mxu1 }
 0x27b   : > { %v4245_v46 = vadd.f32 %v4193_v38, %v3622_v63  ;;  %v6187_v37 = vpack.i.bf16 %v5188_v20, %v7826_v27  ;;  %v3623_v8 = vadd.f32 %v3573_v60, %v7303_v57  ;;  %v5355_v27 = vmul.f32 %v5251_v15, %v5251_v15  ;;  %v8243_v38 = vld [vmem:[#allocation16_spill] sm:$0xff] }
 0x27c   : > { %v4447_v40 = vpop.f32.mrf.mxu3  ;;  %v5220_v10 = vpack.c.bf16 %v5188_v20, %v5188_v20 }
 0x27d   : > { %v4499_v61 = vadd.f32 %v4447_v40, %v4245_v46  ;;  %6188 = vxpose.xlu0.b32.cont [3/16] (narrow) %v6187_v37, 8  ;;  %v5403_v58 = vsel %vm5266_vm9, %v5355_v27, 0.0 }
 0x27e   : > { %v5252_v0 = vunpack.c.l.bf16 %v5220_v10  ;;  %v5404_v11 = vadd.f32 %v5403_v58, %v5402_v36 }
 0x27f   : > { %v5153_v48 = vadd.f32 %v5101_v55, %v4499_v61 }
 0x280   : > { %v5104_v51 = vpop.f32.mrf.mxu0  ;;  %v5356_v25 = vmul.f32 %v5252_v0, %v5252_v0  ;;  %v5302_v39 = vsel %vm5266_vm9, %v5252_v0, 0.0 }
 0x281   : > { %v5189_v18 = vadd.f32 %v8048_v3, %v5153_v48  ;;  %v5303_v62 = vadd.f32 %v5302_v39, %v5301_v41 }
 0x282   : > { %v4196_v23 = vpop.f32.mrf.mxu2  ;;  %v3575_v13 = vpop.f32.mrf.mxu1  ;;  %v5405_v6 = vsel %vm5266_vm9, %v5356_v25, 0.0 }
 0x283   : > { %v4246_v56 = vadd.f32 %v4196_v23, %v3623_v8  ;;  %v6189_v47 = vpack.i.bf16 %v5189_v18, %v7831_v2  ;;  %v3624_v35 = vadd.f32 %v3575_v13, %v8242_v14  ;;  %v5221_v2 = vpack.c.bf16 %v5189_v18, %v5189_v18  ;;  %v8244_v18 = vld [vmem:[#allocation4_spill] sm:$0xff] }
 0x284   : > { %v4450_v29 = vpop.f32.mrf.mxu3  ;;  %v5406_v46 = vadd.f32 %v5405_v6, %v5404_v11 }
 0x285   : > { %v4500_v53 = vadd.f32 %v4450_v29, %v4246_v56  ;;  %6190 = vxpose.xlu0.b32.cont [4/16] (narrow) %v6189_v47, 8  ;;  %v5253_v19 = vunpack.c.l.bf16 %v5221_v2 }
 0x287   : > { %v5154_v17 = vadd.f32 %v5104_v51, %v4500_v53  ;;  %v5357_v37 = vmul.f32 %v5253_v19, %v5253_v19  ;;  %v5304_v61 = vsel %vm5266_vm9, %v5253_v19, 0.0 }
 0x288   : > { %v5106_v57 = vpop.f32.mrf.mxu0  ;;  %v5305_v8 = vadd.f32 %v5304_v61, %v5303_v62 }
 0x289   : > { %v5190_v16 = vadd.f32 %v8048_v3, %v5154_v17  ;;  %v5407_v15 = vsel %vm5266_vm9, %v5357_v37, 0.0 }
 0x28a   : > { %v4198_v34 = vpop.f32.mrf.mxu2  ;;  %v3578_v59 = vpop.f32.mrf.mxu1  ;;  %v5408_v10 = vadd.f32 %v5407_v15, %v5406_v46 }
 0x28b   : > { %v4247_v43 = vadd.f32 %v4198_v34, %v3624_v35  ;;  %v6191_v26 = vpack.i.bf16 %v5190_v16, %v7865_v42  ;;  %v3625_v60 = vadd.f32 %v3578_v59, %v8243_v38  ;;  %v5222_v42 = vpack.c.bf16 %v5190_v16, %v5190_v16  ;;  %v8245_v35 = vld [vmem:[#allocation5_spill] sm:$0xff]  ;;  %v8246_v38 = vld [vmem:[#allocation6_spill] sm:$0xff] }
 0x28c   : > { %v4452_v4 = vpop.f32.mrf.mxu3 }
 0x28d   : > { %v4501_v55 = vadd.f32 %v4452_v4, %v4247_v43  ;;  %6192 = vxpose.xlu0.b32.cont [5/16] (narrow) %v6191_v26, 8  ;;  %v5254_v48 = vunpack.c.l.bf16 %v5222_v42 }
 0x28f   : > { %v5155_v63 = vadd.f32 %v5106_v57, %v4501_v55  ;;  %v5358_v56 = vmul.f32 %v5254_v48, %v5254_v48  ;;  %v5306_v53 = vsel %vm5266_vm9, %v5254_v48, 0.0 }
 0x290   : > { %v5109_v20 = vpop.f32.mrf.mxu0  ;;  %v5307_v14 = vadd.f32 %v5306_v53, %v5305_v8  ;;  %v8247_v8 = vld [vmem:[#allocation7_spill] sm:$0xff] }
 0x291   : > { %v5191_v31 = vadd.f32 %v8048_v3, %v5155_v63  ;;  %v5409_v0 = vsel %vm5266_vm9, %v5358_v56, 0.0 }
 0x292   : > { %v4201_v50 = vpop.f32.mrf.mxu2  ;;  %v3580_v44 = vpop.f32.mrf.mxu1  ;;  %v5410_v25 = vadd.f32 %v5409_v0, %v5408_v10 }
 0x293   : > { %v4248_v40 = vadd.f32 %v4201_v50, %v3625_v60  ;;  %v6193_v5 = vpack.i.bf16 %v5191_v31, %v7954_v1  ;;  %v3626_v23 = vadd.f32 %v3580_v44, %v8244_v18  ;;  %v5223_v1 = vpack.c.bf16 %v5191_v31, %v5191_v31 }
 0x294   : > { %v4455_v22 = vpop.f32.mrf.mxu3 }
 0x295   : > { %v4502_v24 = vadd.f32 %v4455_v22, %v4248_v40  ;;  %6194 = vxpose.xlu0.b32.cont [6/16] (narrow) %v6193_v5, 8  ;;  %v5255_v17 = vunpack.c.l.bf16 %v5223_v1 }
 0x297   : > { %v5156_v51 = vadd.f32 %v5109_v20, %v4502_v24  ;;  %v5359_v2 = vmul.f32 %v5255_v17, %v5255_v17  ;;  %v5308_v39 = vsel %vm5266_vm9, %v5255_v17, 0.0 }
 0x298   : > { %v5111_v12 = vpop.f32.mrf.mxu0  ;;  %v5309_v62 = vadd.f32 %v5308_v39, %v5307_v14 }
 0x299   : > { %v5192_v13 = vadd.f32 %v8048_v3, %v5156_v51  ;;  %v5411_v6 = vsel %vm5266_vm9, %v5359_v2, 0.0 }
 0x29a   : > { %v4203_v36 = vpop.f32.mrf.mxu2  ;;  %v3583_v27 = vpop.f32.mrf.mxu1  ;;  %v5412_v46 = vadd.f32 %v5411_v6, %v5410_v25 }
 0x29b   : > { %v4249_v47 = vadd.f32 %v4203_v36, %v3626_v23  ;;  %v6195_v29 = vpack.i.bf16 %v5192_v13, %v7978_v30  ;;  %v3627_v16 = vadd.f32 %v3583_v27, %v8245_v35  ;;  %v5224_v30 = vpack.c.bf16 %v5192_v13, %v5192_v13 }
 0x29c   : > { %v4457_v21 = vpop.f32.mrf.mxu3 }
 0x29d   : > { %v4503_v58 = vadd.f32 %v4457_v21, %v4249_v47  ;;  %6196 = vxpose.xlu0.b32.cont [7/16] (narrow) %v6195_v29, 8  ;;  %v5256_v19 = vunpack.c.l.bf16 %v5224_v30 }
 0x29f   : > { %v5157_v57 = vadd.f32 %v5111_v12, %v4503_v58  ;;  %v5360_v37 = vmul.f32 %v5256_v19, %v5256_v19  ;;  %v5310_v22 = vsel %vm5266_vm9, %v5256_v19, 0.0 }
 0x2a0   : > { %v5114_v41 = vpop.f32.mrf.mxu0  ;;  %v5311_v12 = vadd.f32 %v5310_v22, %v5309_v62 }
 0x2a1   : > { %v5193_v34 = vadd.f32 %v8048_v3, %v5157_v57  ;;  %v5413_v24 = vsel %vm5266_vm9, %v5360_v37, 0.0 }
 0x2a2   : > { %v4206_v59 = vpop.f32.mrf.mxu2  ;;  %v3585_v11 = vpop.f32.mrf.mxu1  ;;  %v5414_v27 = vadd.f32 %v5413_v24, %v5412_v46 }
 0x2a3   : > { %v4250_v43 = vadd.f32 %v4206_v59, %v3627_v16  ;;  %v6197_v26 = vpack.i.bf16 %v5193_v34, %v7982_v33  ;;  %v3628_v60 = vadd.f32 %v3585_v11, %v8246_v38  ;;  %v5225_v33 = vpack.c.bf16 %v5193_v34, %v5193_v34 }
 0x2a4   : > { %v4460_v4 = vpop.f32.mrf.mxu3 }
 0x2a5   : > { %v4504_v55 = vadd.f32 %v4460_v4, %v4250_v43  ;;  %6198 = vxpose.xlu0.b32.cont [8/16] (narrow) %v6197_v26, 8  ;;  %v5257_v15 = vunpack.c.l.bf16 %v5225_v33 }
 0x2a7   : > { %v5158_v63 = vadd.f32 %v5114_v41, %v4504_v55  ;;  %v5361_v10 = vmul.f32 %v5257_v15, %v5257_v15  ;;  %v5312_v29 = vsel %vm5266_vm9, %v5257_v15, 0.0  ;;  %v8248_v41 = vld [vmem:[#allocation8_spill] sm:$0xff] }
 0x2a8   : > { %v5116_v20 = vpop.f32.mrf.mxu0  ;;  %v5313_v57 = vadd.f32 %v5312_v29, %v5311_v12 }
 0x2a9   : > { %v5194_v31 = vadd.f32 %v8048_v3, %v5158_v63  ;;  %v5415_v53 = vsel %vm5266_vm9, %v5361_v10, 0.0 }
 0x2aa   : > { %v4208_v50 = vpop.f32.mrf.mxu2  ;;  %v3588_v44 = vpop.f32.mrf.mxu1  ;;  %v5416_v11 = vadd.f32 %v5415_v53, %v5414_v27 }
 0x2ab   : > { %v4251_v42 = vadd.f32 %v4208_v50, %v3628_v60  ;;  %v6199_v40 = vpack.i.bf16 %v5194_v31, %v7988_v32  ;;  %v3629_v18 = vadd.f32 %v3588_v44, %v8247_v8  ;;  %v5226_v32 = vpack.c.bf16 %v5194_v31, %v5194_v31 }
 0x2ac   : > { %v4462_v5 = vpop.f32.mrf.mxu3 }
 0x2ad   : > { %v4505_v61 = vadd.f32 %v4462_v5, %v4251_v42  ;;  %6200 = vxpose.xlu0.b32.cont [9/16] (narrow) %v6199_v40, 8  ;;  %v5258_v58 = vunpack.c.l.bf16 %v5226_v32 }
 0x2af   : > { %v5159_v48 = vadd.f32 %v5116_v20, %v4505_v61  ;;  %v5314_v43 = vsel %vm5266_vm9, %v5258_v58, 0.0  ;;  %v8249_v20 = vld [vmem:[#allocation9_spill] sm:$0xff] }
 0x2b0   : > { %v5119_v51 = vpop.f32.mrf.mxu0  ;;  %v5315_v63 = vadd.f32 %v5314_v43, %v5313_v57 }
 0x2b1   : > { %v5195_v23 = vadd.f32 %v8048_v3, %v5159_v48 }
 0x2b2   : > { %v4211_v13 = vpop.f32.mrf.mxu2  ;;  %v3590_v36 = vpop.f32.mrf.mxu1 }
 0x2b3   : > { %v4252_v56 = vadd.f32 %v4211_v13, %v3629_v18  ;;  %v6201_v1 = vpack.i.bf16 %v5195_v23, %v7992_v7  ;;  %v3630_v14 = vadd.f32 %v3590_v36, %v8248_v41  ;;  %v5227_v16 = vpack.c.bf16 %v5195_v23, %v5195_v23 }
 0x2b4   : > { %v4465_v47 = vpop.f32.mrf.mxu3  ;;  %v5362_v7 = vmul.f32 %v5258_v58, %v5258_v58 }
 0x2b5   : > { %v4506_v21 = vadd.f32 %v4465_v47, %v4252_v56  ;;  %6202 = vxpose.xlu0.b32.cont [10/16] (narrow) %v6201_v1, 8  ;;  %v5259_v4 = vunpack.c.l.bf16 %v5227_v16 }
 0x2b6   : > { %v5417_v39 = vsel %vm5266_vm9, %v5362_v7, 0.0 }
 0x2b7   : > { %v5160_v0 = vadd.f32 %v5119_v51, %v4506_v21  ;;  %v5363_v60 = vmul.f32 %v5259_v4, %v5259_v4  ;;  %v5316_v40 = vsel %vm5266_vm9, %v5259_v4, 0.0  ;;  %v8250_v51 = vld [vmem:[#allocation10_spill] sm:$0xff] }
 0x2b8   : > { %v5121_v17 = vpop.f32.mrf.mxu0  ;;  %v5317_v48 = vadd.f32 %v5316_v40, %v5315_v63 }
 0x2b9   : > { %v5196_v35 = vadd.f32 %v8048_v3, %v5160_v0  ;;  %v5419_v61 = vsel %vm5266_vm9, %v5363_v60, 0.0  ;;  %v8252_v60 = vld [vmem:[#allocation12_spill] sm:$0xff] }
 0x2ba   : > { %v4213_v34 = vpop.f32.mrf.mxu2  ;;  %v3593_v59 = vpop.f32.mrf.mxu1 }
 0x2bb   : > { %v4253_v25 = vadd.f32 %v4213_v34, %v3630_v14  ;;  %v6203_v2 = vpack.i.bf16 %v5196_v35, %v8020_v28  ;;  %v5228_v6 = vpack.c.bf16 %v5196_v35, %v5196_v35  ;;  %v3631_v62 = vadd.f32 %v3593_v59, %v8249_v20  ;;  %v8251_v14 = vld [vmem:[#allocation11_spill] sm:$0xff] }
 0x2bc   : > { %v4467_v30 = vpop.f32.mrf.mxu3  ;;  %v5418_v28 = vadd.f32 %v5417_v39, %v5416_v11 }
 0x2bd   : > { %v4507_v26 = vadd.f32 %v4467_v30, %v4253_v25  ;;  %6204 = vxpose.xlu0.b32.cont [11/16] (narrow) %v6203_v2, 8  ;;  %v5260_v44 = vunpack.c.l.bf16 %v5228_v6 }
 0x2be   : > { %v5420_v36 = vadd.f32 %v5419_v61, %v5418_v28 }
 0x2bf   : > { %v5161_v55 = vadd.f32 %v5121_v17, %v4507_v26  ;;  %v5318_v24 = vsel %vm5266_vm9, %v5260_v44, 0.0  ;;  %v5364_v27 = vmul.f32 %v5260_v44, %v5260_v44 }
 0x2c0   : > { %v5124_v19 = vpop.f32.mrf.mxu0  ;;  %v5319_v13 = vadd.f32 %v5318_v24, %v5317_v48 }
 0x2c1   : > { %v5197_v38 = vadd.f32 %v8048_v3, %v5161_v55  ;;  %v5421_v58 = vsel %vm5266_vm9, %v5364_v27, 0.0 }
 0x2c2   : > { %v4216_v31 = vpop.f32.mrf.mxu2  ;;  %v3595_v50 = vpop.f32.mrf.mxu1 }
 0x2c3   : > { %v4254_v46 = vadd.f32 %v4216_v31, %v3631_v62  ;;  %v5229_v37 = vpack.c.bf16 %v5197_v38, %v5197_v38  ;;  %v6205_v33 = vpack.i.bf16 %v5197_v38, %v8036_v45  ;;  %v3632_v12 = vadd.f32 %v3595_v50, %v8250_v51 }
 0x2c4   : > { %v4470_v42 = vpop.f32.mrf.mxu3 }
 0x2c5   : > { %v4508_v5 = vadd.f32 %v4470_v42, %v4254_v46  ;;  %v5261_v22 = vunpack.c.l.bf16 %v5229_v37  ;;  %6206 = vxpose.xlu0.b32.cont [12/16] (narrow) %v6205_v33, 8 }
 0x2c7   : > { %v5162_v15 = vadd.f32 %v5124_v19, %v4508_v5  ;;  %v5320_v8 = vsel %vm5266_vm9, %v5261_v22, 0.0  ;;  %v5365_v0 = vmul.f32 %v5261_v22, %v5261_v22 }
 0x2c8   : > { %v5126_v23 = vpop.f32.mrf.mxu0  ;;  %v5321_v29 = vadd.f32 %v5320_v8, %v5319_v13 }
 0x2c9   : > { %v5198_v18 = vadd.f32 %v8048_v3, %v5162_v15  ;;  %v5423_v11 = vsel %vm5266_vm9, %v5365_v0, 0.0 }
 0x2ca   : > { %v4218_v45 = vpop.f32.mrf.mxu2  ;;  %v3598_v47 = vpop.f32.mrf.mxu1 }
 0x2cb   : > { %v4255_v10 = vadd.f32 %v4218_v45, %v3632_v12  ;;  %v5230_v32 = vpack.c.bf16 %v5198_v18, %v5198_v18  ;;  %v6207_v56 = vpack.i.bf16 %v5198_v18, %v8051_v9  ;;  %v3633_v35 = vadd.f32 %v3598_v47, %v8251_v14 }
 0x2cc   : > { %v4472_v1 = vpop.f32.mrf.mxu3  ;;  %v5422_v9 = vadd.f32 %v5421_v58, %v5420_v36 }
 0x2cd   : > { %v4509_v21 = vadd.f32 %v4472_v1, %v4255_v10  ;;  %v5262_v53 = vunpack.c.l.bf16 %v5230_v32  ;;  %6208 = vxpose.xlu0.b32.cont [13/16] (narrow) %v6207_v56, 8 }
 0x2ce   : > { %v5424_v6 = vadd.f32 %v5423_v11, %v5422_v9 }
 0x2cf   : > { %v5163_v17 = vadd.f32 %v5126_v23, %v4509_v21  ;;  %v5322_v57 = vsel %vm5266_vm9, %v5262_v53, 0.0  ;;  %v5366_v16 = vmul.f32 %v5262_v53, %v5262_v53 }
 0x2d0   : > { %v5323_v41 = vadd.f32 %v5322_v57, %v5321_v29  ;;  %v5129_v30 = vpop.f32.mrf.mxu0 }
 0x2d1   : > { %v5199_v34 = vadd.f32 %v8048_v3, %v5163_v17  ;;  %v5425_v26 = vsel %vm5266_vm9, %v5366_v16, 0.0 }
 0x2d2   : > { %v4221_v59 = vpop.f32.mrf.mxu2  ;;  %v3600_v55 = vpop.f32.mrf.mxu1  ;;  %v5426_v38 = vadd.f32 %v5425_v26, %v5424_v6 }
 0x2d3   : > { %v4256_v7 = vadd.f32 %v4221_v59, %v3633_v35  ;;  %v5231_v25 = vpack.c.bf16 %v5199_v34, %v5199_v34  ;;  %v6209_v2 = vpack.i.bf16 %v5199_v34, %v8059_v52  ;;  %v3634_v31 = vadd.f32 %v3600_v55, %v8252_v60 }
 0x2d4   : > { %v4475_v43 = vpop.f32.mrf.mxu3 }
 0x2d5   : > { %v4510_v4 = vadd.f32 %v4475_v43, %v4256_v7  ;;  %v5263_v39 = vunpack.c.l.bf16 %v5231_v25  ;;  %6210 = vxpose.xlu0.b32.cont [14/16] (narrow) %v6209_v2, 8 }
 0x2d7   : > { %v5164_v19 = vadd.f32 %v5129_v30, %v4510_v4  ;;  %v5324_v63 = vsel %vm5266_vm9, %v5263_v39, 0.0  ;;  %v5367_v20 = vmul.f32 %v5263_v39, %v5263_v39 }
 0x2d8   : > { %v5325_v62 = vadd.f32 %v5324_v63, %v5323_v41  ;;  %v5131_v22 = vpop.f32.mrf.mxu0 }
 0x2d9   : > { %v5427_v50 = vsel %vm5266_vm9, %v5367_v20, 0.0  ;;  %v5200_v52 = vadd.f32 %v8048_v3, %v5164_v19 }
 0x2da   : > { %v4223_v28 = vpop.f32.mrf.mxu2  ;;  %v5428_v44 = vadd.f32 %v5427_v50, %v5426_v38 }
 0x2db   : > { %v4257_v46 = vadd.f32 %v4223_v28, %v3634_v31  ;;  %v5232_v37 = vpack.c.bf16 %v5200_v52, %v5200_v52  ;;  %v6211_v33 = vpack.i.bf16 %v5200_v52, %v8068_v49 }
 0x2dc   : > { %v4477_v42 = vpop.f32.mrf.mxu3 }
 0x2dd   : > { %v4511_v40 = vadd.f32 %v4477_v42, %v4257_v46  ;;  %v5264_v5 = vunpack.c.l.bf16 %v5232_v37  ;;  %6212 = vxpose.xlu0.b32.cont [15/16] (narrow) %v6211_v33, 8 }
 0x2df   : > { %v5165_v61 = vadd.f32 %v5131_v22, %v4511_v40  ;;  %v5326_v24 = vsel %vm5266_vm9, %v5264_v5, 0.0  ;;  %v5368_v15 = vmul.f32 %v5264_v5, %v5264_v5 }
 0x2e0   : > { %v5327_v48 = vadd.f32 %v5326_v24, %v5325_v62 }
 0x2e1   : > { %v5429_v51 = vsel %vm5266_vm9, %v5368_v15, 0.0  ;;  %v5201_v12 = vadd.f32 %v8048_v3, %v5165_v61 }
 0x2e2   : > { %v5430_v8 = vadd.f32 %v5429_v51, %v5428_v44 }
 0x2e3   : > { %v5233_v18 = vpack.c.bf16 %v5201_v12, %v5201_v12  ;;  %v6213_v23 = vpack.i.bf16 %v5201_v12, %v8077_v54 }
 0x2e5   : > { %v5265_v45 = vunpack.c.l.bf16 %v5233_v18  ;;  %6214 = vxpose.xlu0.b32.end [16/16] (narrow) %v6213_v23, 8 }
 0x2e7   : > { %v5328_v49 = vsel %vm5266_vm9, %v5265_v45, 0.0  ;;  %v5369_v13 = vmul.f32 %v5265_v45, %v5265_v45 }
 0x2e8   : > { %v5329_v36 = vadd.f32 %v5328_v49, %v5327_v48 }
 0x2e9   : > { %v5431_v27 = vsel %vm5266_vm9, %v5369_v13, 0.0 }
 0x2ea   : > { %v5330_v10 = vrot.slane %v5329_v36, 4  ;;  %v5432_v32 = vadd.f32 %v5431_v27, %v5430_v8 }
 0x2ec   : > { %v5331_v56 = vadd.f32 %v5330_v10, %v5329_v36  ;;  %v5433_v1 = vrot.slane %v5432_v32, 4 }
 0x2ee   : > { %v5332_v3 = vrot.slane %v5331_v56, 2  ;;  %v5434_v47 = vadd.f32 %v5433_v1, %v5432_v32 }
 0x2f0   : > { %v5333_v29 = vadd.f32 %v5332_v3, %v5331_v56  ;;  %v5435_v21 = vrot.slane %v5434_v47, 2 }
 0x2f2   : > { %v5334_v54 = vrot.slane %v5333_v29, 1  ;;  %v5436_v53 = vadd.f32 %v5435_v21, %v5434_v47 }
 0x2f4   : > { %v5335_v58 = vadd.f32 %v5334_v54, %v5333_v29  ;;  %v5437_v0 = vrot.slane %v5436_v53, 1 }
 0x2f6   : > { %5337 = vst.msk [vmem:[%s465_s21] sm:$0x1] %vm5336_vm10, %v5335_v58  ;;  %v5438_v17 = vadd.f32 %v5437_v0, %v5436_v53 }
 0x2f8   : > { %5439 = vst.msk [vmem:[%s470_s28] sm:$0x1] %vm5336_vm10, %v5438_v17 }
 0x311   : > { %v6215_v57 = vpop.trf.xlu0 }
 0x312   : > { %v6219_v41 = vunpack.i.h.bf16 %v6215_v57  ;;  %v6216_v14 = vunpack.i.l.bf16 %v6215_v57 }
 0x314   : > { %v5504_v35 = vpack.c.bf16 %v6219_v41, %v6216_v14 }
 0x316   : > { %5505 = vst [vmem:[%s460_s9] sm:$0xff] %v5504_v35 }
 0x317 PF: > { %s18_s26 = sadd.s32 1, %s6244_s26   ;;  %s8253_s24 = smov %s6240_s25 }
 0x318   : > { %p15_p5 = scmp.ge.s32.totalorder %s18_s26, 4   ;;  %s8254_s25 = smov %s8256_s27 }
 0x31a   :  { %17 = sbr.rel (!%p15_p5) target bundleno = 2 (0x2), region = 111 }

</bundles_post_ra>
